<compile_context>
chip_gen: v7x
topology: tpu7x:2x2x1
jax: 0.10.0
libtpu: 0.0.40
codegen_flags: <defaults>
</compile_context>

<pallas_src>
import jax
import jax.numpy as jnp
from jax.experimental import pallas as pl
from jax.experimental.pallas import tpu as pltpu


def yang_kernel(x_ref,       # (B, tk)  bf16 tile of the flattened image
                wcat_ref,    # (tk, 3F) bf16 tile of [w1 | w2 | w3]
                bcat_ref,    # (1, 3F)  f32 packed backbone biases (resident)
                wl_ref,      # (3F, F)  bf16 fusion linear weight   (resident)
                bl_ref,      # (1, F)   f32 fusion linear bias      (resident)
                wc_ref,      # (F, C)   bf16 classifier weight      (resident)
                bc_ref,      # (1, C)   f32 classifier bias         (resident)
                o_ref,       # (B, C)   f32 softmax probabilities
                acc_ref):    # (B, 3F)  f32 VMEM accumulator scratch
    k = pl.program_id(0)

    @pl.when(k == 0)
    def _():
        acc_ref[...] = jnp.zeros_like(acc_ref)

    # Fused backbone heads: concat([x@w1, x@w2, x@w3], -1) == x @ [w1|w2|w3].
    acc_ref[...] += jnp.dot(x_ref[...], wcat_ref[...],
                            preferred_element_type=jnp.float32)

    @pl.when(k == pl.num_programs(0) - 1)
    def _():
        ct = acc_ref[...] + bcat_ref[...]                               # [B, 3F]
        h = jnp.dot(ct.astype(wl_ref.dtype), wl_ref[...],
                    preferred_element_type=jnp.float32) + bl_ref[...]   # linear
        logits = jnp.dot(h.astype(wc_ref.dtype), wc_ref[...],
                         preferred_element_type=jnp.float32) + bc_ref[...]  # linear2
        # softmax over dim=1 (classes)
        m = jnp.max(logits, axis=-1, keepdims=True)
        e = jnp.exp(logits - m)
        o_ref[...] = e * pl.reciprocal(jnp.sum(e, axis=-1, keepdims=True),
                                       approx=False)


def _pick_tk(din, cap=2048):
    """Largest multiple of 128 that divides DIN (<= cap); fall back to DIN."""
    if din % 128 != 0:
        return din                      # single K step; full-dim block is legal
    best = 128
    for cand in range(128, min(din, cap) + 1, 128):
        if din % cand == 0:
            best = cand
    return best


def prepare_params(params):
    """One-time offline packing/casting of PyTorch-layout parameters."""
    (w1, b1, w2, b2, w3, b3, wl, bl, wc, bc) = params
    f = w1.shape[1]
    wcat = jnp.concatenate([w1, w2, w3], axis=1).astype(jnp.bfloat16)   # [DIN, 3F]
    bcat = jnp.concatenate([b1, b2, b3]).reshape(1, 3 * f).astype(jnp.float32)
    return (wcat, bcat,
            wl.astype(jnp.bfloat16), bl.reshape(1, f).astype(jnp.float32),
            wc.astype(jnp.bfloat16), bc.reshape(1, -1).astype(jnp.float32))


@jax.jit
def yang_forward(x_nchw, prepped):
    (wcat, bcat, wl, bl, wc, bc) = prepped
    b = x_nchw.shape[0]
    din, f3 = wcat.shape
    f = wl.shape[1]
    num_classes = wc.shape[1]

    x = x_nchw.reshape(b, -1).astype(jnp.bfloat16)       # [B, DIN]
    tk = _pick_tk(din)
    nk = din // tk

    grid_spec = pltpu.PrefetchScalarGridSpec(
        num_scalar_prefetch=0,
        grid=(nk,),
        in_specs=[
            pl.BlockSpec((b, tk), lambda k: (0, k)),             # x tile (K-stream)
            pl.BlockSpec((tk, f3), lambda k: (k, 0)),            # Wcat tile (K-stream)
            pl.BlockSpec((1, f3), lambda k: (0, 0)),             # bcat   (resident)
            pl.BlockSpec((f3, f), lambda k: (0, 0)),             # wl     (resident)
            pl.BlockSpec((1, f), lambda k: (0, 0)),              # bl     (resident)
            pl.BlockSpec((f, num_classes), lambda k: (0, 0)),    # wc     (resident)
            pl.BlockSpec((1, num_classes), lambda k: (0, 0)),    # bc     (resident)
        ],
        out_specs=pl.BlockSpec((b, num_classes), lambda k: (0, 0)),
        scratch_shapes=[pltpu.VMEM((b, f3), jnp.float32)],
    )

    return pl.pallas_call(
        yang_kernel,
        out_shape=jax.ShapeDtypeStruct((b, num_classes), jnp.float32),
        grid_spec=grid_spec,
        compiler_params=pltpu.CompilerParams(
            dimension_semantics=("arbitrary",),     # K axis is a reduction
            vmem_limit_bytes=32 << 20,              # safe on v5e/v6e/v7x (64 MiB)
        ),
    )(x, wcat, bcat, wl, bl, wc, bc)


def init_params(key, din, intra_fea, num_classes):
    ks = jax.random.split(key, 10)
    s_in = 1.0 / jnp.sqrt(jnp.float32(din))
    s_f = 1.0 / jnp.sqrt(jnp.float32(intra_fea))
    s_3f = 1.0 / jnp.sqrt(jnp.float32(3 * intra_fea))
    w1 = jax.random.normal(ks[0], (din, intra_fea), jnp.float32) * s_in
    b1 = jax.random.normal(ks[1], (intra_fea,), jnp.float32) * 0.01
    w2 = jax.random.normal(ks[2], (din, intra_fea), jnp.float32) * s_in
    b2 = jax.random.normal(ks[3], (intra_fea,), jnp.float32) * 0.01
    w3 = jax.random.normal(ks[4], (din, intra_fea), jnp.float32) * s_in
    b3 = jax.random.normal(ks[5], (intra_fea,), jnp.float32) * 0.01
    wl = jax.random.normal(ks[6], (3 * intra_fea, intra_fea), jnp.float32) * s_3f
    bl = jax.random.normal(ks[7], (intra_fea,), jnp.float32) * 0.01
    wc = jax.random.normal(ks[8], (intra_fea, num_classes), jnp.float32) * s_f
    bc = jax.random.normal(ks[9], (num_classes,), jnp.float32) * 0.01
    return (w1, b1, w2, b2, w3, b3, wl, bl, wc, bc)


def reference_forward(x_nchw, params):
    """Pure-JAX reference using the same bf16-weight / f32-accumulate recipe."""
    (w1, b1, w2, b2, w3, b3, wl, bl, wc, bc) = params
    x = x_nchw.reshape(x_nchw.shape[0], -1)

    def dot16(a, w):
        return jnp.dot(a.astype(jnp.bfloat16), w.astype(jnp.bfloat16),
                       preferred_element_type=jnp.float32)

    cl1 = dot16(x, w1) + b1
    cl2 = dot16(x, w2) + b2
    cl3 = dot16(x, w3) + b3
    ct = jnp.concatenate([cl1, cl2, cl3], axis=-1)
    out = dot16(ct, wl) + bl
    out = dot16(out, wc) + bc
    return jax.nn.softmax(out, axis=1)


if __name__ == "__main__":
    # Small, shape-consistent example: batch=2, 3-channel 32x32 image,
    # intra_fea=256, num_classes=2.  DIN = 3072 -> 2 K-tiles of 1536.
    B, C, H, W = 2, 3, 32, 32
    INTRA_FEA, NUM_CLASSES = 256, 2
    DIN = C * H * W

    key = jax.random.PRNGKey(0)
    k_x, k_p = jax.random.split(key)
    x = jax.random.normal(k_x, (B, C, H, W), jnp.float32)
    params = init_params(k_p, DIN, INTRA_FEA, NUM_CLASSES)
    prepped = prepare_params(params)

    out = yang_forward(x, prepped)
    out = jax.block_until_ready(out)

    ref = reference_forward(x, params)
    assert out.shape == (B, NUM_CLASSES)
    assert jnp.allclose(out, ref, atol=1e-4, rtol=1e-4)
    assert jnp.allclose(jnp.sum(out, axis=1), 1.0, atol=1e-5)

    print("KERNEL_OK")
</pallas_src>

<mosaic_0001>
module attributes {stable_mosaic.version = 11 : i64} {
  func.func @yang_kernel(%arg0: i32, %arg1: memref<2x1536xbf16, #tpu.memory_space<vmem>>, %arg2: memref<1536x768xbf16, #tpu.memory_space<vmem>>, %arg3: memref<1x768xf32, #tpu.memory_space<vmem>>, %arg4: memref<768x256xbf16, #tpu.memory_space<vmem>>, %arg5: memref<1x256xf32, #tpu.memory_space<vmem>>, %arg6: memref<256x2xbf16, #tpu.memory_space<vmem>>, %arg7: memref<1x2xf32, #tpu.memory_space<vmem>>, %arg8: memref<2x2xf32, #tpu.memory_space<vmem>>, %arg9: memref<2x768xf32, #tpu.memory_space<vmem>>) attributes {dimension_semantics = [#tpu.dimension_semantics<arbitrary>], iteration_bounds = array<i64: 2>, scalar_prefetch = 0 : i64, scratch_operands = 1 : i64, tpu.core_type = #tpu.core_type<tc>, window_params = [{transform_indices = @transform_0, window_bounds = array<i64: 2, 1536>}, {transform_indices = @transform_1, window_bounds = array<i64: 1536, 768>}, {pipeline_mode = #tpu.pipeline_mode<synchronous>, transform_indices = @transform_2, window_bounds = array<i64: 1, 768>}, {pipeline_mode = #tpu.pipeline_mode<synchronous>, transform_indices = @transform_3, window_bounds = array<i64: 768, 256>}, {pipeline_mode = #tpu.pipeline_mode<synchronous>, transform_indices = @transform_4, window_bounds = array<i64: 1, 256>}, {pipeline_mode = #tpu.pipeline_mode<synchronous>, transform_indices = @transform_5, window_bounds = array<i64: 256, 2>}, {pipeline_mode = #tpu.pipeline_mode<synchronous>, transform_indices = @transform_6, window_bounds = array<i64: 1, 2>}, {pipeline_mode = #tpu.pipeline_mode<synchronous>, transform_indices = @transform_7, window_bounds = array<i64: 2, 2>}]} {
    %c0_i32 = arith.constant 0 : i32
    %0 = arith.cmpi eq, %arg0, %c0_i32 : i32
    %1 = arith.extui %0 : i1 to i32
    %c0_i32_0 = arith.constant 0 : i32
    %2 = arith.cmpi ne, %1, %c0_i32_0 : i32
    scf.if %2 {
      %cst_9 = arith.constant 0.000000e+00 : f32
      %12 = vector.broadcast %cst_9 : f32 to vector<2x768xf32>
      %c0_10 = arith.constant 0 : index
      %c0_11 = arith.constant 0 : index
      %13 = vector.load %arg9[%c0_10, %c0_11] : memref<2x768xf32, #tpu.memory_space<vmem>>, vector<2x768xf32>
      tpu.vector_store %arg9[%c0_10, %c0_11], %12 {strides = array<i32>} : memref<2x768xf32, #tpu.memory_space<vmem>>, vector<2x768xf32>,
    } else {
    }
    %c0 = arith.constant 0 : index
    %c0_1 = arith.constant 0 : index
    %3 = vector.load %arg9[%c0, %c0_1] : memref<2x768xf32, #tpu.memory_space<vmem>>, vector<2x768xf32>
    %c0_2 = arith.constant 0 : index
    %c0_3 = arith.constant 0 : index
    %4 = vector.load %arg1[%c0_2, %c0_3] : memref<2x1536xbf16, #tpu.memory_space<vmem>>, vector<2x1536xbf16>
    %c0_4 = arith.constant 0 : index
    %c0_5 = arith.constant 0 : index
    %5 = vector.load %arg2[%c0_4, %c0_5] : memref<1536x768xbf16, #tpu.memory_space<vmem>>, vector<1536x768xbf16>
    %cst = arith.constant dense<0.000000e+00> : vector<2x768xf32>
    %6 = tpu.matmul %4, %5, %cst {dimension_numbers = #tpu.dot_dimension_numbers<[1], [0], [0], [1], [0, 0, 1, 1], [], []>} : vector<2x1536xbf16>, vector<1536x768xbf16>, vector<2x768xf32> -> vector<2x768xf32>
    %7 = arith.addf %3, %6 : vector<2x768xf32>
    %c0_6 = arith.constant 0 : index
    %c0_7 = arith.constant 0 : index
    %8 = vector.load %arg9[%c0_6, %c0_7] : memref<2x768xf32, #tpu.memory_space<vmem>>, vector<2x768xf32>
    tpu.vector_store %arg9[%c0_6, %c0_7], %7 {strides = array<i32>} : memref<2x768xf32, #tpu.memory_space<vmem>>, vector<2x768xf32>,
    %c1_i32 = arith.constant 1 : i32
    %9 = arith.cmpi eq, %arg0, %c1_i32 : i32
    %10 = arith.extui %9 : i1 to i32
    %c0_i32_8 = arith.constant 0 : i32
    %11 = arith.cmpi ne, %10, %c0_i32_8 : i32
    scf.if %11 {
      %c0_9 = arith.constant 0 : index
      %c0_10 = arith.constant 0 : index
      %12 = vector.load %arg9[%c0_9, %c0_10] : memref<2x768xf32, #tpu.memory_space<vmem>>, vector<2x768xf32>
      %c0_11 = arith.constant 0 : index
      %c0_12 = arith.constant 0 : index
      %13 = vector.load %arg3[%c0_11, %c0_12] : memref<1x768xf32, #tpu.memory_space<vmem>>, vector<1x768xf32>
      %14 = vector.broadcast %13 : vector<1x768xf32> to vector<2x768xf32>
      %15 = arith.addf %12, %14 : vector<2x768xf32>
      %16 = arith.truncf %15 : vector<2x768xf32> to vector<2x768xbf16>
      %c0_13 = arith.constant 0 : index
      %c0_14 = arith.constant 0 : index
      %17 = vector.load %arg4[%c0_13, %c0_14] : memref<768x256xbf16, #tpu.memory_space<vmem>>, vector<768x256xbf16>
      %cst_15 = arith.constant dense<0.000000e+00> : vector<2x256xf32>
      %18 = tpu.matmul %16, %17, %cst_15 {dimension_numbers = #tpu.dot_dimension_numbers<[1], [0], [0], [1], [0, 0, 1, 1], [], []>} : vector<2x768xbf16>, vector<768x256xbf16>, vector<2x256xf32> -> vector<2x256xf32>
      %c0_16 = arith.constant 0 : index
      %c0_17 = arith.constant 0 : index
      %19 = vector.load %arg5[%c0_16, %c0_17] : memref<1x256xf32, #tpu.memory_space<vmem>>, vector<1x256xf32>
      %20 = vector.broadcast %19 : vector<1x256xf32> to vector<2x256xf32>
      %21 = arith.addf %18, %20 : vector<2x256xf32>
      %22 = arith.truncf %21 : vector<2x256xf32> to vector<2x256xbf16>
      %c0_18 = arith.constant 0 : index
      %c0_19 = arith.constant 0 : index
      %23 = vector.load %arg6[%c0_18, %c0_19] : memref<256x2xbf16, #tpu.memory_space<vmem>>, vector<256x2xbf16>
      %cst_20 = arith.constant dense<0.000000e+00> : vector<2x2xf32>
      %24 = tpu.matmul %22, %23, %cst_20 {dimension_numbers = #tpu.dot_dimension_numbers<[1], [0], [0], [1], [0, 0, 1, 1], [], []>} : vector<2x256xbf16>, vector<256x2xbf16>, vector<2x2xf32> -> vector<2x2xf32>
      %c0_21 = arith.constant 0 : index
      %c0_22 = arith.constant 0 : index
      %25 = vector.load %arg7[%c0_21, %c0_22] : memref<1x2xf32, #tpu.memory_space<vmem>>, vector<1x2xf32>
      %26 = vector.broadcast %25 : vector<1x2xf32> to vector<2x2xf32>
      %27 = arith.addf %24, %26 : vector<2x2xf32>
      %cst_23 = arith.constant dense<0xFF800000> : vector<2xf32>
      %28 = vector.multi_reduction <maximumf>, %27, %cst_23 [1] : vector<2x2xf32> to vector<2xf32>
      %29 = vector.shape_cast %28 : vector<2xf32> to vector<2x1xf32>
      %30 = vector.broadcast %29 : vector<2x1xf32> to vector<2x2xf32>
      %31 = arith.subf %27, %30 : vector<2x2xf32>
      %32 = math.exp %31 : vector<2x2xf32>
      %cst_24 = arith.constant dense<0.000000e+00> : vector<2xf32>
      %33 = vector.multi_reduction <add>, %32, %cst_24 [1] : vector<2x2xf32> to vector<2xf32>
      %34 = vector.shape_cast %33 : vector<2xf32> to vector<2x1xf32>
      %35 = tpu.reciprocal %34 : vector<2x1xf32> -> vector<2x1xf32>
      %36 = vector.broadcast %35 : vector<2x1xf32> to vector<2x2xf32>
      %37 = arith.mulf %32, %36 : vector<2x2xf32>
      %c0_25 = arith.constant 0 : index
      %c0_26 = arith.constant 0 : index
      %38 = vector.load %arg8[%c0_25, %c0_26] : memref<2x2xf32, #tpu.memory_space<vmem>>, vector<2x2xf32>
      tpu.vector_store %arg8[%c0_25, %c0_26], %37 {strides = array<i32>} : memref<2x2xf32, #tpu.memory_space<vmem>>, vector<2x2xf32>,
    } else {
    }
    return
  }
  func.func @transform_0(%arg0: i32) -> (i32, i32) {
    %c0_i32 = arith.constant 0 : i32
    %c0_i32_0 = arith.constant 0 : i32
    return %c0_i32, %arg0 : i32, i32
  }
  func.func @transform_1(%arg0: i32) -> (i32, i32) {
    %c0_i32 = arith.constant 0 : i32
    %c0_i32_0 = arith.constant 0 : i32
    return %arg0, %c0_i32 : i32, i32
  }
  func.func @transform_2(%arg0: i32) -> (i32, i32) {
    %c0_i32 = arith.constant 0 : i32
    %c0_i32_0 = arith.constant 0 : i32
    %c0_i32_1 = arith.constant 0 : i32
    return %c0_i32, %c0_i32_0 : i32, i32
  }
  func.func @transform_3(%arg0: i32) -> (i32, i32) {
    %c0_i32 = arith.constant 0 : i32
    %c0_i32_0 = arith.constant 0 : i32
    %c0_i32_1 = arith.constant 0 : i32
    return %c0_i32, %c0_i32_0 : i32, i32
  }
  func.func @transform_4(%arg0: i32) -> (i32, i32) {
    %c0_i32 = arith.constant 0 : i32
    %c0_i32_0 = arith.constant 0 : i32
    %c0_i32_1 = arith.constant 0 : i32
    return %c0_i32, %c0_i32_0 : i32, i32
  }
  func.func @transform_5(%arg0: i32) -> (i32, i32) {
    %c0_i32 = arith.constant 0 : i32
    %c0_i32_0 = arith.constant 0 : i32
    %c0_i32_1 = arith.constant 0 : i32
    return %c0_i32, %c0_i32_0 : i32, i32
  }
  func.func @transform_6(%arg0: i32) -> (i32, i32) {
    %c0_i32 = arith.constant 0 : i32
    %c0_i32_0 = arith.constant 0 : i32
    %c0_i32_1 = arith.constant 0 : i32
    return %c0_i32, %c0_i32_0 : i32, i32
  }
  func.func @transform_7(%arg0: i32) -> (i32, i32) {
    %c0_i32 = arith.constant 0 : i32
    %c0_i32_0 = arith.constant 0 : i32
    %c0_i32_1 = arith.constant 0 : i32
    return %c0_i32, %c0_i32_0 : i32, i32
  }
}

</mosaic_0001>

<bundles_post_ra>
// kernel: yang_forward.1
= control target key start
LH: loop header
LB: loop body
LE: loop exit
PB: predicated region body
PF: predicated region fallthrough
CT: control target
= control target key end

     0   :  { %12 = vsyncpa [#allocation4], 0  ;;  %s9014_s0 = inlined_call_operand.vmem [shape: bf16[2,3072], index: 0, kind: input, shape index: {}]   ;;  %s9015_s1 = inlined_call_operand.hbm [shape: bf16[3072,768], index: 1, kind: input, shape index: {}]   ;;  %s9016_s2 = inlined_call_operand.hbm [shape: f32[1,768], index: 2, kind: input, shape index: {}]   ;;  %s9017_s3 = inlined_call_operand.hbm [shape: bf16[768,256], index: 3, kind: input, shape index: {}]   ;;  %s9018_s4 = inlined_call_operand.hbm [shape: f32[1,256], index: 4, kind: input, shape index: {}]   ;;  %s9019_s5 = inlined_call_operand.vmem [shape: bf16[256,2], index: 5, kind: input, shape index: {}]   ;;  %s9020_s6 = inlined_call_operand.hbm [shape: f32[1,2], index: 6, kind: input, shape index: {}]   ;;  %s9021_s7 = inlined_call_operand.hbm [shape: f32[2,2], index: 7, kind: output, shape index: {}]  }
   0x1   :  { %14 = vsyncpa [#allocation4 + $0x1], 0 }
   0x2   :  { %15 = vsyncpa [#allocation7], 0 }
   0x3   :  { %16 = vsyncpa [#allocation10], 0 }
   0x4   :  { %17 = vsyncpa [#allocation5], 0  ;;  %s7985_s24 = smov 0   ;;  %s7987_s25 = smov 0  }
   0x5   :  { %s7989_s26 = smov 0   ;;  %s7991_s27 = smov 0  }
   0x6 LB: > { %s8004_s28 = sadd.s32 4294967295, %s7930_s27   ;;  %p69_p0 = scmp.ne.s32.totalorder %s7922_s25, %s7918_s24  ;;  %s7930_s27 = sphi %s7991_s27, %s9040_s27   ;;  %s7926_s26 = sphi %s7989_s26, %s9039_s26   ;;  %s7922_s25 = sphi %s7987_s25, %s9038_s25   ;;  %s7918_s24 = sphi %s7985_s24, %s9037_s24  }
   0x7   : > { %p9022_p1 = scmp.eq.s32.totalorder %s8004_s28, 0  ;;  %p5793_p2 = scmp.ge.s32.totalorder %s7930_s27, 1 }
   0x8   : > { %p206_p3 = scmp.lt.s32.totalorder %s7930_s27, 3  ;;  %s7932_s8 = smov [#allocation6]  }
   0x9   : > { %p8013_p5 = por %p9022_p1, %p69_p0  ;;  %s219_s9 = sshll.u32 %s7932_s8, 4  ;;  %s220_s9 = int_to_ptr.vmem [resolvable:$true] %s219_s9 }
   0xa   : > { %p8017_p6 = pnand %p5793_p2, %p206_p3  ;;  %s7933_s11 = smov [#allocation9]  }
   0xb   : > { %s9025_s29 = scalar_select %p8013_p5, 1, 0 }
   0xc   : > { %s9026_s30 = scalar_select %p8017_p6, 1, 0 }
   0xd   : > { %p6614_p7 = pneg %p8017_p6  ;;  %s243_s12 = sshll.u32 %s7933_s11, 4  ;;  %s8029_s12 = int_to_ptr.vmem [resolvable:$true] %s243_s12 }
   0xe   : > { %s7934_s13 = smov [#allocation8]   ;;  %s7716_s17 = scalar_lea.hbm %s9016_s2, 96 }
   0xf   : > { %p8025_p8 = pnand %p6614_p7, %p9022_p1  ;;  %s229_s14 = sshll.u32 %s7934_s13, 4  ;;  %s8031_s14 = int_to_ptr.vmem [resolvable:$true] %s229_s14 }
  0x10   : > { %p7717_p9 = scmp.ne.s32.totalorder %s9016_s2, %s7716_s17  ;;  %p7723_p13 = scmp.lt.u32.totalorder %s7716_s17, %s9016_s2 }
  0x11   : > { %p8041_p10 = pneg %p8025_p8 }
  0x13   : > { %p7719_p11 = pnand %p8041_p10, %p7717_p9 }
  0x15   : > { %p7720_p12 = pneg %p7719_p11 }
  0x17   : > { %p7725_p0 = pnand %p7723_p13, %p7720_p12 }
  0x19   : > { %7728 = shalt.err (!%p7725_p0)
}
  0x1a   : > { %s7729_s23 = scalar_lea.vmem %s220_s9, 96  ;;  %p7737_p4 = scmp.lt.s32.totalorder %s220_s9, %s220_s9 }
  0x1b   : > { %p7730_p2 = scmp.ne.s32.totalorder %s220_s9, %s7729_s23  ;;  %p7738_p1 = scmp.lt.s32.totalorder %s7729_s23, %s7729_s23 }
  0x1d   : > { %p7732_p3 = pnand %p7730_p2, %p8041_p10  ;;  %p7739_p5 = por %p7738_p1, %p7737_p4 }
  0x1f   : > { %p7733_p7 = pneg %p7732_p3 }
  0x21   : > { %p7740_p6 = pnand %p7739_p5, %p7733_p7 }
  0x23   : > { %7743 = shalt.err (!%p7740_p6)
}
  0x24   : > { %6617 = dma.hbm_to_vmem [thread:$0]  (!%p8025_p8), %s9016_s2, 96, %s220_s9, [#allocation7]  }
  0x25   : > { %s7744_s15 = scalar_lea.hbm %s9018_s4, 32 }
  0x26   : > { %p7745_p9 = scmp.ne.s32.totalorder %s9018_s4, %s7744_s15  ;;  %p7751_p4 = scmp.lt.u32.totalorder %s7744_s15, %s9018_s4 }
  0x28   : > { %p7747_p11 = pnand %p7745_p9, %p8041_p10 }
  0x2a   : > { %p7748_p1 = pneg %p7747_p11 }
  0x2c   : > { %p7753_p5 = pnand %p7751_p4, %p7748_p1 }
  0x2e   : > { %7756 = shalt.err (!%p7753_p5)
}
  0x2f   : > { %s7757_s9 = scalar_lea.vmem %s8029_s12, 32  ;;  %p7765_p0 = scmp.lt.s32.totalorder %s8029_s12, %s8029_s12 }
  0x30   : > { %p7758_p6 = scmp.ne.s32.totalorder %s8029_s12, %s7757_s9  ;;  %p7766_p2 = scmp.lt.s32.totalorder %s7757_s9, %s7757_s9 }
  0x32   : > { %p7760_p12 = pnand %p7758_p6, %p8041_p10  ;;  %p7767_p3 = por %p7766_p2, %p7765_p0 }
  0x34   : > { %p7761_p13 = pneg %p7760_p12 }
  0x36   : > { %p7768_p7 = pnand %p7767_p3, %p7761_p13 }
  0x38   : > { %7771 = shalt.err (!%p7768_p7)
}
  0x39   : > { %6623 = dma.hbm_to_vmem [thread:$0]  (!%p8025_p8), %s9018_s4, 32, %s8029_s12, [#allocation10]  }
  0x3a   : > { %s7772_s8 = scalar_lea.hbm %s9017_s3, 12288 }
  0x3b   : > { %p7773_p9 = scmp.ne.s32.totalorder %s9017_s3, %s7772_s8  ;;  %p7779_p4 = scmp.lt.u32.totalorder %s7772_s8, %s9017_s3 }
  0x3d   : > { %p7775_p11 = pnand %p7773_p9, %p8041_p10 }
  0x3f   : > { %p7776_p1 = pneg %p7775_p11 }
  0x41   : > { %p7781_p5 = pnand %p7779_p4, %p7776_p1 }
  0x43   : > { %7784 = shalt.err (!%p7781_p5)
}
  0x44   : > { %s7785_s12 = scalar_lea.vmem %s8031_s14, 12288  ;;  %p7793_p0 = scmp.lt.s32.totalorder %s8031_s14, %s8031_s14 }
  0x45   : > { %p7786_p6 = scmp.ne.s32.totalorder %s8031_s14, %s7785_s12  ;;  %p7794_p2 = scmp.lt.s32.totalorder %s7785_s12, %s7785_s12 }
  0x47   : > { %p7788_p12 = pnand %p7786_p6, %p8041_p10  ;;  %p7795_p3 = por %p7794_p2, %p7793_p0 }
  0x49   : > { %p7789_p13 = pneg %p7788_p12 }
  0x4b   : > { %p7796_p7 = pnand %p7795_p3, %p7789_p13 }
  0x4d   : > { %7799 = shalt.err (!%p7796_p7)
}
  0x4e   : > { %s7935_s17 = smov 128   ;;  %s7936_s18 = smov 8  }
  0x4f   : > { %6620 = dma.hbm_to_vmem [thread:$0]  (!%p8025_p8), %s9017_s3, 12288, %s8031_s14, [#allocation7], %s7935_s17, %s7935_s17, %s7936_s18  }
  0x50   : > { %s7937_s21 = smov [#allocation11]   ;;  %s8104_s23 = sadd.s32 1, %s7930_s27  }
  0x51   : > { %s257_s22 = sshll.u32 %s7937_s21, 4  ;;  %s7800_s11 = scalar_lea.hbm %s9020_s6, 16  ;;  %s258_s22 = int_to_ptr.vmem [resolvable:$true] %s257_s22 }
  0x52   : > { %p7801_p9 = scmp.ne.s32.totalorder %s9020_s6, %s7800_s11  ;;  %p7807_p4 = scmp.lt.u32.totalorder %s7800_s11, %s9020_s6 }
  0x54   : > { %p7803_p11 = pnand %p7801_p9, %p8041_p10 }
  0x56   : > { %p7804_p1 = pneg %p7803_p11 }
  0x58   : > { %p7809_p5 = pnand %p7807_p4, %p7804_p1 }
  0x5a   : > { %7812 = shalt.err (!%p7809_p5)
}
  0x5b   : > { %s7813_s14 = scalar_lea.vmem %s258_s22, 16  ;;  %s7820_s17 = scalar_lea.vmem %s258_s22, 32 }
  0x5c   : > { %p7814_p6 = scmp.ne.s32.totalorder %s258_s22, %s7813_s14  ;;  %p7821_p0 = scmp.lt.s32.totalorder %s258_s22, %s258_s22 }
  0x5d   : > { %p7822_p2 = scmp.lt.s32.totalorder %s7820_s17, %s7813_s14 }
  0x5e   : > { %p7816_p12 = pnand %p7814_p6, %p8041_p10 }
  0x5f   : > { %p7823_p3 = por %p7822_p2, %p7821_p0 }
  0x60   : > { %p7817_p13 = pneg %p7816_p12 }
  0x62   : > { %p7824_p7 = pnand %p7823_p3, %p7817_p13 }
  0x64   : > { %7827 = shalt.err (!%p7824_p7)
}
  0x65   : > { %6626 = dma.hbm_to_vmem [thread:$0]  (!%p8025_p8), %s9020_s6, 16, %s258_s22, [#allocation10]  }
  0x66   : > { %s53_s20 = ssub.s32 %s7930_s27, %s8104_s23  ;;  %s56_s9 = sadd.s32 1, %s7926_s26 }
  0x67   : > { %p54_p10 = scmp.eq.s32.totalorder %s53_s20, 0  ;;  %p63_p9 = scmp.ne.s32.totalorder %s7926_s26, %s7922_s25 }
  0x68   : > { %p64_p11 = scmp.eq.s32.totalorder %s7930_s27, 0  ;;  %p6635_p1 = scmp.lt.s32.totalorder %s7930_s27, 2 }
  0x69   : > { %s8132_s10 = scalar_select %p54_p10, %s7926_s26, %s56_s9  }
  0x6a   : > { %p65_p4 = por %p64_p11, %p63_p9  ;;  %s276_s21 = sand.u32 1, %s7926_s26  }
  0x6b   : > { %s6589_s24 = smul.u32 4608, %s276_s21  ;;  %s7833_s19 = scalar_lea.hbm %s9015_s1, 147456 }
  0x6c   : > { %s6636_s8 = smul.u32 73728, %s7930_s27  ;;  %p8136_p5 = pnand %p6635_p1, %p65_p4 }
  0x6d   : > { %s280_s16 = scalar_lea.vmem [#allocation3], %s6589_s24  ;;  %s8147_s27 = scalar_lea.sflag [#allocation4], %s276_s21 }
  0x6e   : > { %s8143_s22 = scalar_lea.hbm %s9015_s1, %s6636_s8  ;;  %s288_s12 = sshll.u32 %s280_s16, 4  ;;  %s8145_s12 = int_to_ptr.vmem [resolvable:$true] %s288_s12 }
  0x6f   : > { %s7828_s14 = scalar_lea.hbm %s8143_s22, 73728  ;;  %p7830_p6 = pneg %p8136_p5 }
  0x70   : > { %p7829_p8 = scmp.ne.s32.totalorder %s8143_s22, %s7828_s14  ;;  %p7834_p0 = scmp.lt.u32.totalorder %s8143_s22, %s9015_s1 }
  0x71   : > { %p7835_p2 = scmp.lt.u32.totalorder %s7833_s19, %s7828_s14  ;;  %p7837_p7 = scmp.lt.u32.totalorder %s7828_s14, %s8143_s22 }
  0x72   : > { %p7831_p12 = pnand %p7830_p6, %p7829_p8 }
  0x73   : > { %p7836_p3 = por %p7835_p2, %p7834_p0 }
  0x74   : > { %p7832_p13 = pneg %p7831_p12 }
  0x75   : > { %p7838_p10 = por %p7837_p7, %p7836_p3 }
  0x77   : > { %p7839_p9 = pnand %p7838_p10, %p7832_p13 }
  0x79   : > { %7842 = shalt.err (!%p7839_p9)
}
  0x7a   : > { %s7843_s21 = scalar_lea.vmem %s8145_s12, 73728  ;;  %s7938_s24 = smov [#allocation3]  }
  0x7b   : > { %p7844_p11 = scmp.ne.s32.totalorder %s8145_s12, %s7843_s21  ;;  %s7848_s8 = sshll.u32 %s7938_s24, 4  ;;  %s7849_s8 = int_to_ptr.vmem [resolvable:$false] %s7848_s8 }
  0x7c   : > { %s7850_s13 = scalar_lea.vmem %s7849_s8, 147456  ;;  %p7851_p8 = scmp.lt.s32.totalorder %s8145_s12, %s7849_s8 }
  0x7d   : > { %p7846_p1 = pnand %p7844_p11, %p7830_p6  ;;  %p7852_p12 = scmp.lt.s32.totalorder %s7850_s13, %s7843_s21 }
  0x7f   : > { %p7847_p4 = pneg %p7846_p1  ;;  %p7853_p0 = por %p7852_p12, %p7851_p8 }
  0x81   : > { %p7854_p2 = pnand %p7853_p0, %p7847_p4 }
  0x83   : > { %7857 = shalt.err (!%p7854_p2)
}
  0x84   : > { %s7939_s15 = smov 384   ;;  %s7940_s16 = smov 24  }
  0x85   : > { %6630 = dma.hbm_to_vmem [thread:$0]  (!%p8136_p5), %s8143_s22, 73728, %s8145_s12, %s8147_s27, %s7939_s15, %s7939_s15, %s7940_s16  }
  0x86   : > { %p9030_p6 = scmp.ne.s32.totalorder %s9026_s30, 0 }
  0x87   : > { %s302_s14 = sand.u32 (!%p9030_p6), 1, %s7922_s25   ;;  %p9031_p13 = scmp.ne.s32.totalorder (!%p9030_p6), %s9025_s29, 0 }
  0x88   : > { %300 = sbr.rel (%p9030_p6) target bundleno = 1817 (0x719), region = 48  ;;  %s303_s18 = scalar_lea.sflag (!%p9030_p6), [#allocation4], %s302_s14 }
  0x89   : > { %s6591_s17 = smul.u32 (!%p9030_p6), 4608, %s302_s14 }
  0x8b   : > { %s8178_s19 = scalar_lea.vmem (!%p9030_p6), [#allocation3], %s6591_s17 }
  0x8f   : > { %7901 = dma.done.wait (%p9031_p13), %s303_s18, 73728  }
  0x90   : > { %7903 = vsyncadd (%p9031_p13), %s303_s18, 4294893568  ;;  %p9032_p3 = scmp.eq.s32.totalorder %s8004_s28, 0 }
  0x92   : > { %7905 = dma.done.wait (%p9032_p3), [#allocation7], 12384   ;;  %p9033_p5 = pmov %p9032_p3 }
  0x93   : > { %p9034_p7 = pmov %p9032_p3 }
  0x94   : > { %7907 = vsyncadd (%p9033_p5), [#allocation7], 4294954912 }
  0x95   : > { %7909 = dma.done.wait (%p9034_p7), [#allocation10], 48   ;;  %p9035_p10 = pmov %p9032_p3 }
  0x96   : > { %s352_s30 = smul.u32 12, %s8004_s28  ;;  %p9036_p11 = scmp.ne.s32.totalorder %s8004_s28, 0 }
  0x97   : > { %7911 = vsyncadd (%p9035_p10), [#allocation10], 4294967248  ;;  %v7941_v0 = vmov (!%p9036_p11), 0.0  }
  0x98   : > { %p353_p9 = scmp.lt.s32.totalorder %s352_s30, 23  ;;  %362 = sbr.rel (%p9036_p11) target bundleno = 159 (0x9f), region = 72  ;;  %363 = vst [vmem:[#allocation2] sm:$0xff] (!%p9036_p11), %v7941_v0  ;;  %364 = vst [vmem:[#allocation2 + $0x8] sm:$0xf] (!%p9036_p11), %v7941_v0 }
  0x9a   : > { %s9042_s30 = smov (!%p353_p9, %s352_s30), 23 }
  0x9b   : > { %s8196_s29 = scalar_lea.vmem %s9014_s0, %s9042_s30 }
  0x9f PF: > { %v6687_v1 = vld [vmem:[%s8178_s19 + $0x4] ss:$24 sps:$4 sm:$0xff]   ;;  %v6691_v3 = vld [vmem:[%s8178_s19] ss:$24 sps:$4 sm:$0xff]   ;;  %v6693_v5 = vld [vmem:[%s8178_s19 + $0x34] ss:$24 sps:$4 sm:$0xff]   ;;  %v951_v41 = vlaneseq }
  0xa0   : > { %v6689_v2 = vld [vmem:[%s8178_s19 + $0x904] ss:$24 sps:$4 sm:$0xff]   ;;  %3912 = vmatprep.subr.bf16.mxu1 %v6687_v1  ;;  %v6692_v4 = vld [vmem:[%s8178_s19 + $0x900] ss:$24 sps:$4 sm:$0xff]   ;;  %v6695_v6 = vld [vmem:[%s8178_s19 + $0x934] ss:$24 sps:$4 sm:$0xff]  }
  0xa1   : > { %4035 = vmatprep.subr.bf16.mxu0 %v6689_v2  ;;  %3913 = vmatpush1.bf16.msra.mxu1 %v6691_v3  ;;  %v6697_v7 = vld [vmem:[%s8178_s19 + $0x30] ss:$24 sps:$4 sm:$0xff]   ;;  %v6699_v9 = vld [vmem:[%s8178_s19 + $0x64] ss:$24 sps:$4 sm:$0xff]   ;;  %v6703_v11 = vld [vmem:[%s8178_s19 + $0x60] ss:$24 sps:$4 sm:$0xff]  }
  0xa2   : > { %4036 = vmatpush1.bf16.msra.mxu0 %v6692_v4  ;;  %3914 = vmatprep.subr.bf16.mxu1 %v6693_v5  ;;  %v6698_v8 = vld [vmem:[%s8178_s19 + $0x930] ss:$24 sps:$4 sm:$0xff]   ;;  %v6701_v10 = vld [vmem:[%s8178_s19 + $0x964] ss:$24 sps:$4 sm:$0xff]   ;;  %v6704_v12 = vld [vmem:[%s8178_s19 + $0x960] ss:$24 sps:$4 sm:$0xff]  }
  0xa3   : > { %4037 = vmatprep.subr.bf16.mxu0 %v6695_v6  ;;  %v6705_v13 = vld [vmem:[%s8178_s19 + $0x94] ss:$24 sps:$4 sm:$0xff]   ;;  %v6709_v15 = vld [vmem:[%s8178_s19 + $0x90] ss:$24 sps:$4 sm:$0xff]   ;;  %v6711_v17 = vld [vmem:[%s8178_s19 + $0xc4] ss:$24 sps:$4 sm:$0xff]  }
  0xa4   : > { %v6707_v14 = vld [vmem:[%s8178_s19 + $0x994] ss:$24 sps:$4 sm:$0xff]   ;;  %v6710_v16 = vld [vmem:[%s8178_s19 + $0x990] ss:$24 sps:$4 sm:$0xff]   ;;  %v6713_v18 = vld [vmem:[%s8178_s19 + $0x9c4] ss:$24 sps:$4 sm:$0xff]  }
  0xa5   : > { %3915 = vmatpush1.bf16.msra.mxu1 %v6697_v7  ;;  %v6715_v19 = vld [vmem:[%s8178_s19 + $0xc0] ss:$24 sps:$4 sm:$0xff]   ;;  %v6717_v21 = vld [vmem:[%s8178_s19 + $0xf4] ss:$24 sps:$4 sm:$0xff]   ;;  %v6721_v23 = vld [vmem:[%s8178_s19 + $0xf0] ss:$24 sps:$4 sm:$0xff]  }
  0xa6   : > { %4038 = vmatpush1.bf16.msra.mxu0 %v6698_v8  ;;  %3916 = vmatprep.subr.bf16.mxu1 %v6699_v9  ;;  %v6716_v20 = vld [vmem:[%s8178_s19 + $0x9c0] ss:$24 sps:$4 sm:$0xff]   ;;  %v6719_v22 = vld [vmem:[%s8178_s19 + $0x9f4] ss:$24 sps:$4 sm:$0xff]   ;;  %v6722_v24 = vld [vmem:[%s8178_s19 + $0x9f0] ss:$24 sps:$4 sm:$0xff]  }
  0xa7   : > { %4039 = vmatprep.subr.bf16.mxu0 %v6701_v10  ;;  %v6723_v25 = vld [vmem:[%s8178_s19 + $0x124] ss:$24 sps:$4 sm:$0xff]   ;;  %v6727_v27 = vld [vmem:[%s8178_s19 + $0x120] ss:$24 sps:$4 sm:$0xff]   ;;  %v6729_v29 = vld [vmem:[%s8178_s19 + $0x154] ss:$24 sps:$4 sm:$0xff]  }
  0xa8   : > { %v6725_v26 = vld [vmem:[%s8178_s19 + $0xa24] ss:$24 sps:$4 sm:$0xff]   ;;  %v6728_v28 = vld [vmem:[%s8178_s19 + $0xa20] ss:$24 sps:$4 sm:$0xff]   ;;  %v6731_v30 = vld [vmem:[%s8178_s19 + $0xa54] ss:$24 sps:$4 sm:$0xff]  }
  0xa9   : > { %3917 = vmatpush1.bf16.msra.mxu1 %v6703_v11  ;;  %v6733_v31 = vld [vmem:[%s8178_s19 + $0x150] ss:$24 sps:$4 sm:$0xff]   ;;  %v6735_v33 = vld [vmem:[%s8178_s19 + $0x184] ss:$24 sps:$4 sm:$0xff]   ;;  %v6739_v35 = vld [vmem:[%s8178_s19 + $0x180] ss:$24 sps:$4 sm:$0xff]  }
  0xaa   : > { %4040 = vmatpush1.bf16.msra.mxu0 %v6704_v12  ;;  %3918 = vmatprep.subr.bf16.mxu1 %v6705_v13  ;;  %v6734_v32 = vld [vmem:[%s8178_s19 + $0xa50] ss:$24 sps:$4 sm:$0xff]   ;;  %v6737_v34 = vld [vmem:[%s8178_s19 + $0xa84] ss:$24 sps:$4 sm:$0xff]   ;;  %v6740_v36 = vld [vmem:[%s8178_s19 + $0xa80] ss:$24 sps:$4 sm:$0xff]  }
  0xab   : > { %4041 = vmatprep.subr.bf16.mxu0 %v6707_v14  ;;  %v6741_v37 = vld [vmem:[%s8178_s19 + $0x1b4] ss:$24 sps:$4 sm:$0xff]   ;;  %v7942_v39 = vmov 1966171168   ;;  %v6745_v42 = vld [vmem:[%s8178_s19 + $0x1b0] ss:$24 sps:$4 sm:$0xff]  }
  0xac   : > { %v6743_v38 = vld [vmem:[%s8178_s19 + $0xab4] ss:$24 sps:$4 sm:$0xff]   ;;  %v949_v40 = vunpack.c.l.s4 %v7942_v39  ;;  %v6746_v43 = vld [vmem:[%s8178_s19 + $0xab0] ss:$24 sps:$4 sm:$0xff]   ;;  %v6747_v44 = vld [vmem:[%s8178_s19 + $0x1e4] ss:$24 sps:$4 sm:$0xff]  }
  0xad   : > { %3919 = vmatpush1.bf16.msra.mxu1 %v6709_v15  ;;  %v6749_v45 = vld [vmem:[%s8178_s19 + $0xae4] ss:$24 sps:$4 sm:$0xff]   ;;  %v8242_v47 = vshrl.u32 %v951_v41, 7  ;;  %v6751_v48 = vld [vmem:[%s8178_s19 + $0x1e0] ss:$24 sps:$4 sm:$0xff]   ;;  %p6383_p1 = scmp.ne.s32.totalorder %s8004_s28, 1 }
  0xae   : > { %4042 = vmatpush1.bf16.msra.mxu0 %v6710_v16  ;;  %3920 = vmatprep.subr.bf16.mxu1 %v6711_v17  ;;  %v950_v46 = vunpack.c.0.s8 %v949_v40  ;;  %v6752_v49 = vld [vmem:[%s8178_s19 + $0xae0] ss:$24 sps:$4 sm:$0xff]   ;;  %v6753_v50 = vld [vmem:[%s8178_s19 + $0x214] ss:$24 sps:$4 sm:$0xff]   ;;  %v6757_v54 = vld [vmem:[%s8178_s19 + $0x210] ss:$24 sps:$4 sm:$0xff]  }
  0xaf   : > { %4043 = vmatprep.subr.bf16.mxu0 %v6713_v18  ;;  %v6755_v51 = vld [vmem:[%s8178_s19 + $0xb14] ss:$24 sps:$4 sm:$0xff]   ;;  %v6758_v57 = vld [vmem:[%s8178_s19 + $0xb10] ss:$24 sps:$4 sm:$0xff]   ;;  %v6759_v58 = vld [vmem:[%s8178_s19 + $0x244] ss:$24 sps:$4 sm:$0xff]  }
  0xb0   : > { %v8249_v52 = vsub.s32 %v950_v46, %v8242_v47  ;;  %v367_v53 = vld [vmem:[%s8196_s29] sm:$0xff]  ;;  %v6761_v59 = vld [vmem:[%s8178_s19 + $0xb44] ss:$24 sps:$4 sm:$0xff]   ;;  %v6769_v5 = vld [vmem:[%s8178_s19 + $0x270] ss:$24 sps:$4 sm:$0xff]   ;;  %vm5675_vm0 = vcmask (!%p6383_p1), 9216  }
  0xb1   : > { %3921 = vmatpush1.bf16.msra.mxu1 %v6715_v19  ;;  %v947_v55 = vcombine.high %v367_v53, %v367_v53  ;;  %v6763_v62 = vld [vmem:[%s8178_s19 + $0x240] ss:$24 sps:$4 sm:$0xff]   ;;  %v6765_v2 = vld [vmem:[%s8178_s19 + $0x274] ss:$24 sps:$4 sm:$0xff]   ;;  %v6770_v7 = vld [vmem:[%s8178_s19 + $0xb70] ss:$24 sps:$4 sm:$0xff]  }
  0xb2   : > { %4044 = vmatpush1.bf16.msra.mxu0 %v6716_v20  ;;  %3922 = vmatprep.subr.bf16.mxu1 %v6717_v21  ;;  %v954_v56 = vrot.slane %v367_v53, %v8249_v52  ;;  %v6764_v1 = vld [vmem:[%s8178_s19 + $0xb40] ss:$24 sps:$4 sm:$0xff]   ;;  %v6767_v3 = vld [vmem:[%s8178_s19 + $0xb74] ss:$24 sps:$4 sm:$0xff]   ;;  %v6771_v8 = vld [vmem:[%s8178_s19 + $0x2a4] ss:$24 sps:$4 sm:$0xff]  }
  0xb3   : > { %4045 = vmatprep.subr.bf16.mxu0 %v6719_v22  ;;  %v961_v60 = vrot.slane %v947_v55, %v8249_v52  ;;  %v6773_v9 = vld [vmem:[%s8178_s19 + $0xba4] ss:$24 sps:$4 sm:$0xff]   ;;  %v6775_v10 = vld [vmem:[%s8178_s19 + $0x2a0] ss:$24 sps:$4 sm:$0xff]   ;;  %v6777_v12 = vld [vmem:[%s8178_s19 + $0x2d4] ss:$24 sps:$4 sm:$0xff]  }
  0xb4   : > { %v962_v61 = vcombine.high %v954_v56, %v954_v56  ;;  %v6776_v11 = vld [vmem:[%s8178_s19 + $0xba0] ss:$24 sps:$4 sm:$0xff]   ;;  %v6779_v13 = vld [vmem:[%s8178_s19 + $0xbd4] ss:$24 sps:$4 sm:$0xff]   ;;  %v6781_v14 = vld [vmem:[%s8178_s19 + $0x2d0] ss:$24 sps:$4 sm:$0xff]   ;;  %v8291_v20 = vrot.slane %v954_v56, %v8249_v52 }
  0xb5   : > { %3923 = vmatpush1.bf16.msra.mxu1 %v6721_v23  ;;  %v963_v0 = vcombine.high %v961_v60, %v961_v60  ;;  %v8284_v15 = vrot.slane %v961_v60, %v8249_v52  ;;  %v6782_v16 = vld [vmem:[%s8178_s19 + $0xbd0] ss:$24 sps:$4 sm:$0xff]   ;;  %v6786_v17 = vld [vmem:[%s8178_s19 + $0x304] ss:$24 sps:$4 sm:$0xff]   ;;  %v6784_v19 = vld [vmem:[%s8178_s19 + $0x300] ss:$24 sps:$4 sm:$0xff]  }
  0xb6   : > { %4046 = vmatpush1.bf16.msra.mxu0 %v6722_v24  ;;  %3924 = vmatprep.subr.bf16.mxu1 %v6723_v25  ;;  %v8260_v63 = vrot.slane %v962_v61, %v8249_v52  ;;  %v6789_v18 = vld [vmem:[%s8178_s19 + $0xc04] ss:$24 sps:$4 sm:$0xff]   ;;  %v6787_v22 = vld [vmem:[%s8178_s19 + $0xc00] ss:$24 sps:$4 sm:$0xff]   ;;  %v6792_v23 = vld [vmem:[%s8178_s19 + $0x334] ss:$24 sps:$4 sm:$0xff]  }
  0xb7   : > { %4047 = vmatprep.subr.bf16.mxu0 %v6725_v26  ;;  %v8266_v4 = vrot.slane %v963_v0, %v8249_v52  ;;  %v8295_v21 = vcombine.high %v8284_v15, %v8284_v15  ;;  %v6795_v24 = vld [vmem:[%s8178_s19 + $0xc34] ss:$24 sps:$4 sm:$0xff]   ;;  %v6790_v26 = vld [vmem:[%s8178_s19 + $0x330] ss:$24 sps:$4 sm:$0xff]   ;;  %v6811_v39 = vld [vmem:[%s8178_s19 + $0xcc0] ss:$24 sps:$4 sm:$0xff]  }
  0xb8   : > { %3944 = vmatprep.mubr.bf16.mxu1 %v8260_v63  ;;  %v8302_v25 = vcombine.high %v8260_v63, %v8260_v63  ;;  %v6816_v40 = vld [vmem:[%s8178_s19 + $0x3f4] ss:$24 sps:$4 sm:$0xff]   ;;  %v8328_v46 = vld.sshfl [vmem:[%s8196_s29 + $0x8] sm:$0x33 pattern:$0x75316420] }
  0xb9   : > { %3925 = vmatpush1.bf16.msra.mxu1 %v6727_v27  ;;  %v8272_v6 = vcombine.high %v8266_v4, %v8266_v4  ;;  %v6793_v27 = vld [vmem:[%s8178_s19 + $0xc30] ss:$24 sps:$4 sm:$0xff]   ;;  %v6819_v41 = vld [vmem:[%s8178_s19 + $0xcf4] ss:$24 sps:$4 sm:$0xff]   ;;  %v6835_v60 = vld [vmem:[%s8178_s19 + $0xd80] ss:$24 sps:$4 sm:$0xff]  }
  0xba   : > { %4048 = vmatpush1.bf16.msra.mxu0 %v6728_v28  ;;  %3926 = vmatprep.subr.bf16.mxu1 %v6729_v29  ;;  %v6798_v28 = vld [vmem:[%s8178_s19 + $0x364] ss:$24 sps:$4 sm:$0xff]   ;;  %v6831_v53 = vld [vmem:[%s8178_s19 + $0xd54] ss:$24 sps:$4 sm:$0xff]   ;;  %v6826_v55 = vld [vmem:[%s8178_s19 + $0x450] ss:$24 sps:$4 sm:$0xff]  }
  0xbb   : > { %4049 = vmatprep.subr.bf16.mxu0 %v6731_v30  ;;  %4067 = vmatprep.mubr.bf16.mxu0 %v8272_v6  ;;  %v6801_v29 = vld [vmem:[%s8178_s19 + $0xc64] ss:$24 sps:$4 sm:$0xff]   ;;  %v6796_v30 = vld [vmem:[%s8178_s19 + $0x360] ss:$24 sps:$4 sm:$0xff]   ;;  %v6829_v56 = vld [vmem:[%s8178_s19 + $0xd50] ss:$24 sps:$4 sm:$0xff]  }
  0xbc   : > { %v6840_v61 = vld [vmem:[%s8178_s19 + $0x4b4] ss:$24 sps:$4 sm:$0xff]   ;;  %v6838_v0 = vld [vmem:[%s8178_s19 + $0x4b0] ss:$24 sps:$4 sm:$0xff]  }
  0xbd   : > { %3927 = vmatpush1.bf16.msra.mxu1 %v6733_v31  ;;  %v6799_v31 = vld [vmem:[%s8178_s19 + $0xc60] ss:$24 sps:$4 sm:$0xff]  }
  0xbe   : > { %4050 = vmatpush1.bf16.msra.mxu0 %v6734_v32  ;;  %3928 = vmatprep.subr.bf16.mxu1 %v6735_v33  ;;  %v6804_v32 = vld [vmem:[%s8178_s19 + $0x394] ss:$24 sps:$4 sm:$0xff]  }
  0xbf   : > { %4051 = vmatprep.subr.bf16.mxu0 %v6737_v34  ;;  %v6807_v33 = vld [vmem:[%s8178_s19 + $0xc94] ss:$24 sps:$4 sm:$0xff]   ;;  %v6802_v34 = vld [vmem:[%s8178_s19 + $0x390] ss:$24 sps:$4 sm:$0xff]  }
  0xc1   : > { %3929 = vmatpush1.bf16.msra.mxu1 %v6739_v35  ;;  %v6805_v35 = vld [vmem:[%s8178_s19 + $0xc90] ss:$24 sps:$4 sm:$0xff]  }
  0xc2   : > { %4052 = vmatpush1.bf16.msra.mxu0 %v6740_v36  ;;  %3930 = vmatprep.subr.bf16.mxu1 %v6741_v37  ;;  %v6810_v36 = vld [vmem:[%s8178_s19 + $0x3c4] ss:$24 sps:$4 sm:$0xff]  }
  0xc3   : > { %4053 = vmatprep.subr.bf16.mxu0 %v6743_v38  ;;  %v6813_v37 = vld [vmem:[%s8178_s19 + $0xcc4] ss:$24 sps:$4 sm:$0xff]   ;;  %v6808_v38 = vld [vmem:[%s8178_s19 + $0x3c0] ss:$24 sps:$4 sm:$0xff]  }
  0xc5   : > { %3931 = vmatpush1.bf16.msra.mxu1 %v6745_v42  ;;  %v6814_v42 = vld [vmem:[%s8178_s19 + $0x3f0] ss:$24 sps:$4 sm:$0xff]  }
  0xc6   : > { %4054 = vmatpush1.bf16.msra.mxu0 %v6746_v43  ;;  %3932 = vmatprep.subr.bf16.mxu1 %v6747_v44  ;;  %v6817_v43 = vld [vmem:[%s8178_s19 + $0xcf0] ss:$24 sps:$4 sm:$0xff]   ;;  %v6822_v44 = vld [vmem:[%s8178_s19 + $0x424] ss:$24 sps:$4 sm:$0xff]  }
  0xc7   : > { %4055 = vmatprep.subr.bf16.mxu0 %v6749_v45  ;;  %v6825_v45 = vld [vmem:[%s8178_s19 + $0xd24] ss:$24 sps:$4 sm:$0xff]  }
  0xc9   : > { %3933 = vmatpush1.bf16.msra.mxu1 %v6751_v48  ;;  %v6820_v48 = vld [vmem:[%s8178_s19 + $0x420] ss:$24 sps:$4 sm:$0xff]  }
  0xca   : > { %4056 = vmatpush1.bf16.msra.mxu0 %v6752_v49  ;;  %3934 = vmatprep.subr.bf16.mxu1 %v6753_v50  ;;  %v6823_v49 = vld [vmem:[%s8178_s19 + $0xd20] ss:$24 sps:$4 sm:$0xff]   ;;  %v1003_v50 = vcombine.high %v8328_v46, %v8328_v46 }
  0xcb   : > { %4057 = vmatprep.subr.bf16.mxu0 %v6755_v51  ;;  %v6828_v51 = vld [vmem:[%s8178_s19 + $0x454] ss:$24 sps:$4 sm:$0xff]  }
  0xcd   : > { %3935 = vmatpush1.bf16.msra.mxu1 %v6757_v54  ;;  %v8337_v54 = vrot.slane %v1003_v50, %v8249_v52  ;;  %v6901_v50 = vld [vmem:[%s8178_s19 + $0xf90] ss:$24 sps:$4 sm:$0xff]  }
  0xce   : > { %4058 = vmatpush1.bf16.msra.mxu0 %v6758_v57  ;;  %3936 = vmatprep.subr.bf16.mxu1 %v6759_v58  ;;  %v6834_v57 = vld [vmem:[%s8178_s19 + $0x484] ss:$24 sps:$4 sm:$0xff]  }
  0xcf   : > { %4059 = vmatprep.subr.bf16.mxu0 %v6761_v59  ;;  %v6837_v58 = vld [vmem:[%s8178_s19 + $0xd84] ss:$24 sps:$4 sm:$0xff]   ;;  %v6832_v59 = vld [vmem:[%s8178_s19 + $0x480] ss:$24 sps:$4 sm:$0xff]  }
  0xd1   : > { %3937 = vmatpush1.bf16.msra.mxu1 %v6763_v62  ;;  %v6843_v62 = vld [vmem:[%s8178_s19 + $0xdb4] ss:$24 sps:$4 sm:$0xff]  }
  0xd2   : > { %4060 = vmatpush1.bf16.msra.mxu0 %v6764_v1  ;;  %3938 = vmatprep.subr.bf16.mxu1 %v6765_v2  ;;  %v6841_v1 = vld [vmem:[%s8178_s19 + $0xdb0] ss:$24 sps:$4 sm:$0xff]   ;;  %v6846_v2 = vld [vmem:[%s8178_s19 + $0x4e4] ss:$24 sps:$4 sm:$0xff]  }
  0xd3   : > { %4061 = vmatprep.subr.bf16.mxu0 %v6767_v3  ;;  %v6849_v3 = vld [vmem:[%s8178_s19 + $0xde4] ss:$24 sps:$4 sm:$0xff]  }
  0xd5   : > { %3939 = vmatpush1.bf16.msra.mxu1 %v6769_v5  ;;  %v6844_v5 = vld [vmem:[%s8178_s19 + $0x4e0] ss:$24 sps:$4 sm:$0xff]  }
  0xd6   : > { %4062 = vmatpush1.bf16.msra.mxu0 %v6770_v7  ;;  %3940 = vmatprep.subr.bf16.mxu1 %v6771_v8  ;;  %v6847_v7 = vld [vmem:[%s8178_s19 + $0xde0] ss:$24 sps:$4 sm:$0xff]   ;;  %v6852_v8 = vld [vmem:[%s8178_s19 + $0x514] ss:$24 sps:$4 sm:$0xff]  }
  0xd7   : > { %4063 = vmatprep.subr.bf16.mxu0 %v6773_v9  ;;  %v6855_v9 = vld [vmem:[%s8178_s19 + $0xe14] ss:$24 sps:$4 sm:$0xff]  }
  0xd9   : > { %3941 = vmatpush1.bf16.msra.mxu1 %v6775_v10  ;;  %v6850_v10 = vld [vmem:[%s8178_s19 + $0x510] ss:$24 sps:$4 sm:$0xff]  }
  0xda   : > { %4064 = vmatpush1.bf16.msra.mxu0 %v6776_v11  ;;  %3942 = vmatprep.subr.bf16.mxu1 %v6777_v12  ;;  %v6853_v11 = vld [vmem:[%s8178_s19 + $0xe10] ss:$24 sps:$4 sm:$0xff]   ;;  %v6858_v12 = vld [vmem:[%s8178_s19 + $0x544] ss:$24 sps:$4 sm:$0xff]  }
  0xdb   : > { %4065 = vmatprep.subr.bf16.mxu0 %v6779_v13  ;;  %v6861_v13 = vld [vmem:[%s8178_s19 + $0xe44] ss:$24 sps:$4 sm:$0xff]  }
  0xdd   : > { %3943 = vmatpush1.bf16.msra.mxu1 %v6781_v14  ;;  %v6856_v14 = vld [vmem:[%s8178_s19 + $0x540] ss:$24 sps:$4 sm:$0xff]  }
  0xde   : > { %4066 = vmatpush1.bf16.msra.mxu0 %v6782_v16  ;;  %3953 = vmatprep.subr.bf16.mxu1 %v6786_v17  ;;  %v6859_v16 = vld [vmem:[%s8178_s19 + $0xe40] ss:$24 sps:$4 sm:$0xff]   ;;  %v6864_v17 = vld [vmem:[%s8178_s19 + $0x574] ss:$24 sps:$4 sm:$0xff]  }
  0xdf   : > { %4076 = vmatprep.subr.bf16.mxu0 %v6789_v18  ;;  %v6867_v18 = vld [vmem:[%s8178_s19 + $0xe74] ss:$24 sps:$4 sm:$0xff]  }
  0xe0   : > { %3945 = vmatmul.mubr.bf16.vlgmr.msra.gmra.mrb[0].mxu1 %v8291_v20 }
  0xe1   : > { %4068 = vmatmul.mubr.bf16.vlgmr.msra.gmra.mrb[0].mxu0 %v8295_v21  ;;  %3954 = vmatpush1.bf16.msra.mxu1 %v6784_v19  ;;  %v6862_v19 = vld [vmem:[%s8178_s19 + $0x570] ss:$24 sps:$4 sm:$0xff]  }
  0xe2   : > { %4077 = vmatpush1.bf16.msra.mxu0 %v6787_v22  ;;  %3955 = vmatprep.subr.bf16.mxu1 %v6792_v23  ;;  %v6865_v22 = vld [vmem:[%s8178_s19 + $0xe70] ss:$24 sps:$4 sm:$0xff]   ;;  %v6870_v23 = vld [vmem:[%s8178_s19 + $0x5a4] ss:$24 sps:$4 sm:$0xff]  }
  0xe3   : > { %4078 = vmatprep.subr.bf16.mxu0 %v6795_v24  ;;  %3985 = vmatprep.mubr.bf16.mxu1 %v8302_v25  ;;  %v6873_v24 = vld [vmem:[%s8178_s19 + $0xea4] ss:$24 sps:$4 sm:$0xff]  }
  0xe4   : > { %4108 = vmatprep.mubr.bf16.mxu0 %v8337_v54 }
  0xe5   : > { %3956 = vmatpush1.bf16.msra.mxu1 %v6790_v26  ;;  %v6868_v26 = vld [vmem:[%s8178_s19 + $0x5a0] ss:$24 sps:$4 sm:$0xff]  }
  0xe6   : > { %4079 = vmatpush1.bf16.msra.mxu0 %v6793_v27  ;;  %3957 = vmatprep.subr.bf16.mxu1 %v6798_v28  ;;  %v6871_v27 = vld [vmem:[%s8178_s19 + $0xea0] ss:$24 sps:$4 sm:$0xff]   ;;  %v6876_v28 = vld [vmem:[%s8178_s19 + $0x5d4] ss:$24 sps:$4 sm:$0xff]  }
  0xe7   : > { %4080 = vmatprep.subr.bf16.mxu0 %v6801_v29  ;;  %v6879_v29 = vld [vmem:[%s8178_s19 + $0xed4] ss:$24 sps:$4 sm:$0xff]  }
  0xe9   : > { %3958 = vmatpush1.bf16.msra.mxu1 %v6796_v30  ;;  %v6874_v30 = vld [vmem:[%s8178_s19 + $0x5d0] ss:$24 sps:$4 sm:$0xff]  }
  0xea   : > { %4081 = vmatpush1.bf16.msra.mxu0 %v6799_v31  ;;  %3959 = vmatprep.subr.bf16.mxu1 %v6804_v32  ;;  %v6877_v31 = vld [vmem:[%s8178_s19 + $0xed0] ss:$24 sps:$4 sm:$0xff]   ;;  %v6882_v32 = vld [vmem:[%s8178_s19 + $0x604] ss:$24 sps:$4 sm:$0xff]  }
  0xeb   : > { %4082 = vmatprep.subr.bf16.mxu0 %v6807_v33  ;;  %v6885_v33 = vld [vmem:[%s8178_s19 + $0xf04] ss:$24 sps:$4 sm:$0xff]  }
  0xed   : > { %3960 = vmatpush1.bf16.msra.mxu1 %v6802_v34  ;;  %v8378_v34 = vcombine.high %v8291_v20, %v8291_v20 }
  0xee   : > { %4083 = vmatpush1.bf16.msra.mxu0 %v6805_v35  ;;  %3961 = vmatprep.subr.bf16.mxu1 %v6810_v36  ;;  %v8382_v35 = vrot.slane %v8328_v46, %v8249_v52  ;;  %v6880_v36 = vld [vmem:[%s8178_s19 + $0x600] ss:$24 sps:$4 sm:$0xff]   ;;  %v6886_v52 = vld [vmem:[%s8178_s19 + $0x630] ss:$24 sps:$4 sm:$0xff]   ;;  %v6900_v46 = vld [vmem:[%s8178_s19 + $0x694] ss:$24 sps:$4 sm:$0xff]  }
  0xef   : > { %4084 = vmatprep.subr.bf16.mxu0 %v6813_v37  ;;  %v6883_v37 = vld [vmem:[%s8178_s19 + $0xf00] ss:$24 sps:$4 sm:$0xff]  }
  0xf1   : > { %3962 = vmatpush1.bf16.msra.mxu1 %v6808_v38  ;;  %v6888_v38 = vld [vmem:[%s8178_s19 + $0x634] ss:$24 sps:$4 sm:$0xff]  }
  0xf2   : > { %4085 = vmatpush1.bf16.msra.mxu0 %v6811_v39  ;;  %3963 = vmatprep.subr.bf16.mxu1 %v6816_v40  ;;  %v6891_v39 = vld [vmem:[%s8178_s19 + $0xf34] ss:$24 sps:$4 sm:$0xff]   ;;  %v8390_v40 = vcombine.high %v8337_v54, %v8337_v54 }
  0xf3   : > { %4086 = vmatprep.subr.bf16.mxu0 %v6819_v41  ;;  %v6889_v41 = vld [vmem:[%s8178_s19 + $0xf30] ss:$24 sps:$4 sm:$0xff]  }
  0xf5   : > { %3964 = vmatpush1.bf16.msra.mxu1 %v6814_v42  ;;  %v6894_v42 = vld [vmem:[%s8178_s19 + $0x664] ss:$24 sps:$4 sm:$0xff]  }
  0xf6   : > { %4087 = vmatpush1.bf16.msra.mxu0 %v6817_v43  ;;  %3965 = vmatprep.subr.bf16.mxu1 %v6822_v44  ;;  %v6897_v43 = vld [vmem:[%s8178_s19 + $0xf64] ss:$24 sps:$4 sm:$0xff]   ;;  %v6892_v44 = vld [vmem:[%s8178_s19 + $0x660] ss:$24 sps:$4 sm:$0xff]  }
  0xf7   : > { %4088 = vmatprep.subr.bf16.mxu0 %v6825_v45  ;;  %v6895_v45 = vld [vmem:[%s8178_s19 + $0xf60] ss:$24 sps:$4 sm:$0xff]  }
  0xf9   : > { %3966 = vmatpush1.bf16.msra.mxu1 %v6820_v48  ;;  %v6903_v48 = vld [vmem:[%s8178_s19 + $0xf94] ss:$24 sps:$4 sm:$0xff]  }
  0xfa   : > { %4089 = vmatpush1.bf16.msra.mxu0 %v6823_v49  ;;  %3967 = vmatprep.subr.bf16.mxu1 %v6828_v51  ;;  %v6898_v49 = vld [vmem:[%s8178_s19 + $0x690] ss:$24 sps:$4 sm:$0xff]   ;;  %v6906_v51 = vld [vmem:[%s8178_s19 + $0x6c4] ss:$24 sps:$4 sm:$0xff]  }
  0xfb   : > { %4090 = vmatprep.subr.bf16.mxu0 %v6831_v53  ;;  %v6909_v53 = vld [vmem:[%s8178_s19 + $0xfc4] ss:$24 sps:$4 sm:$0xff]  }
  0xfd   : > { %3968 = vmatpush1.bf16.msra.mxu1 %v6826_v55  ;;  %v6904_v55 = vld [vmem:[%s8178_s19 + $0x6c0] ss:$24 sps:$4 sm:$0xff]  }
  0xfe   : > { %4091 = vmatpush1.bf16.msra.mxu0 %v6829_v56  ;;  %3969 = vmatprep.subr.bf16.mxu1 %v6834_v57  ;;  %v6907_v56 = vld [vmem:[%s8178_s19 + $0xfc0] ss:$24 sps:$4 sm:$0xff]   ;;  %v6912_v57 = vld [vmem:[%s8178_s19 + $0x6f4] ss:$24 sps:$4 sm:$0xff]  }
  0xff   : > { %4092 = vmatprep.subr.bf16.mxu0 %v6837_v58  ;;  %v6915_v58 = vld [vmem:[%s8178_s19 + $0xff4] ss:$24 sps:$4 sm:$0xff]  }
 0x101   : > { %3970 = vmatpush1.bf16.msra.mxu1 %v6832_v59  ;;  %v6910_v59 = vld [vmem:[%s8178_s19 + $0x6f0] ss:$24 sps:$4 sm:$0xff]  }
 0x102   : > { %4093 = vmatpush1.bf16.msra.mxu0 %v6835_v60  ;;  %3971 = vmatprep.subr.bf16.mxu1 %v6840_v61  ;;  %v6913_v60 = vld [vmem:[%s8178_s19 + $0xff0] ss:$24 sps:$4 sm:$0xff]   ;;  %v6918_v61 = vld [vmem:[%s8178_s19 + $0x724] ss:$24 sps:$4 sm:$0xff]  }
 0x103   : > { %4094 = vmatprep.subr.bf16.mxu0 %v6843_v62  ;;  %v6921_v62 = vld [vmem:[%s8178_s19 + $0x1024] ss:$24 sps:$4 sm:$0xff]  }
 0x105   : > { %3972 = vmatpush1.bf16.msra.mxu1 %v6838_v0  ;;  %v6916_v0 = vld [vmem:[%s8178_s19 + $0x720] ss:$24 sps:$4 sm:$0xff]  }
 0x106   : > { %4095 = vmatpush1.bf16.msra.mxu0 %v6841_v1  ;;  %3973 = vmatprep.subr.bf16.mxu1 %v6846_v2  ;;  %v6919_v1 = vld [vmem:[%s8178_s19 + $0x1020] ss:$24 sps:$4 sm:$0xff]   ;;  %v6924_v2 = vld [vmem:[%s8178_s19 + $0x754] ss:$24 sps:$4 sm:$0xff]  }
 0x107   : > { %4096 = vmatprep.subr.bf16.mxu0 %v6849_v3  ;;  %v6927_v3 = vld [vmem:[%s8178_s19 + $0x1054] ss:$24 sps:$4 sm:$0xff]  }
 0x109   : > { %3974 = vmatpush1.bf16.msra.mxu1 %v6844_v5  ;;  %v6922_v5 = vld [vmem:[%s8178_s19 + $0x750] ss:$24 sps:$4 sm:$0xff]  }
 0x10a   : > { %4097 = vmatpush1.bf16.msra.mxu0 %v6847_v7  ;;  %3975 = vmatprep.subr.bf16.mxu1 %v6852_v8  ;;  %v6925_v7 = vld [vmem:[%s8178_s19 + $0x1050] ss:$24 sps:$4 sm:$0xff]   ;;  %v6930_v8 = vld [vmem:[%s8178_s19 + $0x784] ss:$24 sps:$4 sm:$0xff]  }
 0x10b   : > { %4098 = vmatprep.subr.bf16.mxu0 %v6855_v9  ;;  %v6933_v9 = vld [vmem:[%s8178_s19 + $0x1084] ss:$24 sps:$4 sm:$0xff]  }
 0x10d   : > { %3976 = vmatpush1.bf16.msra.mxu1 %v6850_v10  ;;  %v6928_v10 = vld [vmem:[%s8178_s19 + $0x780] ss:$24 sps:$4 sm:$0xff]  }
 0x10e   : > { %4099 = vmatpush1.bf16.msra.mxu0 %v6853_v11  ;;  %3977 = vmatprep.subr.bf16.mxu1 %v6858_v12  ;;  %v6931_v11 = vld [vmem:[%s8178_s19 + $0x1080] ss:$24 sps:$4 sm:$0xff]   ;;  %v6936_v12 = vld [vmem:[%s8178_s19 + $0x7b4] ss:$24 sps:$4 sm:$0xff]  }
 0x10f   : > { %4100 = vmatprep.subr.bf16.mxu0 %v6861_v13  ;;  %v6939_v13 = vld [vmem:[%s8178_s19 + $0x10b4] ss:$24 sps:$4 sm:$0xff]  }
 0x111   : > { %3978 = vmatpush1.bf16.msra.mxu1 %v6856_v14  ;;  %v6934_v14 = vld [vmem:[%s8178_s19 + $0x7b0] ss:$24 sps:$4 sm:$0xff]  }
 0x112   : > { %4101 = vmatpush1.bf16.msra.mxu0 %v6859_v16  ;;  %3979 = vmatprep.subr.bf16.mxu1 %v6864_v17  ;;  %v6937_v16 = vld [vmem:[%s8178_s19 + $0x10b0] ss:$24 sps:$4 sm:$0xff]   ;;  %v6942_v17 = vld [vmem:[%s8178_s19 + $0x7e4] ss:$24 sps:$4 sm:$0xff]  }
 0x113   : > { %4102 = vmatprep.subr.bf16.mxu0 %v6867_v18  ;;  %v6945_v18 = vld [vmem:[%s8178_s19 + $0x10e4] ss:$24 sps:$4 sm:$0xff]  }
 0x115   : > { %3980 = vmatpush1.bf16.msra.mxu1 %v6862_v19  ;;  %v6940_v19 = vld [vmem:[%s8178_s19 + $0x7e0] ss:$24 sps:$4 sm:$0xff]  }
 0x116   : > { %4103 = vmatpush1.bf16.msra.mxu0 %v6865_v22  ;;  %3981 = vmatprep.subr.bf16.mxu1 %v6870_v23  ;;  %v6943_v22 = vld [vmem:[%s8178_s19 + $0x10e0] ss:$24 sps:$4 sm:$0xff]   ;;  %v6948_v23 = vld [vmem:[%s8178_s19 + $0x814] ss:$24 sps:$4 sm:$0xff]  }
 0x117   : > { %4104 = vmatprep.subr.bf16.mxu0 %v6873_v24  ;;  %v6951_v24 = vld [vmem:[%s8178_s19 + $0x1114] ss:$24 sps:$4 sm:$0xff]  }
 0x119   : > { %3982 = vmatpush1.bf16.msra.mxu1 %v6868_v26  ;;  %v6946_v26 = vld [vmem:[%s8178_s19 + $0x810] ss:$24 sps:$4 sm:$0xff]  }
 0x11a   : > { %4105 = vmatpush1.bf16.msra.mxu0 %v6871_v27  ;;  %3983 = vmatprep.subr.bf16.mxu1 %v6876_v28  ;;  %v6949_v27 = vld [vmem:[%s8178_s19 + $0x1110] ss:$24 sps:$4 sm:$0xff]   ;;  %v6954_v28 = vld [vmem:[%s8178_s19 + $0x844] ss:$24 sps:$4 sm:$0xff]  }
 0x11b   : > { %4106 = vmatprep.subr.bf16.mxu0 %v6879_v29  ;;  %v6957_v29 = vld [vmem:[%s8178_s19 + $0x1144] ss:$24 sps:$4 sm:$0xff]  }
 0x11d   : > { %3984 = vmatpush1.bf16.msra.mxu1 %v6874_v30  ;;  %v6952_v30 = vld [vmem:[%s8178_s19 + $0x840] ss:$24 sps:$4 sm:$0xff]  }
 0x11e   : > { %4107 = vmatpush1.bf16.msra.mxu0 %v6877_v31  ;;  %3994 = vmatprep.subr.bf16.mxu1 %v6882_v32  ;;  %v6955_v31 = vld [vmem:[%s8178_s19 + $0x1140] ss:$24 sps:$4 sm:$0xff]   ;;  %v6960_v32 = vld [vmem:[%s8178_s19 + $0x874] ss:$24 sps:$4 sm:$0xff]  }
 0x11f   : > { %4117 = vmatprep.subr.bf16.mxu0 %v6885_v33  ;;  %v6963_v33 = vld [vmem:[%s8178_s19 + $0x1174] ss:$24 sps:$4 sm:$0xff]  }
 0x120   : > { %3986 = vmatmul.mubr.bf16.vlgmr.msra.gmra.mrb[0].mxu1 %v8378_v34 }
 0x121   : > { %4109 = vmatmul.mubr.bf16.vlgmr.msra.gmra.mrb[0].mxu0 %v8382_v35  ;;  %3995 = vmatpush1.bf16.msra.mxu1 %v6880_v36  ;;  %v6958_v36 = vld [vmem:[%s8178_s19 + $0x870] ss:$24 sps:$4 sm:$0xff]  }
 0x122   : > { %4118 = vmatpush1.bf16.msra.mxu0 %v6883_v37  ;;  %3996 = vmatprep.subr.bf16.mxu1 %v6888_v38  ;;  %v6961_v37 = vld [vmem:[%s8178_s19 + $0x1170] ss:$24 sps:$4 sm:$0xff]   ;;  %v6966_v38 = vld [vmem:[%s8178_s19 + $0x8a4] ss:$24 sps:$4 sm:$0xff]  }
 0x123   : > { %4119 = vmatprep.subr.bf16.mxu0 %v6891_v39  ;;  %4026 = vmatprep.mubr.bf16.mxu1 %v8266_v4  ;;  %v6969_v39 = vld [vmem:[%s8178_s19 + $0x11a4] ss:$24 sps:$4 sm:$0xff]  }
 0x124   : > { %4149 = vmatprep.mubr.bf16.mxu0 %v8390_v40 }
 0x125   : > { %3997 = vmatpush1.bf16.msra.mxu1 %v6886_v52  ;;  %v6964_v52 = vld [vmem:[%s8178_s19 + $0x8a0] ss:$24 sps:$4 sm:$0xff]  }
 0x126   : > { %4120 = vmatpush1.bf16.msra.mxu0 %v6889_v41  ;;  %3998 = vmatprep.subr.bf16.mxu1 %v6894_v42  ;;  %v6967_v41 = vld [vmem:[%s8178_s19 + $0x11a0] ss:$24 sps:$4 sm:$0xff]   ;;  %v6972_v42 = vld [vmem:[%s8178_s19 + $0x8d4] ss:$24 sps:$4 sm:$0xff]  }
 0x127   : > { %4121 = vmatprep.subr.bf16.mxu0 %v6897_v43  ;;  %v6975_v43 = vld [vmem:[%s8178_s19 + $0x11d4] ss:$24 sps:$4 sm:$0xff]  }
 0x129   : > { %3999 = vmatpush1.bf16.msra.mxu1 %v6892_v44  ;;  %v6970_v44 = vld [vmem:[%s8178_s19 + $0x8d0] ss:$24 sps:$4 sm:$0xff]  }
 0x12a   : > { %4122 = vmatpush1.bf16.msra.mxu0 %v6895_v45  ;;  %4000 = vmatprep.subr.bf16.mxu1 %v6900_v46  ;;  %v6973_v45 = vld [vmem:[%s8178_s19 + $0x11d0] ss:$24 sps:$4 sm:$0xff]   ;;  %v6978_v46 = vld [vmem:[%s8178_s19 + $0xc] ss:$24 sps:$4 sm:$0xff]  }
 0x12b   : > { %4123 = vmatprep.subr.bf16.mxu0 %v6903_v48  ;;  %v6981_v48 = vld [vmem:[%s8178_s19 + $0x14] ss:$24 sps:$4 sm:$0xff]  }
 0x12d   : > { %4001 = vmatpush1.bf16.msra.mxu1 %v6898_v49  ;;  %v8458_v49 = vcombine.high %v8382_v35, %v8382_v35 }
 0x12e   : > { %4124 = vmatpush1.bf16.msra.mxu0 %v6901_v50  ;;  %4002 = vmatprep.subr.bf16.mxu1 %v6906_v51  ;;  %v6976_v50 = vld [vmem:[%s8178_s19 + $0x8] ss:$24 sps:$4 sm:$0xff]  }
 0x12f   : > { %4125 = vmatprep.subr.bf16.mxu0 %v6909_v53  ;;  %v6979_v51 = vld [vmem:[%s8178_s19 + $0x10] ss:$24 sps:$4 sm:$0xff]   ;;  %v6984_v53 = vld [vmem:[%s8178_s19 + $0x3c] ss:$24 sps:$4 sm:$0xff]  }
 0x131   : > { %4003 = vmatpush1.bf16.msra.mxu1 %v6904_v55  ;;  %v6987_v55 = vld [vmem:[%s8178_s19 + $0x44] ss:$24 sps:$4 sm:$0xff]  }
 0x132   : > { %4126 = vmatpush1.bf16.msra.mxu0 %v6907_v56  ;;  %4004 = vmatprep.subr.bf16.mxu1 %v6912_v57  ;;  %v6982_v56 = vld [vmem:[%s8178_s19 + $0x38] ss:$24 sps:$4 sm:$0xff]  }
 0x133   : > { %4127 = vmatprep.subr.bf16.mxu0 %v6915_v58  ;;  %v6985_v57 = vld [vmem:[%s8178_s19 + $0x40] ss:$24 sps:$4 sm:$0xff]   ;;  %v6990_v58 = vld [vmem:[%s8178_s19 + $0x6c] ss:$24 sps:$4 sm:$0xff]  }
 0x135   : > { %4005 = vmatpush1.bf16.msra.mxu1 %v6910_v59  ;;  %v6993_v59 = vld [vmem:[%s8178_s19 + $0x74] ss:$24 sps:$4 sm:$0xff]  }
 0x136   : > { %4128 = vmatpush1.bf16.msra.mxu0 %v6913_v60  ;;  %4006 = vmatprep.subr.bf16.mxu1 %v6918_v61  ;;  %v6988_v60 = vld [vmem:[%s8178_s19 + $0x68] ss:$24 sps:$4 sm:$0xff]  }
 0x137   : > { %4129 = vmatprep.subr.bf16.mxu0 %v6921_v62  ;;  %v6991_v61 = vld [vmem:[%s8178_s19 + $0x70] ss:$24 sps:$4 sm:$0xff]   ;;  %v6996_v62 = vld [vmem:[%s8178_s19 + $0x9c] ss:$24 sps:$4 sm:$0xff]  }
 0x139   : > { %4007 = vmatpush1.bf16.msra.mxu1 %v6916_v0  ;;  %v6999_v0 = vld [vmem:[%s8178_s19 + $0xa4] ss:$24 sps:$4 sm:$0xff]  }
 0x13a   : > { %4130 = vmatpush1.bf16.msra.mxu0 %v6919_v1  ;;  %4008 = vmatprep.subr.bf16.mxu1 %v6924_v2  ;;  %v6994_v1 = vld [vmem:[%s8178_s19 + $0x98] ss:$24 sps:$4 sm:$0xff]  }
 0x13b   : > { %4131 = vmatprep.subr.bf16.mxu0 %v6927_v3  ;;  %v6997_v2 = vld [vmem:[%s8178_s19 + $0xa0] ss:$24 sps:$4 sm:$0xff]   ;;  %v7005_v3 = vld [vmem:[%s8178_s19 + $0xd4] ss:$24 sps:$4 sm:$0xff]  }
 0x13d   : > { %4009 = vmatpush1.bf16.msra.mxu1 %v6922_v5  ;;  %v7000_v5 = vld [vmem:[%s8178_s19 + $0xc8] ss:$24 sps:$4 sm:$0xff]  }
 0x13e   : > { %4132 = vmatpush1.bf16.msra.mxu0 %v6925_v7  ;;  %4010 = vmatprep.subr.bf16.mxu1 %v6930_v8  ;;  %v7003_v7 = vld [vmem:[%s8178_s19 + $0xd0] ss:$24 sps:$4 sm:$0xff]   ;;  %v7008_v8 = vld [vmem:[%s8178_s19 + $0xfc] ss:$24 sps:$4 sm:$0xff]  }
 0x13f   : > { %4133 = vmatprep.subr.bf16.mxu0 %v6933_v9  ;;  %v7011_v9 = vld [vmem:[%s8178_s19 + $0x104] ss:$24 sps:$4 sm:$0xff]  }
 0x141   : > { %4011 = vmatpush1.bf16.msra.mxu1 %v6928_v10  ;;  %v7006_v10 = vld [vmem:[%s8178_s19 + $0xf8] ss:$24 sps:$4 sm:$0xff]  }
 0x142   : > { %4134 = vmatpush1.bf16.msra.mxu0 %v6931_v11  ;;  %4012 = vmatprep.subr.bf16.mxu1 %v6936_v12  ;;  %v7009_v11 = vld [vmem:[%s8178_s19 + $0x100] ss:$24 sps:$4 sm:$0xff]   ;;  %v7014_v12 = vld [vmem:[%s8178_s19 + $0x12c] ss:$24 sps:$4 sm:$0xff]  }
 0x143   : > { %4135 = vmatprep.subr.bf16.mxu0 %v6939_v13  ;;  %v7017_v13 = vld [vmem:[%s8178_s19 + $0x134] ss:$24 sps:$4 sm:$0xff]  }
 0x145   : > { %4013 = vmatpush1.bf16.msra.mxu1 %v6934_v14  ;;  %v7012_v14 = vld [vmem:[%s8178_s19 + $0x128] ss:$24 sps:$4 sm:$0xff]  }
 0x146   : > { %4136 = vmatpush1.bf16.msra.mxu0 %v6937_v16  ;;  %4014 = vmatprep.subr.bf16.mxu1 %v6942_v17  ;;  %v7015_v16 = vld [vmem:[%s8178_s19 + $0x130] ss:$24 sps:$4 sm:$0xff]   ;;  %v7020_v17 = vld [vmem:[%s8178_s19 + $0x15c] ss:$24 sps:$4 sm:$0xff]  }
 0x147   : > { %4137 = vmatprep.subr.bf16.mxu0 %v6945_v18  ;;  %v7023_v18 = vld [vmem:[%s8178_s19 + $0x164] ss:$24 sps:$4 sm:$0xff]  }
 0x149   : > { %4015 = vmatpush1.bf16.msra.mxu1 %v6940_v19  ;;  %v7018_v19 = vld [vmem:[%s8178_s19 + $0x158] ss:$24 sps:$4 sm:$0xff]  }
 0x14a   : > { %4138 = vmatpush1.bf16.msra.mxu0 %v6943_v22  ;;  %4016 = vmatprep.subr.bf16.mxu1 %v6948_v23  ;;  %v7021_v22 = vld [vmem:[%s8178_s19 + $0x160] ss:$24 sps:$4 sm:$0xff]   ;;  %v7026_v23 = vld [vmem:[%s8178_s19 + $0x18c] ss:$24 sps:$4 sm:$0xff]  }
 0x14b   : > { %4139 = vmatprep.subr.bf16.mxu0 %v6951_v24  ;;  %v7029_v24 = vld [vmem:[%s8178_s19 + $0x194] ss:$24 sps:$4 sm:$0xff]  }
 0x14d   : > { %4017 = vmatpush1.bf16.msra.mxu1 %v6946_v26  ;;  %v7024_v26 = vld [vmem:[%s8178_s19 + $0x188] ss:$24 sps:$4 sm:$0xff]  }
 0x14e   : > { %4140 = vmatpush1.bf16.msra.mxu0 %v6949_v27  ;;  %4018 = vmatprep.subr.bf16.mxu1 %v6954_v28  ;;  %v7027_v27 = vld [vmem:[%s8178_s19 + $0x190] ss:$24 sps:$4 sm:$0xff]   ;;  %v7032_v28 = vld [vmem:[%s8178_s19 + $0x1bc] ss:$24 sps:$4 sm:$0xff]  }
 0x14f   : > { %4141 = vmatprep.subr.bf16.mxu0 %v6957_v29  ;;  %v7035_v29 = vld [vmem:[%s8178_s19 + $0x1c4] ss:$24 sps:$4 sm:$0xff]  }
 0x151   : > { %4019 = vmatpush1.bf16.msra.mxu1 %v6952_v30  ;;  %v7030_v30 = vld [vmem:[%s8178_s19 + $0x1b8] ss:$24 sps:$4 sm:$0xff]  }
 0x152   : > { %4142 = vmatpush1.bf16.msra.mxu0 %v6955_v31  ;;  %4020 = vmatprep.subr.bf16.mxu1 %v6960_v32  ;;  %v7033_v31 = vld [vmem:[%s8178_s19 + $0x1c0] ss:$24 sps:$4 sm:$0xff]   ;;  %v7038_v32 = vld [vmem:[%s8178_s19 + $0x1ec] ss:$24 sps:$4 sm:$0xff]  }
 0x153   : > { %4143 = vmatprep.subr.bf16.mxu0 %v6963_v33  ;;  %v7041_v33 = vld [vmem:[%s8178_s19 + $0x1f4] ss:$24 sps:$4 sm:$0xff]  }
 0x155   : > { %4021 = vmatpush1.bf16.msra.mxu1 %v6958_v36  ;;  %v7036_v36 = vld [vmem:[%s8178_s19 + $0x1e8] ss:$24 sps:$4 sm:$0xff]  }
 0x156   : > { %4144 = vmatpush1.bf16.msra.mxu0 %v6961_v37  ;;  %4022 = vmatprep.subr.bf16.mxu1 %v6966_v38  ;;  %v7039_v37 = vld [vmem:[%s8178_s19 + $0x1f0] ss:$24 sps:$4 sm:$0xff]   ;;  %v7044_v38 = vld [vmem:[%s8178_s19 + $0x21c] ss:$24 sps:$4 sm:$0xff]  }
 0x157   : > { %4145 = vmatprep.subr.bf16.mxu0 %v6969_v39  ;;  %v7047_v39 = vld [vmem:[%s8178_s19 + $0x224] ss:$24 sps:$4 sm:$0xff]  }
 0x159   : > { %4023 = vmatpush1.bf16.msra.mxu1 %v6964_v52  ;;  %v7042_v52 = vld [vmem:[%s8178_s19 + $0x218] ss:$24 sps:$4 sm:$0xff]  }
 0x15a   : > { %4146 = vmatpush1.bf16.msra.mxu0 %v6967_v41  ;;  %4024 = vmatprep.subr.bf16.mxu1 %v6972_v42  ;;  %v7045_v41 = vld [vmem:[%s8178_s19 + $0x220] ss:$24 sps:$4 sm:$0xff]   ;;  %v7050_v42 = vld [vmem:[%s8178_s19 + $0x24c] ss:$24 sps:$4 sm:$0xff]  }
 0x15b   : > { %4147 = vmatprep.subr.bf16.mxu0 %v6975_v43  ;;  %v7053_v43 = vld [vmem:[%s8178_s19 + $0x254] ss:$24 sps:$4 sm:$0xff]  }
 0x15d   : > { %4025 = vmatpush1.bf16.msra.mxu1 %v6970_v44  ;;  %v7048_v44 = vld [vmem:[%s8178_s19 + $0x248] ss:$24 sps:$4 sm:$0xff]  }
 0x15e   : > { %4148 = vmatpush1.bf16.msra.mxu0 %v6973_v45  ;;  %4158 = vmatprep.subr.bf16.mxu1 %v6978_v46  ;;  %v7051_v45 = vld [vmem:[%s8178_s19 + $0x250] ss:$24 sps:$4 sm:$0xff]   ;;  %v7056_v46 = vld [vmem:[%s8178_s19 + $0x27c] ss:$24 sps:$4 sm:$0xff]  }
 0x15f   : > { %4404 = vmatprep.subr.bf16.mxu0 %v6981_v48  ;;  %v7059_v48 = vld [vmem:[%s8178_s19 + $0x284] ss:$24 sps:$4 sm:$0xff]  }
 0x160   : > { %4027 = vmatmul.mubr.bf16.vlgmr.msra.gmra.mrb[0].mxu1 %v8284_v15 }
 0x161   : > { %4150 = vmatmul.mubr.bf16.vlgmr.msra.gmra.mrb[0].mxu0 %v8458_v49  ;;  %4159 = vmatpush1.bf16.msra.mxu1 %v6976_v50  ;;  %v7054_v50 = vld [vmem:[%s8178_s19 + $0x278] ss:$24 sps:$4 sm:$0xff]  }
 0x162   : > { %4405 = vmatpush1.bf16.msra.mxu0 %v6979_v51  ;;  %4160 = vmatprep.subr.bf16.mxu1 %v6984_v53  ;;  %v7057_v51 = vld [vmem:[%s8178_s19 + $0x280] ss:$24 sps:$4 sm:$0xff]   ;;  %v7062_v53 = vld [vmem:[%s8178_s19 + $0x2ac] ss:$24 sps:$4 sm:$0xff]  }
 0x163   : > { %4406 = vmatprep.subr.bf16.mxu0 %v6987_v55  ;;  %4190 = vmatprep.mubr.bf16.mxu1 %v8260_v63  ;;  %v7065_v55 = vld [vmem:[%s8178_s19 + $0x2b4] ss:$24 sps:$4 sm:$0xff]  }
 0x164   : > { %4436 = vmatprep.mubr.bf16.mxu0 %v8260_v63  ;;  %v7002_v63 = vld [vmem:[%s8178_s19 + $0xcc] ss:$24 sps:$4 sm:$0xff]  }
 0x165   : > { %4161 = vmatpush1.bf16.msra.mxu1 %v6982_v56  ;;  %v7060_v56 = vld [vmem:[%s8178_s19 + $0x2a8] ss:$24 sps:$4 sm:$0xff]  }
 0x166   : > { %4407 = vmatpush1.bf16.msra.mxu0 %v6985_v57  ;;  %4162 = vmatprep.subr.bf16.mxu1 %v6990_v58  ;;  %v7063_v57 = vld [vmem:[%s8178_s19 + $0x2b0] ss:$24 sps:$4 sm:$0xff]   ;;  %v7068_v58 = vld [vmem:[%s8178_s19 + $0x2dc] ss:$24 sps:$4 sm:$0xff]  }
 0x167   : > { %4408 = vmatprep.subr.bf16.mxu0 %v6993_v59  ;;  %v7071_v59 = vld [vmem:[%s8178_s19 + $0x2e4] ss:$24 sps:$4 sm:$0xff]  }
 0x169   : > { %4163 = vmatpush1.bf16.msra.mxu1 %v6988_v60  ;;  %v7066_v60 = vld [vmem:[%s8178_s19 + $0x2d8] ss:$24 sps:$4 sm:$0xff]  }
 0x16a   : > { %4409 = vmatpush1.bf16.msra.mxu0 %v6991_v61  ;;  %4164 = vmatprep.subr.bf16.mxu1 %v6996_v62  ;;  %v7069_v61 = vld [vmem:[%s8178_s19 + $0x2e0] ss:$24 sps:$4 sm:$0xff]   ;;  %v7074_v62 = vld [vmem:[%s8178_s19 + $0x30c] ss:$24 sps:$4 sm:$0xff]  }
 0x16b   : > { %4410 = vmatprep.subr.bf16.mxu0 %v6999_v0  ;;  %v7077_v0 = vld [vmem:[%s8178_s19 + $0x314] ss:$24 sps:$4 sm:$0xff]  }
 0x16d   : > { %4165 = vmatpush1.bf16.msra.mxu1 %v6994_v1  ;;  %v7072_v1 = vld [vmem:[%s8178_s19 + $0x308] ss:$24 sps:$4 sm:$0xff]  }
 0x16e   : > { %4411 = vmatpush1.bf16.msra.mxu0 %v6997_v2  ;;  %4166 = vmatprep.subr.bf16.mxu1 %v7002_v63  ;;  %v7075_v2 = vld [vmem:[%s8178_s19 + $0x310] ss:$24 sps:$4 sm:$0xff]   ;;  %v7080_v63 = vld [vmem:[%s8178_s19 + $0x33c] ss:$24 sps:$4 sm:$0xff]  }
 0x16f   : > { %4412 = vmatprep.subr.bf16.mxu0 %v7005_v3  ;;  %v7083_v3 = vld [vmem:[%s8178_s19 + $0x344] ss:$24 sps:$4 sm:$0xff]  }
 0x171   : > { %4167 = vmatpush1.bf16.msra.mxu1 %v7000_v5  ;;  %v7078_v5 = vld [vmem:[%s8178_s19 + $0x338] ss:$24 sps:$4 sm:$0xff]  }
 0x172   : > { %4413 = vmatpush1.bf16.msra.mxu0 %v7003_v7  ;;  %4168 = vmatprep.subr.bf16.mxu1 %v7008_v8  ;;  %v7081_v7 = vld [vmem:[%s8178_s19 + $0x340] ss:$24 sps:$4 sm:$0xff]   ;;  %v7086_v8 = vld [vmem:[%s8178_s19 + $0x36c] ss:$24 sps:$4 sm:$0xff]  }
 0x173   : > { %4414 = vmatprep.subr.bf16.mxu0 %v7011_v9  ;;  %v7089_v9 = vld [vmem:[%s8178_s19 + $0x374] ss:$24 sps:$4 sm:$0xff]  }
 0x175   : > { %4169 = vmatpush1.bf16.msra.mxu1 %v7006_v10  ;;  %v7087_v10 = vld [vmem:[%s8178_s19 + $0x370] ss:$24 sps:$4 sm:$0xff]  }
 0x176   : > { %4415 = vmatpush1.bf16.msra.mxu0 %v7009_v11  ;;  %4170 = vmatprep.subr.bf16.mxu1 %v7014_v12  ;;  %v7092_v11 = vld [vmem:[%s8178_s19 + $0x39c] ss:$24 sps:$4 sm:$0xff]  }
 0x177   : > { %4416 = vmatprep.subr.bf16.mxu0 %v7017_v13  ;;  %v7095_v12 = vld [vmem:[%s8178_s19 + $0x3a4] ss:$24 sps:$4 sm:$0xff]   ;;  %v7090_v13 = vld [vmem:[%s8178_s19 + $0x398] ss:$24 sps:$4 sm:$0xff]  }
 0x179   : > { %4171 = vmatpush1.bf16.msra.mxu1 %v7012_v14  ;;  %v7093_v14 = vld [vmem:[%s8178_s19 + $0x3a0] ss:$24 sps:$4 sm:$0xff]  }
 0x17a   : > { %4417 = vmatpush1.bf16.msra.mxu0 %v7015_v16  ;;  %4172 = vmatprep.subr.bf16.mxu1 %v7020_v17  ;;  %v7101_v16 = vld [vmem:[%s8178_s19 + $0x3d4] ss:$24 sps:$4 sm:$0xff]   ;;  %v7096_v17 = vld [vmem:[%s8178_s19 + $0x3c8] ss:$24 sps:$4 sm:$0xff]  }
 0x17b   : > { %4418 = vmatprep.subr.bf16.mxu0 %v7023_v18  ;;  %v7099_v18 = vld [vmem:[%s8178_s19 + $0x3d0] ss:$24 sps:$4 sm:$0xff]  }
 0x17d   : > { %4173 = vmatpush1.bf16.msra.mxu1 %v7018_v19  ;;  %v7104_v19 = vld [vmem:[%s8178_s19 + $0x3fc] ss:$24 sps:$4 sm:$0xff]  }
 0x17e   : > { %4419 = vmatpush1.bf16.msra.mxu0 %v7021_v22  ;;  %4174 = vmatprep.subr.bf16.mxu1 %v7026_v23  ;;  %v7107_v22 = vld [vmem:[%s8178_s19 + $0x404] ss:$24 sps:$4 sm:$0xff]   ;;  %v7102_v23 = vld [vmem:[%s8178_s19 + $0x3f8] ss:$24 sps:$4 sm:$0xff]  }
 0x17f   : > { %4420 = vmatprep.subr.bf16.mxu0 %v7029_v24  ;;  %v7105_v24 = vld [vmem:[%s8178_s19 + $0x400] ss:$24 sps:$4 sm:$0xff]  }
 0x181   : > { %4175 = vmatpush1.bf16.msra.mxu1 %v7024_v26  ;;  %v7110_v26 = vld [vmem:[%s8178_s19 + $0x42c] ss:$24 sps:$4 sm:$0xff]  }
 0x182   : > { %4421 = vmatpush1.bf16.msra.mxu0 %v7027_v27  ;;  %4176 = vmatprep.subr.bf16.mxu1 %v7032_v28  ;;  %v7113_v27 = vld [vmem:[%s8178_s19 + $0x434] ss:$24 sps:$4 sm:$0xff]   ;;  %v7108_v28 = vld [vmem:[%s8178_s19 + $0x428] ss:$24 sps:$4 sm:$0xff]  }
 0x183   : > { %4422 = vmatprep.subr.bf16.mxu0 %v7035_v29  ;;  %v7111_v29 = vld [vmem:[%s8178_s19 + $0x430] ss:$24 sps:$4 sm:$0xff]  }
 0x185   : > { %4177 = vmatpush1.bf16.msra.mxu1 %v7030_v30  ;;  %v7116_v30 = vld [vmem:[%s8178_s19 + $0x45c] ss:$24 sps:$4 sm:$0xff]  }
 0x186   : > { %4423 = vmatpush1.bf16.msra.mxu0 %v7033_v31  ;;  %4178 = vmatprep.subr.bf16.mxu1 %v7038_v32  ;;  %v7119_v31 = vld [vmem:[%s8178_s19 + $0x464] ss:$24 sps:$4 sm:$0xff]   ;;  %v7114_v32 = vld [vmem:[%s8178_s19 + $0x458] ss:$24 sps:$4 sm:$0xff]  }
 0x187   : > { %4424 = vmatprep.subr.bf16.mxu0 %v7041_v33  ;;  %v7117_v33 = vld [vmem:[%s8178_s19 + $0x460] ss:$24 sps:$4 sm:$0xff]  }
 0x189   : > { %4179 = vmatpush1.bf16.msra.mxu1 %v7036_v36  ;;  %v7122_v36 = vld [vmem:[%s8178_s19 + $0x48c] ss:$24 sps:$4 sm:$0xff]  }
 0x18a   : > { %4425 = vmatpush1.bf16.msra.mxu0 %v7039_v37  ;;  %4180 = vmatprep.subr.bf16.mxu1 %v7044_v38  ;;  %v7125_v37 = vld [vmem:[%s8178_s19 + $0x494] ss:$24 sps:$4 sm:$0xff]   ;;  %v7120_v38 = vld [vmem:[%s8178_s19 + $0x488] ss:$24 sps:$4 sm:$0xff]  }
 0x18b   : > { %4426 = vmatprep.subr.bf16.mxu0 %v7047_v39  ;;  %v7123_v39 = vld [vmem:[%s8178_s19 + $0x490] ss:$24 sps:$4 sm:$0xff]  }
 0x18d   : > { %4181 = vmatpush1.bf16.msra.mxu1 %v7042_v52  ;;  %v7128_v52 = vld [vmem:[%s8178_s19 + $0x4bc] ss:$24 sps:$4 sm:$0xff]  }
 0x18e   : > { %4427 = vmatpush1.bf16.msra.mxu0 %v7045_v41  ;;  %4182 = vmatprep.subr.bf16.mxu1 %v7050_v42  ;;  %v7131_v41 = vld [vmem:[%s8178_s19 + $0x4c4] ss:$24 sps:$4 sm:$0xff]   ;;  %v7126_v42 = vld [vmem:[%s8178_s19 + $0x4b8] ss:$24 sps:$4 sm:$0xff]  }
 0x18f   : > { %4428 = vmatprep.subr.bf16.mxu0 %v7053_v43  ;;  %v7129_v43 = vld [vmem:[%s8178_s19 + $0x4c0] ss:$24 sps:$4 sm:$0xff]  }
 0x191   : > { %4183 = vmatpush1.bf16.msra.mxu1 %v7048_v44  ;;  %v7134_v44 = vld [vmem:[%s8178_s19 + $0x4ec] ss:$24 sps:$4 sm:$0xff]  }
 0x192   : > { %4429 = vmatpush1.bf16.msra.mxu0 %v7051_v45  ;;  %4184 = vmatprep.subr.bf16.mxu1 %v7056_v46  ;;  %v7137_v45 = vld [vmem:[%s8178_s19 + $0x4f4] ss:$24 sps:$4 sm:$0xff]   ;;  %v7132_v46 = vld [vmem:[%s8178_s19 + $0x4e8] ss:$24 sps:$4 sm:$0xff]  }
 0x193   : > { %4430 = vmatprep.subr.bf16.mxu0 %v7059_v48  ;;  %v7135_v48 = vld [vmem:[%s8178_s19 + $0x4f0] ss:$24 sps:$4 sm:$0xff]  }
 0x195   : > { %4185 = vmatpush1.bf16.msra.mxu1 %v7054_v50  ;;  %v7140_v50 = vld [vmem:[%s8178_s19 + $0x51c] ss:$24 sps:$4 sm:$0xff]  }
 0x196   : > { %4431 = vmatpush1.bf16.msra.mxu0 %v7057_v51  ;;  %4186 = vmatprep.subr.bf16.mxu1 %v7062_v53  ;;  %v7143_v51 = vld [vmem:[%s8178_s19 + $0x524] ss:$24 sps:$4 sm:$0xff]   ;;  %v7138_v53 = vld [vmem:[%s8178_s19 + $0x518] ss:$24 sps:$4 sm:$0xff]  }
 0x197   : > { %4432 = vmatprep.subr.bf16.mxu0 %v7065_v55  ;;  %v7141_v55 = vld [vmem:[%s8178_s19 + $0x520] ss:$24 sps:$4 sm:$0xff]  }
 0x199   : > { %4187 = vmatpush1.bf16.msra.mxu1 %v7060_v56  ;;  %v7146_v56 = vld [vmem:[%s8178_s19 + $0x54c] ss:$24 sps:$4 sm:$0xff]  }
 0x19a   : > { %4433 = vmatpush1.bf16.msra.mxu0 %v7063_v57  ;;  %4188 = vmatprep.subr.bf16.mxu1 %v7068_v58  ;;  %v7149_v57 = vld [vmem:[%s8178_s19 + $0x554] ss:$24 sps:$4 sm:$0xff]   ;;  %v7144_v58 = vld [vmem:[%s8178_s19 + $0x548] ss:$24 sps:$4 sm:$0xff]  }
 0x19b   : > { %4434 = vmatprep.subr.bf16.mxu0 %v7071_v59  ;;  %v7147_v59 = vld [vmem:[%s8178_s19 + $0x550] ss:$24 sps:$4 sm:$0xff]  }
 0x19d   : > { %4189 = vmatpush1.bf16.msra.mxu1 %v7066_v60  ;;  %v7152_v60 = vld [vmem:[%s8178_s19 + $0x57c] ss:$24 sps:$4 sm:$0xff]  }
 0x19e   : > { %4435 = vmatpush1.bf16.msra.mxu0 %v7069_v61  ;;  %4199 = vmatprep.subr.bf16.mxu1 %v7074_v62  ;;  %v7155_v61 = vld [vmem:[%s8178_s19 + $0x584] ss:$24 sps:$4 sm:$0xff]   ;;  %v7150_v62 = vld [vmem:[%s8178_s19 + $0x578] ss:$24 sps:$4 sm:$0xff]  }
 0x19f   : > { %4445 = vmatprep.subr.bf16.mxu0 %v7077_v0  ;;  %v7153_v0 = vld [vmem:[%s8178_s19 + $0x580] ss:$24 sps:$4 sm:$0xff]  }
 0x1a0   : > { %4191 = vmatmul.mubr.bf16.vlgmr.msra.gmra.mrb[4].mxu1 %v8291_v20 }
 0x1a1   : > { %4437 = vmatmul.mubr.bf16.vlgmr.msra.gmra.mrb[4].mxu0 %v8291_v20  ;;  %4200 = vmatpush1.bf16.msra.mxu1 %v7072_v1  ;;  %v7084_v20 = vld [vmem:[%s8178_s19 + $0x368] ss:$24 sps:$4 sm:$0xff]   ;;  %v7158_v1 = vld [vmem:[%s8178_s19 + $0x5ac] ss:$24 sps:$4 sm:$0xff]  }
 0x1a2   : > { %4446 = vmatpush1.bf16.msra.mxu0 %v7075_v2  ;;  %4201 = vmatprep.subr.bf16.mxu1 %v7080_v63  ;;  %v7161_v2 = vld [vmem:[%s8178_s19 + $0x5b4] ss:$24 sps:$4 sm:$0xff]   ;;  %v7156_v63 = vld [vmem:[%s8178_s19 + $0x5a8] ss:$24 sps:$4 sm:$0xff]  }
 0x1a3   : > { %4447 = vmatprep.subr.bf16.mxu0 %v7083_v3  ;;  %4231 = vmatprep.mubr.bf16.mxu1 %v8302_v25  ;;  %v7159_v3 = vld [vmem:[%s8178_s19 + $0x5b0] ss:$24 sps:$4 sm:$0xff]  }
 0x1a4   : > { %4477 = vmatprep.mubr.bf16.mxu0 %v8302_v25  ;;  %v7098_v25 = vld [vmem:[%s8178_s19 + $0x3cc] ss:$24 sps:$4 sm:$0xff]  }
 0x1a5   : > { %4202 = vmatpush1.bf16.msra.mxu1 %v7078_v5  ;;  %v7164_v5 = vld [vmem:[%s8178_s19 + $0x5dc] ss:$24 sps:$4 sm:$0xff]  }
 0x1a6   : > { %4448 = vmatpush1.bf16.msra.mxu0 %v7081_v7  ;;  %4203 = vmatprep.subr.bf16.mxu1 %v7086_v8  ;;  %v7167_v7 = vld [vmem:[%s8178_s19 + $0x5e4] ss:$24 sps:$4 sm:$0xff]   ;;  %v7162_v8 = vld [vmem:[%s8178_s19 + $0x5d8] ss:$24 sps:$4 sm:$0xff]  }
 0x1a7   : > { %4449 = vmatprep.subr.bf16.mxu0 %v7089_v9  ;;  %v7165_v9 = vld [vmem:[%s8178_s19 + $0x5e0] ss:$24 sps:$4 sm:$0xff]  }
 0x1a9   : > { %4204 = vmatpush1.bf16.msra.mxu1 %v7084_v20  ;;  %v7170_v20 = vld [vmem:[%s8178_s19 + $0x60c] ss:$24 sps:$4 sm:$0xff]  }
 0x1aa   : > { %4450 = vmatpush1.bf16.msra.mxu0 %v7087_v10  ;;  %4205 = vmatprep.subr.bf16.mxu1 %v7092_v11  ;;  %v7173_v10 = vld [vmem:[%s8178_s19 + $0x614] ss:$24 sps:$4 sm:$0xff]   ;;  %v7168_v11 = vld [vmem:[%s8178_s19 + $0x608] ss:$24 sps:$4 sm:$0xff]  }
 0x1ab   : > { %4451 = vmatprep.subr.bf16.mxu0 %v7095_v12  ;;  %v7171_v12 = vld [vmem:[%s8178_s19 + $0x610] ss:$24 sps:$4 sm:$0xff]  }
 0x1ad   : > { %4206 = vmatpush1.bf16.msra.mxu1 %v7090_v13  ;;  %v7176_v13 = vld [vmem:[%s8178_s19 + $0x63c] ss:$24 sps:$4 sm:$0xff]  }
 0x1ae   : > { %4452 = vmatpush1.bf16.msra.mxu0 %v7093_v14  ;;  %4207 = vmatprep.subr.bf16.mxu1 %v7098_v25  ;;  %v7179_v14 = vld [vmem:[%s8178_s19 + $0x644] ss:$24 sps:$4 sm:$0xff]   ;;  %v7174_v25 = vld [vmem:[%s8178_s19 + $0x638] ss:$24 sps:$4 sm:$0xff]  }
 0x1af   : > { %4453 = vmatprep.subr.bf16.mxu0 %v7101_v16  ;;  %v7177_v16 = vld [vmem:[%s8178_s19 + $0x640] ss:$24 sps:$4 sm:$0xff]  }
 0x1b1   : > { %4208 = vmatpush1.bf16.msra.mxu1 %v7096_v17  ;;  %v7182_v17 = vld [vmem:[%s8178_s19 + $0x66c] ss:$24 sps:$4 sm:$0xff]  }
 0x1b2   : > { %4454 = vmatpush1.bf16.msra.mxu0 %v7099_v18  ;;  %4209 = vmatprep.subr.bf16.mxu1 %v7104_v19  ;;  %v7185_v18 = vld [vmem:[%s8178_s19 + $0x674] ss:$24 sps:$4 sm:$0xff]   ;;  %v7183_v19 = vld [vmem:[%s8178_s19 + $0x670] ss:$24 sps:$4 sm:$0xff]  }
 0x1b3   : > { %4455 = vmatprep.subr.bf16.mxu0 %v7107_v22  ;;  %v7188_v22 = vld [vmem:[%s8178_s19 + $0x69c] ss:$24 sps:$4 sm:$0xff]  }
 0x1b5   : > { %4210 = vmatpush1.bf16.msra.mxu1 %v7102_v23  ;;  %v7191_v23 = vld [vmem:[%s8178_s19 + $0x6a4] ss:$24 sps:$4 sm:$0xff]  }
 0x1b6   : > { %4456 = vmatpush1.bf16.msra.mxu0 %v7105_v24  ;;  %4211 = vmatprep.subr.bf16.mxu1 %v7110_v26  ;;  %v7186_v24 = vld [vmem:[%s8178_s19 + $0x698] ss:$24 sps:$4 sm:$0xff]  }
 0x1b7   : > { %4457 = vmatprep.subr.bf16.mxu0 %v7113_v27  ;;  %v7189_v26 = vld [vmem:[%s8178_s19 + $0x6a0] ss:$24 sps:$4 sm:$0xff]   ;;  %v7197_v27 = vld [vmem:[%s8178_s19 + $0x6d4] ss:$24 sps:$4 sm:$0xff]  }
 0x1b9   : > { %4212 = vmatpush1.bf16.msra.mxu1 %v7108_v28  ;;  %v7192_v28 = vld [vmem:[%s8178_s19 + $0x6c8] ss:$24 sps:$4 sm:$0xff]  }
 0x1ba   : > { %4458 = vmatpush1.bf16.msra.mxu0 %v7111_v29  ;;  %4213 = vmatprep.subr.bf16.mxu1 %v7116_v30  ;;  %v7195_v29 = vld [vmem:[%s8178_s19 + $0x6d0] ss:$24 sps:$4 sm:$0xff]   ;;  %v7200_v30 = vld [vmem:[%s8178_s19 + $0x6fc] ss:$24 sps:$4 sm:$0xff]  }
 0x1bb   : > { %4459 = vmatprep.subr.bf16.mxu0 %v7119_v31  ;;  %v7203_v31 = vld [vmem:[%s8178_s19 + $0x704] ss:$24 sps:$4 sm:$0xff]  }
 0x1bd   : > { %4214 = vmatpush1.bf16.msra.mxu1 %v7114_v32  ;;  %v7198_v32 = vld [vmem:[%s8178_s19 + $0x6f8] ss:$24 sps:$4 sm:$0xff]  }
 0x1be   : > { %4460 = vmatpush1.bf16.msra.mxu0 %v7117_v33  ;;  %4215 = vmatprep.subr.bf16.mxu1 %v7122_v36  ;;  %v7201_v33 = vld [vmem:[%s8178_s19 + $0x700] ss:$24 sps:$4 sm:$0xff]   ;;  %v7206_v36 = vld [vmem:[%s8178_s19 + $0x72c] ss:$24 sps:$4 sm:$0xff]  }
 0x1bf   : > { %4461 = vmatprep.subr.bf16.mxu0 %v7125_v37  ;;  %v7209_v37 = vld [vmem:[%s8178_s19 + $0x734] ss:$24 sps:$4 sm:$0xff]  }
 0x1c1   : > { %4216 = vmatpush1.bf16.msra.mxu1 %v7120_v38  ;;  %v7204_v38 = vld [vmem:[%s8178_s19 + $0x728] ss:$24 sps:$4 sm:$0xff]  }
 0x1c2   : > { %4462 = vmatpush1.bf16.msra.mxu0 %v7123_v39  ;;  %4217 = vmatprep.subr.bf16.mxu1 %v7128_v52  ;;  %v7207_v39 = vld [vmem:[%s8178_s19 + $0x730] ss:$24 sps:$4 sm:$0xff]   ;;  %v7212_v52 = vld [vmem:[%s8178_s19 + $0x75c] ss:$24 sps:$4 sm:$0xff]  }
 0x1c3   : > { %4463 = vmatprep.subr.bf16.mxu0 %v7131_v41  ;;  %v7215_v41 = vld [vmem:[%s8178_s19 + $0x764] ss:$24 sps:$4 sm:$0xff]  }
 0x1c5   : > { %4218 = vmatpush1.bf16.msra.mxu1 %v7126_v42  ;;  %v7210_v42 = vld [vmem:[%s8178_s19 + $0x758] ss:$24 sps:$4 sm:$0xff]  }
 0x1c6   : > { %4464 = vmatpush1.bf16.msra.mxu0 %v7129_v43  ;;  %4219 = vmatprep.subr.bf16.mxu1 %v7134_v44  ;;  %v7213_v43 = vld [vmem:[%s8178_s19 + $0x760] ss:$24 sps:$4 sm:$0xff]   ;;  %v7218_v44 = vld [vmem:[%s8178_s19 + $0x78c] ss:$24 sps:$4 sm:$0xff]  }
 0x1c7   : > { %4465 = vmatprep.subr.bf16.mxu0 %v7137_v45  ;;  %v7221_v45 = vld [vmem:[%s8178_s19 + $0x794] ss:$24 sps:$4 sm:$0xff]  }
 0x1c9   : > { %4220 = vmatpush1.bf16.msra.mxu1 %v7132_v46  ;;  %v7216_v46 = vld [vmem:[%s8178_s19 + $0x788] ss:$24 sps:$4 sm:$0xff]  }
 0x1ca   : > { %4466 = vmatpush1.bf16.msra.mxu0 %v7135_v48  ;;  %4221 = vmatprep.subr.bf16.mxu1 %v7140_v50  ;;  %v7219_v48 = vld [vmem:[%s8178_s19 + $0x790] ss:$24 sps:$4 sm:$0xff]   ;;  %v7224_v50 = vld [vmem:[%s8178_s19 + $0x7bc] ss:$24 sps:$4 sm:$0xff]  }
 0x1cb   : > { %4467 = vmatprep.subr.bf16.mxu0 %v7143_v51  ;;  %v7227_v51 = vld [vmem:[%s8178_s19 + $0x7c4] ss:$24 sps:$4 sm:$0xff]  }
 0x1cd   : > { %4222 = vmatpush1.bf16.msra.mxu1 %v7138_v53  ;;  %v7222_v53 = vld [vmem:[%s8178_s19 + $0x7b8] ss:$24 sps:$4 sm:$0xff]  }
 0x1ce   : > { %4468 = vmatpush1.bf16.msra.mxu0 %v7141_v55  ;;  %4223 = vmatprep.subr.bf16.mxu1 %v7146_v56  ;;  %v7225_v55 = vld [vmem:[%s8178_s19 + $0x7c0] ss:$24 sps:$4 sm:$0xff]   ;;  %v7230_v56 = vld [vmem:[%s8178_s19 + $0x7ec] ss:$24 sps:$4 sm:$0xff]  }
 0x1cf   : > { %4469 = vmatprep.subr.bf16.mxu0 %v7149_v57  ;;  %v7233_v57 = vld [vmem:[%s8178_s19 + $0x7f4] ss:$24 sps:$4 sm:$0xff]  }
 0x1d1   : > { %4224 = vmatpush1.bf16.msra.mxu1 %v7144_v58  ;;  %v7228_v58 = vld [vmem:[%s8178_s19 + $0x7e8] ss:$24 sps:$4 sm:$0xff]  }
 0x1d2   : > { %4470 = vmatpush1.bf16.msra.mxu0 %v7147_v59  ;;  %4225 = vmatprep.subr.bf16.mxu1 %v7152_v60  ;;  %v7231_v59 = vld [vmem:[%s8178_s19 + $0x7f0] ss:$24 sps:$4 sm:$0xff]   ;;  %v7236_v60 = vld [vmem:[%s8178_s19 + $0x81c] ss:$24 sps:$4 sm:$0xff]  }
 0x1d3   : > { %4471 = vmatprep.subr.bf16.mxu0 %v7155_v61  ;;  %v7239_v61 = vld [vmem:[%s8178_s19 + $0x824] ss:$24 sps:$4 sm:$0xff]  }
 0x1d5   : > { %4226 = vmatpush1.bf16.msra.mxu1 %v7150_v62  ;;  %v7234_v62 = vld [vmem:[%s8178_s19 + $0x818] ss:$24 sps:$4 sm:$0xff]  }
 0x1d6   : > { %4472 = vmatpush1.bf16.msra.mxu0 %v7153_v0  ;;  %4227 = vmatprep.subr.bf16.mxu1 %v7158_v1  ;;  %v7237_v0 = vld [vmem:[%s8178_s19 + $0x820] ss:$24 sps:$4 sm:$0xff]   ;;  %v7242_v1 = vld [vmem:[%s8178_s19 + $0x84c] ss:$24 sps:$4 sm:$0xff]  }
 0x1d7   : > { %4473 = vmatprep.subr.bf16.mxu0 %v7161_v2  ;;  %v7245_v2 = vld [vmem:[%s8178_s19 + $0x854] ss:$24 sps:$4 sm:$0xff]  }
 0x1d9   : > { %4228 = vmatpush1.bf16.msra.mxu1 %v7156_v63  ;;  %v7240_v63 = vld [vmem:[%s8178_s19 + $0x848] ss:$24 sps:$4 sm:$0xff]  }
 0x1da   : > { %4474 = vmatpush1.bf16.msra.mxu0 %v7159_v3  ;;  %4229 = vmatprep.subr.bf16.mxu1 %v7164_v5  ;;  %v7243_v3 = vld [vmem:[%s8178_s19 + $0x850] ss:$24 sps:$4 sm:$0xff]   ;;  %v7248_v5 = vld [vmem:[%s8178_s19 + $0x87c] ss:$24 sps:$4 sm:$0xff]  }
 0x1db   : > { %4475 = vmatprep.subr.bf16.mxu0 %v7167_v7  ;;  %v7251_v7 = vld [vmem:[%s8178_s19 + $0x884] ss:$24 sps:$4 sm:$0xff]  }
 0x1dd   : > { %4230 = vmatpush1.bf16.msra.mxu1 %v7162_v8  ;;  %v7246_v8 = vld [vmem:[%s8178_s19 + $0x878] ss:$24 sps:$4 sm:$0xff]  }
 0x1de   : > { %4476 = vmatpush1.bf16.msra.mxu0 %v7165_v9  ;;  %4240 = vmatprep.subr.bf16.mxu1 %v7170_v20  ;;  %v7249_v9 = vld [vmem:[%s8178_s19 + $0x880] ss:$24 sps:$4 sm:$0xff]   ;;  %v7254_v20 = vld [vmem:[%s8178_s19 + $0x8ac] ss:$24 sps:$4 sm:$0xff]  }
 0x1df   : > { %4486 = vmatprep.subr.bf16.mxu0 %v7173_v10  ;;  %v7257_v10 = vld [vmem:[%s8178_s19 + $0x8b4] ss:$24 sps:$4 sm:$0xff]  }
 0x1e0   : > { %4232 = vmatmul.mubr.bf16.vlgmr.msra.gmra.mrb[4].mxu1 %v8378_v34 }
 0x1e1   : > { %4478 = vmatmul.mubr.bf16.vlgmr.msra.gmra.mrb[4].mxu0 %v8378_v34  ;;  %4241 = vmatpush1.bf16.msra.mxu1 %v7168_v11  ;;  %v7180_v34 = vld [vmem:[%s8178_s19 + $0x668] ss:$24 sps:$4 sm:$0xff]  }
 0x1e2   : > { %4487 = vmatpush1.bf16.msra.mxu0 %v7171_v12  ;;  %4242 = vmatprep.subr.bf16.mxu1 %v7176_v13  ;;  %v7252_v11 = vld [vmem:[%s8178_s19 + $0x8a8] ss:$24 sps:$4 sm:$0xff]   ;;  %v7260_v13 = vld [vmem:[%s8178_s19 + $0x8dc] ss:$24 sps:$4 sm:$0xff]  }
 0x1e3   : > { %4488 = vmatprep.subr.bf16.mxu0 %v7179_v14  ;;  %4272 = vmatprep.mubr.bf16.mxu1 %v8266_v4  ;;  %v7255_v12 = vld [vmem:[%s8178_s19 + $0x8b0] ss:$24 sps:$4 sm:$0xff]   ;;  %v7263_v14 = vld [vmem:[%s8178_s19 + $0x8e4] ss:$24 sps:$4 sm:$0xff]  }
 0x1e4   : > { %4518 = vmatprep.mubr.bf16.mxu0 %v8266_v4  ;;  %v7194_v4 = vld [vmem:[%s8178_s19 + $0x6cc] ss:$24 sps:$4 sm:$0xff]  }
 0x1e5   : > { %4243 = vmatpush1.bf16.msra.mxu1 %v7174_v25  ;;  %v7258_v25 = vld [vmem:[%s8178_s19 + $0x8d8] ss:$24 sps:$4 sm:$0xff]  }
 0x1e6   : > { %4489 = vmatpush1.bf16.msra.mxu0 %v7177_v16  ;;  %4244 = vmatprep.subr.bf16.mxu1 %v7182_v17  ;;  %v7261_v16 = vld [vmem:[%s8178_s19 + $0x8e0] ss:$24 sps:$4 sm:$0xff]   ;;  %v7266_v17 = vld [vmem:[%s8178_s19 + $0x90c] ss:$24 sps:$4 sm:$0xff]  }
 0x1e7   : > { %4490 = vmatprep.subr.bf16.mxu0 %v7185_v18  ;;  %v7269_v18 = vld [vmem:[%s8178_s19 + $0x914] ss:$24 sps:$4 sm:$0xff]  }
 0x1e9   : > { %4245 = vmatpush1.bf16.msra.mxu1 %v7180_v34  ;;  %v7264_v34 = vld [vmem:[%s8178_s19 + $0x908] ss:$24 sps:$4 sm:$0xff]  }
 0x1ea   : > { %4491 = vmatpush1.bf16.msra.mxu0 %v7183_v19  ;;  %4246 = vmatprep.subr.bf16.mxu1 %v7188_v22  ;;  %v7267_v19 = vld [vmem:[%s8178_s19 + $0x910] ss:$24 sps:$4 sm:$0xff]   ;;  %v7272_v22 = vld [vmem:[%s8178_s19 + $0x93c] ss:$24 sps:$4 sm:$0xff]  }
 0x1eb   : > { %4492 = vmatprep.subr.bf16.mxu0 %v7191_v23  ;;  %v7275_v23 = vld [vmem:[%s8178_s19 + $0x944] ss:$24 sps:$4 sm:$0xff]  }
 0x1ed   : > { %4247 = vmatpush1.bf16.msra.mxu1 %v7186_v24  ;;  %v7270_v24 = vld [vmem:[%s8178_s19 + $0x938] ss:$24 sps:$4 sm:$0xff]  }
 0x1ee   : > { %4493 = vmatpush1.bf16.msra.mxu0 %v7189_v26  ;;  %4248 = vmatprep.subr.bf16.mxu1 %v7194_v4  ;;  %v7273_v26 = vld [vmem:[%s8178_s19 + $0x940] ss:$24 sps:$4 sm:$0xff]   ;;  %v7278_v4 = vld [vmem:[%s8178_s19 + $0x96c] ss:$24 sps:$4 sm:$0xff]  }
 0x1ef   : > { %4494 = vmatprep.subr.bf16.mxu0 %v7197_v27  ;;  %v7281_v27 = vld [vmem:[%s8178_s19 + $0x974] ss:$24 sps:$4 sm:$0xff]  }
 0x1f1   : > { %4249 = vmatpush1.bf16.msra.mxu1 %v7192_v28  ;;  %v7279_v28 = vld [vmem:[%s8178_s19 + $0x970] ss:$24 sps:$4 sm:$0xff]  }
 0x1f2   : > { %4495 = vmatpush1.bf16.msra.mxu0 %v7195_v29  ;;  %4250 = vmatprep.subr.bf16.mxu1 %v7200_v30  ;;  %v7284_v29 = vld [vmem:[%s8178_s19 + $0x99c] ss:$24 sps:$4 sm:$0xff]  }
 0x1f3   : > { %4496 = vmatprep.subr.bf16.mxu0 %v7203_v31  ;;  %v7287_v30 = vld [vmem:[%s8178_s19 + $0x9a4] ss:$24 sps:$4 sm:$0xff]   ;;  %v7282_v31 = vld [vmem:[%s8178_s19 + $0x998] ss:$24 sps:$4 sm:$0xff]  }
 0x1f5   : > { %4251 = vmatpush1.bf16.msra.mxu1 %v7198_v32  ;;  %v7285_v32 = vld [vmem:[%s8178_s19 + $0x9a0] ss:$24 sps:$4 sm:$0xff]  }
 0x1f6   : > { %4497 = vmatpush1.bf16.msra.mxu0 %v7201_v33  ;;  %4252 = vmatprep.subr.bf16.mxu1 %v7206_v36  ;;  %v7293_v33 = vld [vmem:[%s8178_s19 + $0x9d4] ss:$24 sps:$4 sm:$0xff]   ;;  %v7288_v36 = vld [vmem:[%s8178_s19 + $0x9c8] ss:$24 sps:$4 sm:$0xff]  }
 0x1f7   : > { %4498 = vmatprep.subr.bf16.mxu0 %v7209_v37  ;;  %v7291_v37 = vld [vmem:[%s8178_s19 + $0x9d0] ss:$24 sps:$4 sm:$0xff]  }
 0x1f9   : > { %4253 = vmatpush1.bf16.msra.mxu1 %v7204_v38  ;;  %v7296_v38 = vld [vmem:[%s8178_s19 + $0x9fc] ss:$24 sps:$4 sm:$0xff]  }
 0x1fa   : > { %4499 = vmatpush1.bf16.msra.mxu0 %v7207_v39  ;;  %4254 = vmatprep.subr.bf16.mxu1 %v7212_v52  ;;  %v7299_v39 = vld [vmem:[%s8178_s19 + $0xa04] ss:$24 sps:$4 sm:$0xff]   ;;  %v7294_v52 = vld [vmem:[%s8178_s19 + $0x9f8] ss:$24 sps:$4 sm:$0xff]  }
 0x1fb   : > { %4500 = vmatprep.subr.bf16.mxu0 %v7215_v41  ;;  %v7297_v41 = vld [vmem:[%s8178_s19 + $0xa00] ss:$24 sps:$4 sm:$0xff]  }
 0x1fd   : > { %4255 = vmatpush1.bf16.msra.mxu1 %v7210_v42  ;;  %v7302_v42 = vld [vmem:[%s8178_s19 + $0xa2c] ss:$24 sps:$4 sm:$0xff]  }
 0x1fe   : > { %4501 = vmatpush1.bf16.msra.mxu0 %v7213_v43  ;;  %4256 = vmatprep.subr.bf16.mxu1 %v7218_v44  ;;  %v7305_v43 = vld [vmem:[%s8178_s19 + $0xa34] ss:$24 sps:$4 sm:$0xff]  }
 0x1ff   : > { %4502 = vmatprep.subr.bf16.mxu0 %v7221_v45 }
 0x201   : > { %4257 = vmatpush1.bf16.msra.mxu1 %v7216_v46 }
 0x202   : > { %4503 = vmatpush1.bf16.msra.mxu0 %v7219_v48  ;;  %4258 = vmatprep.subr.bf16.mxu1 %v7224_v50 }
 0x203   : > { %4504 = vmatprep.subr.bf16.mxu0 %v7227_v51 }
 0x205   : > { %4259 = vmatpush1.bf16.msra.mxu1 %v7222_v53 }
 0x206   : > { %4505 = vmatpush1.bf16.msra.mxu0 %v7225_v55  ;;  %4260 = vmatprep.subr.bf16.mxu1 %v7230_v56  ;;  %v7300_v56 = vld [vmem:[%s8178_s19 + $0xa28] ss:$24 sps:$4 sm:$0xff]  }
 0x207   : > { %4506 = vmatprep.subr.bf16.mxu0 %v7233_v57  ;;  %v7303_v57 = vld [vmem:[%s8178_s19 + $0xa30] ss:$24 sps:$4 sm:$0xff]  }
 0x209   : > { %4261 = vmatpush1.bf16.msra.mxu1 %v7228_v58 }
 0x20a   : > { %4507 = vmatpush1.bf16.msra.mxu0 %v7231_v59  ;;  %4262 = vmatprep.subr.bf16.mxu1 %v7236_v60  ;;  %v7308_v60 = vld [vmem:[%s8178_s19 + $0xa5c] ss:$24 sps:$4 sm:$0xff]  }
 0x20b   : > { %4508 = vmatprep.subr.bf16.mxu0 %v7239_v61  ;;  %v7311_v61 = vld [vmem:[%s8178_s19 + $0xa64] ss:$24 sps:$4 sm:$0xff]  }
 0x20d   : > { %4263 = vmatpush1.bf16.msra.mxu1 %v7234_v62 }
 0x20e   : > { %4509 = vmatpush1.bf16.msra.mxu0 %v7237_v0  ;;  %4264 = vmatprep.subr.bf16.mxu1 %v7242_v1  ;;  %v7306_v0 = vld [vmem:[%s8178_s19 + $0xa58] ss:$24 sps:$4 sm:$0xff]  }
 0x20f   : > { %4510 = vmatprep.subr.bf16.mxu0 %v7245_v2  ;;  %v7309_v1 = vld [vmem:[%s8178_s19 + $0xa60] ss:$24 sps:$4 sm:$0xff]   ;;  %v7314_v2 = vld [vmem:[%s8178_s19 + $0xa8c] ss:$24 sps:$4 sm:$0xff]  }
 0x211   : > { %4265 = vmatpush1.bf16.msra.mxu1 %v7240_v63  ;;  %v7317_v63 = vld [vmem:[%s8178_s19 + $0xa94] ss:$24 sps:$4 sm:$0xff]  }
 0x212   : > { %4511 = vmatpush1.bf16.msra.mxu0 %v7243_v3  ;;  %4266 = vmatprep.subr.bf16.mxu1 %v7248_v5  ;;  %v7312_v3 = vld [vmem:[%s8178_s19 + $0xa88] ss:$24 sps:$4 sm:$0xff]  }
 0x213   : > { %4512 = vmatprep.subr.bf16.mxu0 %v7251_v7  ;;  %v7315_v5 = vld [vmem:[%s8178_s19 + $0xa90] ss:$24 sps:$4 sm:$0xff]   ;;  %v7320_v7 = vld [vmem:[%s8178_s19 + $0xabc] ss:$24 sps:$4 sm:$0xff]  }
 0x215   : > { %4267 = vmatpush1.bf16.msra.mxu1 %v7246_v8  ;;  %v7323_v8 = vld [vmem:[%s8178_s19 + $0xac4] ss:$24 sps:$4 sm:$0xff]  }
 0x216   : > { %4513 = vmatpush1.bf16.msra.mxu0 %v7249_v9  ;;  %4268 = vmatprep.subr.bf16.mxu1 %v7254_v20  ;;  %v7318_v9 = vld [vmem:[%s8178_s19 + $0xab8] ss:$24 sps:$4 sm:$0xff]  }
 0x217   : > { %4514 = vmatprep.subr.bf16.mxu0 %v7257_v10  ;;  %v7321_v20 = vld [vmem:[%s8178_s19 + $0xac0] ss:$24 sps:$4 sm:$0xff]   ;;  %v7326_v10 = vld [vmem:[%s8178_s19 + $0xaec] ss:$24 sps:$4 sm:$0xff]  }
 0x219   : > { %4269 = vmatpush1.bf16.msra.mxu1 %v7252_v11  ;;  %v7329_v11 = vld [vmem:[%s8178_s19 + $0xaf4] ss:$24 sps:$4 sm:$0xff]  }
 0x21a   : > { %4515 = vmatpush1.bf16.msra.mxu0 %v7255_v12  ;;  %4270 = vmatprep.subr.bf16.mxu1 %v7260_v13  ;;  %v7324_v12 = vld [vmem:[%s8178_s19 + $0xae8] ss:$24 sps:$4 sm:$0xff]  }
 0x21b   : > { %4516 = vmatprep.subr.bf16.mxu0 %v7263_v14  ;;  %v7327_v13 = vld [vmem:[%s8178_s19 + $0xaf0] ss:$24 sps:$4 sm:$0xff]   ;;  %v7332_v14 = vld [vmem:[%s8178_s19 + $0xb1c] ss:$24 sps:$4 sm:$0xff]  }
 0x21d   : > { %4271 = vmatpush1.bf16.msra.mxu1 %v7258_v25  ;;  %v7335_v25 = vld [vmem:[%s8178_s19 + $0xb24] ss:$24 sps:$4 sm:$0xff]  }
 0x21e   : > { %4517 = vmatpush1.bf16.msra.mxu0 %v7261_v16  ;;  %4281 = vmatprep.subr.bf16.mxu1 %v7266_v17  ;;  %v7330_v16 = vld [vmem:[%s8178_s19 + $0xb18] ss:$24 sps:$4 sm:$0xff]  }
 0x21f   : > { %4527 = vmatprep.subr.bf16.mxu0 %v7269_v18  ;;  %v7333_v17 = vld [vmem:[%s8178_s19 + $0xb20] ss:$24 sps:$4 sm:$0xff]   ;;  %v7338_v18 = vld [vmem:[%s8178_s19 + $0xb4c] ss:$24 sps:$4 sm:$0xff]  }
 0x220   : > { %4273 = vmatmul.mubr.bf16.vlgmr.msra.gmra.mrb[4].mxu1 %v8284_v15 }
 0x221   : > { %4519 = vmatmul.mubr.bf16.vlgmr.msra.gmra.mrb[4].mxu0 %v8284_v15  ;;  %4282 = vmatpush1.bf16.msra.mxu1 %v7264_v34  ;;  %v7276_v15 = vld [vmem:[%s8178_s19 + $0x968] ss:$24 sps:$4 sm:$0xff]   ;;  %v7341_v34 = vld [vmem:[%s8178_s19 + $0xb54] ss:$24 sps:$4 sm:$0xff]  }
 0x222   : > { %4528 = vmatpush1.bf16.msra.mxu0 %v7267_v19  ;;  %4283 = vmatprep.subr.bf16.mxu1 %v7272_v22  ;;  %v7336_v19 = vld [vmem:[%s8178_s19 + $0xb48] ss:$24 sps:$4 sm:$0xff]  }
 0x223   : > { %4529 = vmatprep.subr.bf16.mxu0 %v7275_v23  ;;  %4313 = vmatprep.mubr.bf16.mxu1 %v8272_v6  ;;  %v7339_v22 = vld [vmem:[%s8178_s19 + $0xb50] ss:$24 sps:$4 sm:$0xff]   ;;  %v7344_v23 = vld [vmem:[%s8178_s19 + $0xb7c] ss:$24 sps:$4 sm:$0xff]  }
 0x224   : > { %4559 = vmatprep.mubr.bf16.mxu0 %v8272_v6  ;;  %v7290_v6 = vld [vmem:[%s8178_s19 + $0x9cc] ss:$24 sps:$4 sm:$0xff]  }
 0x225   : > { %4284 = vmatpush1.bf16.msra.mxu1 %v7270_v24  ;;  %v7347_v24 = vld [vmem:[%s8178_s19 + $0xb84] ss:$24 sps:$4 sm:$0xff]  }
 0x226   : > { %4530 = vmatpush1.bf16.msra.mxu0 %v7273_v26  ;;  %4285 = vmatprep.subr.bf16.mxu1 %v7278_v4  ;;  %v7342_v26 = vld [vmem:[%s8178_s19 + $0xb78] ss:$24 sps:$4 sm:$0xff]  }
 0x227   : > { %4531 = vmatprep.subr.bf16.mxu0 %v7281_v27  ;;  %v7345_v4 = vld [vmem:[%s8178_s19 + $0xb80] ss:$24 sps:$4 sm:$0xff]   ;;  %v7350_v27 = vld [vmem:[%s8178_s19 + $0xbac] ss:$24 sps:$4 sm:$0xff]  }
 0x229   : > { %4286 = vmatpush1.bf16.msra.mxu1 %v7276_v15  ;;  %v7353_v15 = vld [vmem:[%s8178_s19 + $0xbb4] ss:$24 sps:$4 sm:$0xff]  }
 0x22a   : > { %4532 = vmatpush1.bf16.msra.mxu0 %v7279_v28  ;;  %4287 = vmatprep.subr.bf16.mxu1 %v7284_v29  ;;  %v7348_v28 = vld [vmem:[%s8178_s19 + $0xba8] ss:$24 sps:$4 sm:$0xff]  }
 0x22b   : > { %4533 = vmatprep.subr.bf16.mxu0 %v7287_v30  ;;  %v7351_v29 = vld [vmem:[%s8178_s19 + $0xbb0] ss:$24 sps:$4 sm:$0xff]   ;;  %v7356_v30 = vld [vmem:[%s8178_s19 + $0xbdc] ss:$24 sps:$4 sm:$0xff]  }
 0x22d   : > { %4288 = vmatpush1.bf16.msra.mxu1 %v7282_v31  ;;  %v7359_v31 = vld [vmem:[%s8178_s19 + $0xbe4] ss:$24 sps:$4 sm:$0xff]  }
 0x22e   : > { %4534 = vmatpush1.bf16.msra.mxu0 %v7285_v32  ;;  %4289 = vmatprep.subr.bf16.mxu1 %v7290_v6  ;;  %v7354_v32 = vld [vmem:[%s8178_s19 + $0xbd8] ss:$24 sps:$4 sm:$0xff]  }
 0x22f   : > { %4535 = vmatprep.subr.bf16.mxu0 %v7293_v33  ;;  %v7357_v6 = vld [vmem:[%s8178_s19 + $0xbe0] ss:$24 sps:$4 sm:$0xff]   ;;  %v7362_v33 = vld [vmem:[%s8178_s19 + $0xc0c] ss:$24 sps:$4 sm:$0xff]  }
 0x231   : > { %4290 = vmatpush1.bf16.msra.mxu1 %v7288_v36  ;;  %v7365_v36 = vld [vmem:[%s8178_s19 + $0xc14] ss:$24 sps:$4 sm:$0xff]  }
 0x232   : > { %4536 = vmatpush1.bf16.msra.mxu0 %v7291_v37  ;;  %4291 = vmatprep.subr.bf16.mxu1 %v7296_v38  ;;  %v7360_v37 = vld [vmem:[%s8178_s19 + $0xc08] ss:$24 sps:$4 sm:$0xff]  }
 0x233   : > { %4537 = vmatprep.subr.bf16.mxu0 %v7299_v39  ;;  %v4028_v44 = vpop.f32.mrb[0].mxu1  ;;  %v7363_v38 = vld [vmem:[%s8178_s19 + $0xc10] ss:$24 sps:$4 sm:$0xff]   ;;  %v7368_v39 = vld [vmem:[%s8178_s19 + $0xc3c] ss:$24 sps:$4 sm:$0xff]  }
 0x234   : > { %v4151_v45 = vpop.f32.mrb[0].mxu0  ;;  %v4030_v48 = vpop.f32.mrb[1].mxu1 }
 0x235   : > { %v8692_v46 = vadd.f32 %v4151_v45, %v4028_v44  ;;  %v4153_v50 = vpop.f32.mrb[1].mxu0  ;;  %v4032_v53 = vpop.f32.mrb[2].mxu1  ;;  %4292 = vmatpush1.bf16.msra.mxu1 %v7294_v52  ;;  %v7371_v52 = vld [vmem:[%s8178_s19 + $0xc44] ss:$24 sps:$4 sm:$0xff]   ;;  %v7377_v44 = vld [vmem:[%s8178_s19 + $0xc74] ss:$24 sps:$4 sm:$0xff]  }
 0x236   : > { %v8694_v51 = vadd.f32 %v4153_v50, %v4030_v48  ;;  %v4155_v55 = vpop.f32.mrb[2].mxu0  ;;  %4538 = vmatpush1.bf16.msra.mxu0 %v7297_v41  ;;  %v4033_v58 = vpop.f32.mrb[3].mxu1  ;;  %4293 = vmatprep.subr.bf16.mxu1 %v7302_v42  ;;  %v7366_v41 = vld [vmem:[%s8178_s19 + $0xc38] ss:$24 sps:$4 sm:$0xff]   ;;  %v7380_v48 = vld [vmem:[%s8178_s19 + $0xc9c] ss:$24 sps:$4 sm:$0xff]  }
 0x237   : > { %v4156_v59 = vpop.f32.mrb[3].mxu0  ;;  %4539 = vmatprep.subr.bf16.mxu0 %v7305_v43  ;;  %v7369_v42 = vld [vmem:[%s8178_s19 + $0xc40] ss:$24 sps:$4 sm:$0xff]   ;;  %v7374_v43 = vld [vmem:[%s8178_s19 + $0xc6c] ss:$24 sps:$4 sm:$0xff]  }
 0x238   : > { %v4656_v62 = vcombine.low %v8692_v46, %v8694_v51  ;;  %v7375_v45 = vld [vmem:[%s8178_s19 + $0xc70] ss:$24 sps:$4 sm:$0xff]   ;;  %v7383_v50 = vld [vmem:[%s8178_s19 + $0xca4] ss:$24 sps:$4 sm:$0xff]   ;;  %v7381_v55 = vld [vmem:[%s8178_s19 + $0xca0] ss:$24 sps:$4 sm:$0xff]  }
 0x239   : > { %4294 = vmatpush1.bf16.msra.mxu1 %v7300_v56  ;;  %v7378_v53 = vld [vmem:[%s8178_s19 + $0xc98] ss:$24 sps:$4 sm:$0xff]   ;;  %v7389_v56 = vld [vmem:[%s8178_s19 + $0xcd4] ss:$24 sps:$4 sm:$0xff]  }
 0x23a   : > { %4540 = vmatpush1.bf16.msra.mxu0 %v7303_v57  ;;  %4295 = vmatprep.subr.bf16.mxu1 %v7308_v60  ;;  %v7384_v57 = vld [vmem:[%s8178_s19 + $0xcc8] ss:$24 sps:$4 sm:$0xff]   ;;  %v7392_v59 = vld [vmem:[%s8178_s19 + $0xcfc] ss:$24 sps:$4 sm:$0xff]  }
 0x23b   : > { %4541 = vmatprep.subr.bf16.mxu0 %v7311_v61  ;;  %v7387_v58 = vld [vmem:[%s8178_s19 + $0xcd0] ss:$24 sps:$4 sm:$0xff]   ;;  %v7395_v60 = vld [vmem:[%s8178_s19 + $0xd04] ss:$24 sps:$4 sm:$0xff]  }
 0x23c   : > { %v7390_v61 = vld [vmem:[%s8178_s19 + $0xcf8] ss:$24 sps:$4 sm:$0xff]  }
 0x23d   : > { %4296 = vmatpush1.bf16.msra.mxu1 %v7306_v0  ;;  %v7393_v0 = vld [vmem:[%s8178_s19 + $0xd00] ss:$24 sps:$4 sm:$0xff]   ;;  %v7558_v51 = vld [vmem:[#allocation8 + $0x124] ss:$8 sps:$4 sm:$0xff] (!%p6383_p1)  }
 0x23e   : > { %4542 = vmatpush1.bf16.msra.mxu0 %v7309_v1  ;;  %4297 = vmatprep.subr.bf16.mxu1 %v7314_v2  ;;  %v7398_v1 = vld [vmem:[%s8178_s19 + $0xd2c] ss:$24 sps:$4 sm:$0xff]   ;;  %v7557_v46 = vld [vmem:[#allocation8 + $0x110] ss:$8 sps:$4 sm:$0xff] (!%p6383_p1)  }
 0x23f   : > { %4543 = vmatprep.subr.bf16.mxu0 %v7317_v63  ;;  %v7401_v2 = vld [vmem:[%s8178_s19 + $0xd34] ss:$24 sps:$4 sm:$0xff]   ;;  %v7396_v63 = vld [vmem:[%s8178_s19 + $0xd28] ss:$24 sps:$4 sm:$0xff]  }
 0x241   : > { %4298 = vmatpush1.bf16.msra.mxu1 %v7312_v3  ;;  %v7399_v3 = vld [vmem:[%s8178_s19 + $0xd30] ss:$24 sps:$4 sm:$0xff]  }
 0x242   : > { %4544 = vmatpush1.bf16.msra.mxu0 %v7315_v5  ;;  %4299 = vmatprep.subr.bf16.mxu1 %v7320_v7  ;;  %v7404_v5 = vld [vmem:[%s8178_s19 + $0xd5c] ss:$24 sps:$4 sm:$0xff]  }
 0x243   : > { %4545 = vmatprep.subr.bf16.mxu0 %v7323_v8  ;;  %v7407_v7 = vld [vmem:[%s8178_s19 + $0xd64] ss:$24 sps:$4 sm:$0xff]   ;;  %v7402_v8 = vld [vmem:[%s8178_s19 + $0xd58] ss:$24 sps:$4 sm:$0xff]  }
 0x245   : > { %4300 = vmatpush1.bf16.msra.mxu1 %v7318_v9  ;;  %v7405_v9 = vld [vmem:[%s8178_s19 + $0xd60] ss:$24 sps:$4 sm:$0xff]  }
 0x246   : > { %4546 = vmatpush1.bf16.msra.mxu0 %v7321_v20  ;;  %4301 = vmatprep.subr.bf16.mxu1 %v7326_v10  ;;  %v7410_v20 = vld [vmem:[%s8178_s19 + $0xd8c] ss:$24 sps:$4 sm:$0xff]  }
 0x247   : > { %4547 = vmatprep.subr.bf16.mxu0 %v7329_v11  ;;  %v7413_v10 = vld [vmem:[%s8178_s19 + $0xd94] ss:$24 sps:$4 sm:$0xff]   ;;  %v7408_v11 = vld [vmem:[%s8178_s19 + $0xd88] ss:$24 sps:$4 sm:$0xff]  }
 0x249   : > { %4302 = vmatpush1.bf16.msra.mxu1 %v7324_v12  ;;  %v7411_v12 = vld [vmem:[%s8178_s19 + $0xd90] ss:$24 sps:$4 sm:$0xff]  }
 0x24a   : > { %4548 = vmatpush1.bf16.msra.mxu0 %v7327_v13  ;;  %4303 = vmatprep.subr.bf16.mxu1 %v7332_v14  ;;  %v7416_v13 = vld [vmem:[%s8178_s19 + $0xdbc] ss:$24 sps:$4 sm:$0xff]  }
 0x24b   : > { %4549 = vmatprep.subr.bf16.mxu0 %v7335_v25  ;;  %v7419_v14 = vld [vmem:[%s8178_s19 + $0xdc4] ss:$24 sps:$4 sm:$0xff]   ;;  %v7414_v25 = vld [vmem:[%s8178_s19 + $0xdb8] ss:$24 sps:$4 sm:$0xff]  }
 0x24d   : > { %4304 = vmatpush1.bf16.msra.mxu1 %v7330_v16  ;;  %v7417_v16 = vld [vmem:[%s8178_s19 + $0xdc0] ss:$24 sps:$4 sm:$0xff]  }
 0x24e   : > { %4550 = vmatpush1.bf16.msra.mxu0 %v7333_v17  ;;  %4305 = vmatprep.subr.bf16.mxu1 %v7338_v18  ;;  %v7422_v17 = vld [vmem:[%s8178_s19 + $0xdec] ss:$24 sps:$4 sm:$0xff]  }
 0x24f   : > { %4551 = vmatprep.subr.bf16.mxu0 %v7341_v34  ;;  %v7425_v18 = vld [vmem:[%s8178_s19 + $0xdf4] ss:$24 sps:$4 sm:$0xff]   ;;  %v7420_v34 = vld [vmem:[%s8178_s19 + $0xde8] ss:$24 sps:$4 sm:$0xff]  }
 0x251   : > { %4306 = vmatpush1.bf16.msra.mxu1 %v7336_v19  ;;  %v7423_v19 = vld [vmem:[%s8178_s19 + $0xdf0] ss:$24 sps:$4 sm:$0xff]  }
 0x252   : > { %4552 = vmatpush1.bf16.msra.mxu0 %v7339_v22  ;;  %4307 = vmatprep.subr.bf16.mxu1 %v7344_v23  ;;  %v7428_v22 = vld [vmem:[%s8178_s19 + $0xe1c] ss:$24 sps:$4 sm:$0xff]  }
 0x253   : > { %4553 = vmatprep.subr.bf16.mxu0 %v7347_v24  ;;  %v7431_v23 = vld [vmem:[%s8178_s19 + $0xe24] ss:$24 sps:$4 sm:$0xff]   ;;  %v7426_v24 = vld [vmem:[%s8178_s19 + $0xe18] ss:$24 sps:$4 sm:$0xff]  }
 0x255   : > { %4308 = vmatpush1.bf16.msra.mxu1 %v7342_v26  ;;  %v7429_v26 = vld [vmem:[%s8178_s19 + $0xe20] ss:$24 sps:$4 sm:$0xff]  }
 0x256   : > { %4554 = vmatpush1.bf16.msra.mxu0 %v7345_v4  ;;  %4309 = vmatprep.subr.bf16.mxu1 %v7350_v27  ;;  %v7434_v4 = vld [vmem:[%s8178_s19 + $0xe4c] ss:$24 sps:$4 sm:$0xff]  }
 0x257   : > { %4555 = vmatprep.subr.bf16.mxu0 %v7353_v15  ;;  %v7437_v27 = vld [vmem:[%s8178_s19 + $0xe54] ss:$24 sps:$4 sm:$0xff]   ;;  %v7432_v15 = vld [vmem:[%s8178_s19 + $0xe48] ss:$24 sps:$4 sm:$0xff]  }
 0x259   : > { %4310 = vmatpush1.bf16.msra.mxu1 %v7348_v28  ;;  %v7435_v28 = vld [vmem:[%s8178_s19 + $0xe50] ss:$24 sps:$4 sm:$0xff]  }
 0x25a   : > { %4556 = vmatpush1.bf16.msra.mxu0 %v7351_v29  ;;  %4311 = vmatprep.subr.bf16.mxu1 %v7356_v30  ;;  %v7440_v29 = vld [vmem:[%s8178_s19 + $0xe7c] ss:$24 sps:$4 sm:$0xff]  }
 0x25b   : > { %4557 = vmatprep.subr.bf16.mxu0 %v7359_v31  ;;  %v7443_v30 = vld [vmem:[%s8178_s19 + $0xe84] ss:$24 sps:$4 sm:$0xff]   ;;  %v7438_v31 = vld [vmem:[%s8178_s19 + $0xe78] ss:$24 sps:$4 sm:$0xff]  }
 0x25d   : > { %4312 = vmatpush1.bf16.msra.mxu1 %v7354_v32  ;;  %v7441_v32 = vld [vmem:[%s8178_s19 + $0xe80] ss:$24 sps:$4 sm:$0xff]  }
 0x25e   : > { %4558 = vmatpush1.bf16.msra.mxu0 %v7357_v6  ;;  %4322 = vmatprep.subr.bf16.mxu1 %v7362_v33  ;;  %v7446_v6 = vld [vmem:[%s8178_s19 + $0xeac] ss:$24 sps:$4 sm:$0xff]  }
 0x25f   : > { %4568 = vmatprep.subr.bf16.mxu0 %v7365_v36  ;;  %v7449_v33 = vld [vmem:[%s8178_s19 + $0xeb4] ss:$24 sps:$4 sm:$0xff]   ;;  %v7444_v36 = vld [vmem:[%s8178_s19 + $0xea8] ss:$24 sps:$4 sm:$0xff]  }
 0x260   : > { %4314 = vmatmul.mubr.bf16.vlgmr.msra.gmra.mrb[4].mxu1 %v8295_v21 }
 0x261   : > { %4560 = vmatmul.mubr.bf16.vlgmr.msra.gmra.mrb[4].mxu0 %v8295_v21  ;;  %4323 = vmatpush1.bf16.msra.mxu1 %v7360_v37  ;;  %v7372_v21 = vld [vmem:[%s8178_s19 + $0xc68] ss:$24 sps:$4 sm:$0xff]  }
 0x262   : > { %4569 = vmatpush1.bf16.msra.mxu0 %v7363_v38  ;;  %4324 = vmatprep.subr.bf16.mxu1 %v7368_v39  ;;  %v7447_v37 = vld [vmem:[%s8178_s19 + $0xeb0] ss:$24 sps:$4 sm:$0xff]   ;;  %v7452_v38 = vld [vmem:[%s8178_s19 + $0xedc] ss:$24 sps:$4 sm:$0xff]  }
 0x263   : > { %4570 = vmatprep.subr.bf16.mxu0 %v7371_v52  ;;  %4354 = vmatprep.mubr.bf16.mxu1 %v8337_v54  ;;  %v7455_v39 = vld [vmem:[%s8178_s19 + $0xee4] ss:$24 sps:$4 sm:$0xff]   ;;  %v7450_v52 = vld [vmem:[%s8178_s19 + $0xed8] ss:$24 sps:$4 sm:$0xff]  }
 0x264   : > { %4600 = vmatprep.mubr.bf16.mxu0 %v8337_v54  ;;  %v7386_v54 = vld [vmem:[%s8178_s19 + $0xccc] ss:$24 sps:$4 sm:$0xff]  }
 0x265   : > { %4325 = vmatpush1.bf16.msra.mxu1 %v7366_v41  ;;  %v7453_v41 = vld [vmem:[%s8178_s19 + $0xee0] ss:$24 sps:$4 sm:$0xff]  }
 0x266   : > { %4571 = vmatpush1.bf16.msra.mxu0 %v7369_v42  ;;  %4326 = vmatprep.subr.bf16.mxu1 %v7374_v43  ;;  %v7458_v42 = vld [vmem:[%s8178_s19 + $0xf0c] ss:$24 sps:$4 sm:$0xff]  }
 0x267   : > { %4572 = vmatprep.subr.bf16.mxu0 %v7377_v44  ;;  %v7461_v43 = vld [vmem:[%s8178_s19 + $0xf14] ss:$24 sps:$4 sm:$0xff]   ;;  %v7456_v44 = vld [vmem:[%s8178_s19 + $0xf08] ss:$24 sps:$4 sm:$0xff]  }
 0x269   : > { %4327 = vmatpush1.bf16.msra.mxu1 %v7372_v21  ;;  %v7459_v21 = vld [vmem:[%s8178_s19 + $0xf10] ss:$24 sps:$4 sm:$0xff]  }
 0x26a   : > { %4573 = vmatpush1.bf16.msra.mxu0 %v7375_v45  ;;  %4328 = vmatprep.subr.bf16.mxu1 %v7380_v48  ;;  %v7464_v45 = vld [vmem:[%s8178_s19 + $0xf3c] ss:$24 sps:$4 sm:$0xff]  }
 0x26b   : > { %4574 = vmatprep.subr.bf16.mxu0 %v7383_v50  ;;  %v7467_v48 = vld [vmem:[%s8178_s19 + $0xf44] ss:$24 sps:$4 sm:$0xff]   ;;  %v7462_v50 = vld [vmem:[%s8178_s19 + $0xf38] ss:$24 sps:$4 sm:$0xff]  }
 0x26d   : > { %4329 = vmatpush1.bf16.msra.mxu1 %v7378_v53  ;;  %v7465_v53 = vld [vmem:[%s8178_s19 + $0xf40] ss:$24 sps:$4 sm:$0xff]  }
 0x26e   : > { %4575 = vmatpush1.bf16.msra.mxu0 %v7381_v55  ;;  %4330 = vmatprep.subr.bf16.mxu1 %v7386_v54  ;;  %v7470_v55 = vld [vmem:[%s8178_s19 + $0xf6c] ss:$24 sps:$4 sm:$0xff]  }
 0x26f   : > { %4576 = vmatprep.subr.bf16.mxu0 %v7389_v56  ;;  %v7473_v54 = vld [vmem:[%s8178_s19 + $0xf74] ss:$24 sps:$4 sm:$0xff]   ;;  %v7471_v56 = vld [vmem:[%s8178_s19 + $0xf70] ss:$24 sps:$4 sm:$0xff]  }
 0x271   : > { %4331 = vmatpush1.bf16.msra.mxu1 %v7384_v57  ;;  %v7476_v57 = vld [vmem:[%s8178_s19 + $0xf9c] ss:$24 sps:$4 sm:$0xff]  }
 0x272   : > { %4577 = vmatpush1.bf16.msra.mxu0 %v7387_v58  ;;  %4332 = vmatprep.subr.bf16.mxu1 %v7392_v59  ;;  %v7479_v58 = vld [vmem:[%s8178_s19 + $0xfa4] ss:$24 sps:$4 sm:$0xff]   ;;  %v7474_v59 = vld [vmem:[%s8178_s19 + $0xf98] ss:$24 sps:$4 sm:$0xff]  }
 0x273   : > { %4578 = vmatprep.subr.bf16.mxu0 %v7395_v60  ;;  %v7477_v60 = vld [vmem:[%s8178_s19 + $0xfa0] ss:$24 sps:$4 sm:$0xff]  }
 0x275   : > { %4333 = vmatpush1.bf16.msra.mxu1 %v7390_v61  ;;  %v7485_v61 = vld [vmem:[%s8178_s19 + $0xfd4] ss:$24 sps:$4 sm:$0xff]  }
 0x276   : > { %4579 = vmatpush1.bf16.msra.mxu0 %v7393_v0  ;;  %4334 = vmatprep.subr.bf16.mxu1 %v7398_v1  ;;  %v7480_v0 = vld [vmem:[%s8178_s19 + $0xfc8] ss:$24 sps:$4 sm:$0xff]  }
 0x277   : > { %4580 = vmatprep.subr.bf16.mxu0 %v7401_v2  ;;  %v7483_v1 = vld [vmem:[%s8178_s19 + $0xfd0] ss:$24 sps:$4 sm:$0xff]   ;;  %v7488_v2 = vld [vmem:[%s8178_s19 + $0xffc] ss:$24 sps:$4 sm:$0xff]  }
 0x279   : > { %4335 = vmatpush1.bf16.msra.mxu1 %v7396_v63  ;;  %v7491_v63 = vld [vmem:[%s8178_s19 + $0x1004] ss:$24 sps:$4 sm:$0xff]  }
 0x27a   : > { %4581 = vmatpush1.bf16.msra.mxu0 %v7399_v3  ;;  %4336 = vmatprep.subr.bf16.mxu1 %v7404_v5  ;;  %v7486_v3 = vld [vmem:[%s8178_s19 + $0xff8] ss:$24 sps:$4 sm:$0xff]  }
 0x27b   : > { %4582 = vmatprep.subr.bf16.mxu0 %v7407_v7  ;;  %v7489_v5 = vld [vmem:[%s8178_s19 + $0x1000] ss:$24 sps:$4 sm:$0xff]   ;;  %v7494_v7 = vld [vmem:[%s8178_s19 + $0x102c] ss:$24 sps:$4 sm:$0xff]  }
 0x27d   : > { %4337 = vmatpush1.bf16.msra.mxu1 %v7402_v8  ;;  %v7497_v8 = vld [vmem:[%s8178_s19 + $0x1034] ss:$24 sps:$4 sm:$0xff]  }
 0x27e   : > { %4583 = vmatpush1.bf16.msra.mxu0 %v7405_v9  ;;  %4338 = vmatprep.subr.bf16.mxu1 %v7410_v20  ;;  %v7492_v9 = vld [vmem:[%s8178_s19 + $0x1028] ss:$24 sps:$4 sm:$0xff]  }
 0x27f   : > { %4584 = vmatprep.subr.bf16.mxu0 %v7413_v10  ;;  %v7495_v20 = vld [vmem:[%s8178_s19 + $0x1030] ss:$24 sps:$4 sm:$0xff]   ;;  %v7500_v10 = vld [vmem:[%s8178_s19 + $0x105c] ss:$24 sps:$4 sm:$0xff]  }
 0x281   : > { %4339 = vmatpush1.bf16.msra.mxu1 %v7408_v11  ;;  %v7503_v11 = vld [vmem:[%s8178_s19 + $0x1064] ss:$24 sps:$4 sm:$0xff]  }
 0x282   : > { %4585 = vmatpush1.bf16.msra.mxu0 %v7411_v12  ;;  %4340 = vmatprep.subr.bf16.mxu1 %v7416_v13  ;;  %v7498_v12 = vld [vmem:[%s8178_s19 + $0x1058] ss:$24 sps:$4 sm:$0xff]  }
 0x283   : > { %4586 = vmatprep.subr.bf16.mxu0 %v7419_v14  ;;  %v7501_v13 = vld [vmem:[%s8178_s19 + $0x1060] ss:$24 sps:$4 sm:$0xff]   ;;  %v7506_v14 = vld [vmem:[%s8178_s19 + $0x108c] ss:$24 sps:$4 sm:$0xff]  }
 0x285   : > { %4341 = vmatpush1.bf16.msra.mxu1 %v7414_v25  ;;  %v7509_v25 = vld [vmem:[%s8178_s19 + $0x1094] ss:$24 sps:$4 sm:$0xff]  }
 0x286   : > { %4587 = vmatpush1.bf16.msra.mxu0 %v7417_v16  ;;  %4342 = vmatprep.subr.bf16.mxu1 %v7422_v17  ;;  %v7504_v16 = vld [vmem:[%s8178_s19 + $0x1088] ss:$24 sps:$4 sm:$0xff]  }
 0x287   : > { %4588 = vmatprep.subr.bf16.mxu0 %v7425_v18  ;;  %v7507_v17 = vld [vmem:[%s8178_s19 + $0x1090] ss:$24 sps:$4 sm:$0xff]   ;;  %v7512_v18 = vld [vmem:[%s8178_s19 + $0x10bc] ss:$24 sps:$4 sm:$0xff]  }
 0x289   : > { %4343 = vmatpush1.bf16.msra.mxu1 %v7420_v34  ;;  %v7515_v34 = vld [vmem:[%s8178_s19 + $0x10c4] ss:$24 sps:$4 sm:$0xff]  }
 0x28a   : > { %4589 = vmatpush1.bf16.msra.mxu0 %v7423_v19  ;;  %4344 = vmatprep.subr.bf16.mxu1 %v7428_v22  ;;  %v7510_v19 = vld [vmem:[%s8178_s19 + $0x10b8] ss:$24 sps:$4 sm:$0xff]  }
 0x28b   : > { %4590 = vmatprep.subr.bf16.mxu0 %v7431_v23  ;;  %v7513_v22 = vld [vmem:[%s8178_s19 + $0x10c0] ss:$24 sps:$4 sm:$0xff]   ;;  %v7518_v23 = vld [vmem:[%s8178_s19 + $0x10ec] ss:$24 sps:$4 sm:$0xff]  }
 0x28d   : > { %4345 = vmatpush1.bf16.msra.mxu1 %v7426_v24  ;;  %v7521_v24 = vld [vmem:[%s8178_s19 + $0x10f4] ss:$24 sps:$4 sm:$0xff]  }
 0x28e   : > { %4591 = vmatpush1.bf16.msra.mxu0 %v7429_v26  ;;  %4346 = vmatprep.subr.bf16.mxu1 %v7434_v4  ;;  %v7516_v26 = vld [vmem:[%s8178_s19 + $0x10e8] ss:$24 sps:$4 sm:$0xff]  }
 0x28f   : > { %4592 = vmatprep.subr.bf16.mxu0 %v7437_v27  ;;  %v7519_v4 = vld [vmem:[%s8178_s19 + $0x10f0] ss:$24 sps:$4 sm:$0xff]   ;;  %v7524_v27 = vld [vmem:[%s8178_s19 + $0x111c] ss:$24 sps:$4 sm:$0xff]  }
 0x291   : > { %4347 = vmatpush1.bf16.msra.mxu1 %v7432_v15  ;;  %v7527_v15 = vld [vmem:[%s8178_s19 + $0x1124] ss:$24 sps:$4 sm:$0xff]  }
 0x292   : > { %4593 = vmatpush1.bf16.msra.mxu0 %v7435_v28  ;;  %4348 = vmatprep.subr.bf16.mxu1 %v7440_v29  ;;  %v7522_v28 = vld [vmem:[%s8178_s19 + $0x1118] ss:$24 sps:$4 sm:$0xff]  }
 0x293   : > { %4594 = vmatprep.subr.bf16.mxu0 %v7443_v30  ;;  %v7525_v29 = vld [vmem:[%s8178_s19 + $0x1120] ss:$24 sps:$4 sm:$0xff]   ;;  %v7530_v30 = vld [vmem:[%s8178_s19 + $0x114c] ss:$24 sps:$4 sm:$0xff]  }
 0x295   : > { %4349 = vmatpush1.bf16.msra.mxu1 %v7438_v31  ;;  %v7533_v31 = vld [vmem:[%s8178_s19 + $0x1154] ss:$24 sps:$4 sm:$0xff]  }
 0x296   : > { %4595 = vmatpush1.bf16.msra.mxu0 %v7441_v32  ;;  %4350 = vmatprep.subr.bf16.mxu1 %v7446_v6  ;;  %v7528_v32 = vld [vmem:[%s8178_s19 + $0x1148] ss:$24 sps:$4 sm:$0xff]  }
 0x297   : > { %4596 = vmatprep.subr.bf16.mxu0 %v7449_v33  ;;  %v7531_v6 = vld [vmem:[%s8178_s19 + $0x1150] ss:$24 sps:$4 sm:$0xff]   ;;  %v7536_v33 = vld [vmem:[%s8178_s19 + $0x117c] ss:$24 sps:$4 sm:$0xff]  }
 0x299   : > { %4351 = vmatpush1.bf16.msra.mxu1 %v7444_v36  ;;  %v7539_v36 = vld [vmem:[%s8178_s19 + $0x1184] ss:$24 sps:$4 sm:$0xff]  }
 0x29a   : > { %4597 = vmatpush1.bf16.msra.mxu0 %v7447_v37  ;;  %4352 = vmatprep.subr.bf16.mxu1 %v7452_v38  ;;  %v7534_v37 = vld [vmem:[%s8178_s19 + $0x1178] ss:$24 sps:$4 sm:$0xff]  }
 0x29b   : > { %4598 = vmatprep.subr.bf16.mxu0 %v7455_v39  ;;  %v7537_v38 = vld [vmem:[%s8178_s19 + $0x1180] ss:$24 sps:$4 sm:$0xff]   ;;  %v7542_v39 = vld [vmem:[%s8178_s19 + $0x11ac] ss:$24 sps:$4 sm:$0xff]  }
 0x29d   : > { %4353 = vmatpush1.bf16.msra.mxu1 %v7450_v52  ;;  %v7545_v52 = vld [vmem:[%s8178_s19 + $0x11b4] ss:$24 sps:$4 sm:$0xff]  }
 0x29e   : > { %4599 = vmatpush1.bf16.msra.mxu0 %v7453_v41  ;;  %4363 = vmatprep.subr.bf16.mxu1 %v7458_v42  ;;  %v7540_v41 = vld [vmem:[%s8178_s19 + $0x11a8] ss:$24 sps:$4 sm:$0xff]  }
 0x29f   : > { %4609 = vmatprep.subr.bf16.mxu0 %v7461_v43  ;;  %v7543_v42 = vld [vmem:[%s8178_s19 + $0x11b0] ss:$24 sps:$4 sm:$0xff]   ;;  %v7548_v43 = vld [vmem:[%s8178_s19 + $0x11dc] ss:$24 sps:$4 sm:$0xff]  }
 0x2a0   : > { %4355 = vmatmul.mubr.bf16.vlgmr.msra.gmra.mrb[4].mxu1 %v8382_v35 }
 0x2a1   : > { %4601 = vmatmul.mubr.bf16.vlgmr.msra.gmra.mrb[4].mxu0 %v8382_v35  ;;  %4364 = vmatpush1.bf16.msra.mxu1 %v7456_v44  ;;  %v7468_v35 = vld [vmem:[%s8178_s19 + $0xf68] ss:$24 sps:$4 sm:$0xff]   ;;  %v7551_v44 = vld [vmem:[%s8178_s19 + $0x11e4] ss:$24 sps:$4 sm:$0xff]  }
 0x2a2   : > { %4610 = vmatpush1.bf16.msra.mxu0 %v7459_v21  ;;  %4365 = vmatprep.subr.bf16.mxu1 %v7464_v45  ;;  %v7546_v21 = vld [vmem:[%s8178_s19 + $0x11d8] ss:$24 sps:$4 sm:$0xff]  }
 0x2a3   : > { %4611 = vmatprep.subr.bf16.mxu0 %v7467_v48  ;;  %4395 = vmatprep.mubr.bf16.mxu1 %v8390_v40  ;;  %v7549_v45 = vld [vmem:[%s8178_s19 + $0x11e0] ss:$24 sps:$4 sm:$0xff]   ;;  %v7943_v48 = vmov 1983009808  }
 0x2a4   : > { %4641 = vmatprep.mubr.bf16.mxu0 %v8390_v40  ;;  %v7482_v40 = vld [vmem:[%s8178_s19 + $0xfcc] ss:$24 sps:$4 sm:$0xff]  }
 0x2a5   : > { %4366 = vmatpush1.bf16.msra.mxu1 %v7462_v50  ;;  %v4659_v50 = vunpack.c.l.s4 %v7943_v48  ;;  %v7579_v48 = vld [vmem:[#allocation8 + $0x194] ss:$8 sps:$4 sm:$0xff] (!%p6383_p1)  }
 0x2a6   : > { %4612 = vmatpush1.bf16.msra.mxu0 %v7465_v53  ;;  %4367 = vmatprep.subr.bf16.mxu1 %v7470_v55 }
 0x2a7   : > { %4613 = vmatprep.subr.bf16.mxu0 %v7473_v54  ;;  %v4660_v53 = vunpack.c.0.s8 %v4659_v50  ;;  %v7621_v50 = vld [vmem:[#allocation8 + $0x44] ss:$8 sps:$4 sm:$0xff] (!%p6383_p1)  }
 0x2a9   : > { %4368 = vmatpush1.bf16.msra.mxu1 %v7468_v35  ;;  %v8875_v55 = vsub.s32 %v4660_v53, %v8242_v47 }
 0x2aa   : > { %4614 = vmatpush1.bf16.msra.mxu0 %v7471_v56  ;;  %4369 = vmatprep.subr.bf16.mxu1 %v7476_v57 }
 0x2ab   : > { %4615 = vmatprep.subr.bf16.mxu0 %v7479_v58 }
 0x2ad   : > { %4370 = vmatpush1.bf16.msra.mxu1 %v7474_v59 }
 0x2ae   : > { %4616 = vmatpush1.bf16.msra.mxu0 %v7477_v60  ;;  %4371 = vmatprep.subr.bf16.mxu1 %v7482_v40 }
 0x2af   : > { %4617 = vmatprep.subr.bf16.mxu0 %v7485_v61  ;;  %v366_v61 = vld [vmem:[#allocation2 + $0x8] sm:$0xf] }
 0x2b1   : > { %4372 = vmatpush1.bf16.msra.mxu1 %v7480_v0 }
 0x2b2   : > { %4618 = vmatpush1.bf16.msra.mxu0 %v7483_v1  ;;  %4373 = vmatprep.subr.bf16.mxu1 %v7488_v2 }
 0x2b3   : > { %4619 = vmatprep.subr.bf16.mxu0 %v7491_v63 }
 0x2b5   : > { %4374 = vmatpush1.bf16.msra.mxu1 %v7486_v3  ;;  %v365_v3 = vld [vmem:[#allocation2] sm:$0xff] }
 0x2b6   : > { %4620 = vmatpush1.bf16.msra.mxu0 %v7489_v5  ;;  %4375 = vmatprep.subr.bf16.mxu1 %v7494_v7 }
 0x2b7   : > { %4621 = vmatprep.subr.bf16.mxu0 %v7497_v8 }
 0x2b9   : > { %4376 = vmatpush1.bf16.msra.mxu1 %v7492_v9  ;;  %v7552_v9 = vld [vmem:[#allocation8 + $0x104] ss:$8 sps:$4 sm:$0xff] (!%p6383_p1)  }
 0x2ba   : > { %4622 = vmatpush1.bf16.msra.mxu0 %v7495_v20  ;;  %4377 = vmatprep.subr.bf16.mxu1 %v7500_v10  ;;  %v7554_v20 = vld [vmem:[#allocation8 + $0x100] ss:$8 sps:$4 sm:$0xff] (!%p6383_p1)   ;;  %v7555_v10 = vld [vmem:[#allocation8 + $0x114] ss:$8 sps:$4 sm:$0xff] (!%p6383_p1)  }
 0x2bb   : > { %4623 = vmatprep.subr.bf16.mxu0 %v7503_v11  ;;  %v7561_v11 = vld [vmem:[#allocation8 + $0x134] ss:$8 sps:$4 sm:$0xff] (!%p6383_p1)  }
 0x2bd   : > { %4378 = vmatpush1.bf16.msra.mxu1 %v7498_v12  ;;  %v7563_v12 = vld [vmem:[#allocation8 + $0x130] ss:$8 sps:$4 sm:$0xff] (!%p6383_p1)  }
 0x2be   : > { %4624 = vmatpush1.bf16.msra.mxu0 %v7501_v13  ;;  %4379 = vmatprep.subr.bf16.mxu1 %v7506_v14  ;;  %v7564_v13 = vld [vmem:[#allocation8 + $0x144] ss:$8 sps:$4 sm:$0xff] (!%p6383_p1)   ;;  %v7566_v14 = vld [vmem:[#allocation8 + $0x140] ss:$8 sps:$4 sm:$0xff] (!%p6383_p1)  }
 0x2bf   : > { %4625 = vmatprep.subr.bf16.mxu0 %v7509_v25  ;;  %v7567_v25 = vld [vmem:[#allocation8 + $0x154] ss:$8 sps:$4 sm:$0xff] (!%p6383_p1)  }
 0x2c1   : > { %4380 = vmatpush1.bf16.msra.mxu1 %v7504_v16  ;;  %v7569_v16 = vld [vmem:[#allocation8 + $0x150] ss:$8 sps:$4 sm:$0xff] (!%p6383_p1)  }
 0x2c2   : > { %4626 = vmatpush1.bf16.msra.mxu0 %v7507_v17  ;;  %4381 = vmatprep.subr.bf16.mxu1 %v7512_v18  ;;  %v7570_v17 = vld [vmem:[#allocation8 + $0x164] ss:$8 sps:$4 sm:$0xff] (!%p6383_p1)  }
 0x2c3   : > { %4627 = vmatprep.subr.bf16.mxu0 %v7515_v34  ;;  %v7597_v18 = vld [vmem:[#allocation8 + $0x4] ss:$8 sps:$4 sm:$0xff] (!%p6383_p1)   ;;  %v4697_v34 = vsub.s32 (!%p6383_p1), 0, %v8242_v47 }
 0x2c5   : > { %4382 = vmatpush1.bf16.msra.mxu1 %v7510_v19  ;;  %v4701_v19 = vsub.s32 (!%p6383_p1), 1, %v8242_v47 }
 0x2c6   : > { %4628 = vmatpush1.bf16.msra.mxu0 %v7513_v22  ;;  %4383 = vmatprep.subr.bf16.mxu1 %v7518_v23  ;;  %v7599_v22 = vld [vmem:[#allocation8] ss:$8 sps:$4 sm:$0xff] (!%p6383_p1)   ;;  %v4705_v23 = vsub.s32 (!%p6383_p1), 2, %v8242_v47 }
 0x2c7   : > { %4629 = vmatprep.subr.bf16.mxu0 %v7521_v24  ;;  %v4709_v24 = vsub.s32 (!%p6383_p1), 3, %v8242_v47 }
 0x2c9   : > { %4384 = vmatpush1.bf16.msra.mxu1 %v7516_v26  ;;  %v7572_v26 = vld [vmem:[#allocation8 + $0x160] ss:$8 sps:$4 sm:$0xff] (!%p6383_p1)  }
 0x2ca   : > { %4630 = vmatpush1.bf16.msra.mxu0 %v7519_v4  ;;  %4385 = vmatprep.subr.bf16.mxu1 %v7524_v27  ;;  %v7603_v4 = vld [vmem:[#allocation8 + $0x14] ss:$8 sps:$4 sm:$0xff] (!%p6383_p1)   ;;  %v7605_v27 = vld [vmem:[#allocation8 + $0x10] ss:$8 sps:$4 sm:$0xff] (!%p6383_p1)  }
 0x2cb   : > { %4631 = vmatprep.subr.bf16.mxu0 %v7527_v15  ;;  %v7573_v15 = vld [vmem:[#allocation8 + $0x174] ss:$8 sps:$4 sm:$0xff] (!%p6383_p1)  }
 0x2cd   : > { %4386 = vmatpush1.bf16.msra.mxu1 %v7522_v28  ;;  %v8888_v28 = vld [vmem:[#allocation6] sm:$0x3f] (!%p6383_p1) }
 0x2ce   : > { %4632 = vmatpush1.bf16.msra.mxu0 %v7525_v29  ;;  %4387 = vmatprep.subr.bf16.mxu1 %v7530_v30  ;;  %v7575_v29 = vld [vmem:[#allocation8 + $0x170] ss:$8 sps:$4 sm:$0xff] (!%p6383_p1)   ;;  %v4698_v30 = vrot.slane (!%p6383_p1), %v8888_v28, %v4697_v34 }
 0x2cf   : > { %4633 = vmatprep.subr.bf16.mxu0 %v7533_v31  ;;  %v4702_v31 = vrot.slane (!%p6383_p1), %v8888_v28, %v4701_v19 }
 0x2d1   : > { %4388 = vmatpush1.bf16.msra.mxu1 %v7528_v32  ;;  %v4706_v32 = vrot.slane (!%p6383_p1), %v8888_v28, %v4705_v23  ;;  %v7653_v23 = vld [vmem:[#allocation8 + $0x90] ss:$8 sps:$4 sm:$0xff] (!%p6383_p1)  }
 0x2d2   : > { %4634 = vmatpush1.bf16.msra.mxu0 %v7531_v6  ;;  %4389 = vmatprep.subr.bf16.mxu1 %v7536_v33  ;;  %v4710_v6 = vrot.slane (!%p6383_p1), %v8888_v28, %v4709_v24  ;;  %v7609_v33 = vld [vmem:[#allocation8 + $0x24] ss:$8 sps:$4 sm:$0xff] (!%p6383_p1)  }
 0x2d3   : > { %4635 = vmatprep.subr.bf16.mxu0 %v7539_v36  ;;  %v4719_v36 = vcombine.low (!%p6383_p1), %v4698_v30, %v4702_v31  ;;  %v7657_v24 = vld [vmem:[#allocation8 + $0xa4] ss:$8 sps:$4 sm:$0xff] (!%p6383_p1)   ;;  %v7606_v31 = vld [vmem:[#allocation8 + $0x200] ss:$8 sps:$4 sm:$0xff] (!%p6383_p1)  }
 0x2d5   : > { %4390 = vmatpush1.bf16.msra.mxu1 %v7534_v37  ;;  %v4720_v37 = vcombine.low (!%p6383_p1), %v4706_v32, %v4710_v6  ;;  %v7614_v32 = vld [vmem:[#allocation8 + $0x214] ss:$8 sps:$4 sm:$0xff] (!%p6383_p1)   ;;  %v7665_v6 = vld [vmem:[#allocation8 + $0xb0] ss:$8 sps:$4 sm:$0xff] (!%p6383_p1)  }
 0x2d6   : > { %4636 = vmatpush1.bf16.msra.mxu0 %v7537_v38  ;;  %4391 = vmatprep.subr.bf16.mxu1 %v7542_v39  ;;  %v7611_v38 = vld [vmem:[#allocation8 + $0x20] ss:$8 sps:$4 sm:$0xff] (!%p6383_p1)   ;;  %v7576_v39 = vld [vmem:[#allocation8 + $0x184] ss:$8 sps:$4 sm:$0xff] (!%p6383_p1)  }
 0x2d7   : > { %4637 = vmatprep.subr.bf16.mxu0 %v7545_v52  ;;  %v7578_v52 = vld [vmem:[#allocation8 + $0x180] ss:$8 sps:$4 sm:$0xff] (!%p6383_p1)  }
 0x2d9   : > { %4392 = vmatpush1.bf16.msra.mxu1 %v7540_v41  ;;  %v4727_v41 = vrot.slane (!%p6383_p1), %v4719_v36, %v8875_v55  ;;  %v7669_v36 = vld [vmem:[#allocation8 + $0xc4] ss:$8 sps:$4 sm:$0xff] (!%p6383_p1)  }
 0x2da   : > { %4638 = vmatpush1.bf16.msra.mxu0 %v7543_v42  ;;  %4393 = vmatprep.subr.bf16.mxu1 %v7548_v43  ;;  %v4734_v42 = vrot.slane (!%p6383_p1), %v4720_v37, %v8875_v55  ;;  %v7615_v43 = vld [vmem:[#allocation8 + $0x34] ss:$8 sps:$4 sm:$0xff] (!%p6383_p1)  }
 0x2db   : > { %4639 = vmatprep.subr.bf16.mxu0 %v7551_v44 }
 0x2dd   : > { %4394 = vmatpush1.bf16.msra.mxu1 %v7546_v21  ;;  %v4735_v21 = vcombine.low (!%p6383_p1), %v4727_v41, %v4734_v42  ;;  %v7671_v41 = vld [vmem:[#allocation8 + $0xc0] ss:$8 sps:$4 sm:$0xff] (!%p6383_p1)   ;;  %v7675_v42 = vld [vmem:[#allocation8 + $0xd4] ss:$8 sps:$4 sm:$0xff] (!%p6383_p1)  }
 0x2de   : > { %4640 = vmatpush1.bf16.msra.mxu0 %v7549_v45  ;;  %5375 = vmatprep.subr.bf16.mxu1 (!%p6383_p1), %v7597_v18  ;;  %v7617_v45 = vld [vmem:[#allocation8 + $0x30] ss:$8 sps:$4 sm:$0xff] (!%p6383_p1)   ;;  %v7596_v18 = vld [vmem:[#allocation8 + $0x1e0] ss:$8 sps:$4 sm:$0xff] (!%p6383_p1)  }
 0x2df   : > { %5416 = vmatprep.subr.bf16.mxu0 (!%p6383_p1), %v7552_v9  ;;  %v7639_v9 = vld [vmem:[#allocation8 + $0x74] ss:$8 sps:$4 sm:$0xff] (!%p6383_p1)  }
 0x2e0   : > { %4396 = vmatmul.mubr.bf16.vlgmr.msra.gmra.mrb[4].mxu1 %v8458_v49 }
 0x2e1   : > { %4642 = vmatmul.mubr.bf16.vlgmr.msra.gmra.mrb[4].mxu0 %v8458_v49  ;;  %v4664_v49 = vrot.slane %v4656_v62, %v8875_v55  ;;  %v7560_v62 = vld [vmem:[#allocation8 + $0x120] ss:$8 sps:$4 sm:$0xff] (!%p6383_p1)   ;;  %5376 = vmatpush1.bf16.msra.mxu1 (!%p6383_p1), %v7599_v22  ;;  %v7600_v22 = vld [vmem:[#allocation8 + $0x1f4] ss:$8 sps:$4 sm:$0xff] (!%p6383_p1)  }
 0x2e2   : > { %5417 = vmatpush1.bf16.msra.mxu0 (!%p6383_p1), %v7554_v20  ;;  %5377 = vmatprep.subr.bf16.mxu1 (!%p6383_p1), %v7603_v4  ;;  %v7590_v20 = vld [vmem:[#allocation8 + $0x1c0] ss:$8 sps:$4 sm:$0xff] (!%p6383_p1)   ;;  %v7602_v4 = vld [vmem:[#allocation8 + $0x1f0] ss:$8 sps:$4 sm:$0xff] (!%p6383_p1)  }
 0x2e3   : > { %5418 = vmatprep.subr.bf16.mxu0 (!%p6383_p1), %v7555_v10  ;;  %v7591_v10 = vld [vmem:[#allocation8 + $0x1d4] ss:$8 sps:$4 sm:$0xff] (!%p6383_p1)  }
 0x2e5   : > { %5378 = vmatpush1.bf16.msra.mxu1 (!%p6383_p1), %v7605_v27  ;;  %v7608_v27 = vld [vmem:[#allocation8 + $0x204] ss:$8 sps:$4 sm:$0xff] (!%p6383_p1)  }
 0x2e6   : > { %5419 = vmatpush1.bf16.msra.mxu0 (!%p6383_p1), %v7557_v46  ;;  %5379 = vmatprep.subr.bf16.mxu1 (!%p6383_p1), %v7609_v33  ;;  %v7641_v46 = vld [vmem:[#allocation8 + $0x70] ss:$8 sps:$4 sm:$0xff] (!%p6383_p1)  }
 0x2e7   : > { %5420 = vmatprep.subr.bf16.mxu0 (!%p6383_p1), %v7558_v51  ;;  %v7645_v51 = vld [vmem:[#allocation8 + $0x84] ss:$8 sps:$4 sm:$0xff] (!%p6383_p1)  }
 0x2e9   : > { %5380 = vmatpush1.bf16.msra.mxu1 (!%p6383_p1), %v7611_v38  ;;  %v7612_v38 = vld [vmem:[#allocation8 + $0x210] ss:$8 sps:$4 sm:$0xff] (!%p6383_p1)  }
 0x2ea   : > { %5421 = vmatpush1.bf16.msra.mxu0 (!%p6383_p1), %v7560_v62  ;;  %5381 = vmatprep.subr.bf16.mxu1 (!%p6383_p1), %v7615_v43  ;;  %v4713_v62 = vsub.s32 (!%p6383_p1), 4, %v8242_v47 }
 0x2eb   : > { %5422 = vmatprep.subr.bf16.mxu0 (!%p6383_p1), %v7561_v11  ;;  %v4717_v11 = vsub.s32 (!%p6383_p1), 5, %v8242_v47 }
 0x2ed   : > { %5382 = vmatpush1.bf16.msra.mxu1 (!%p6383_p1), %v7617_v45 }
 0x2ee   : > { %5423 = vmatpush1.bf16.msra.mxu0 (!%p6383_p1), %v7563_v12  ;;  %5383 = vmatprep.subr.bf16.mxu1 (!%p6383_p1), %v7621_v50  ;;  %v7593_v12 = vld [vmem:[#allocation8 + $0x1d0] ss:$8 sps:$4 sm:$0xff] (!%p6383_p1)  }
 0x2ef   : > { %5424 = vmatprep.subr.bf16.mxu0 (!%p6383_p1), %v7564_v13  ;;  %v7594_v13 = vld [vmem:[#allocation8 + $0x1e4] ss:$8 sps:$4 sm:$0xff] (!%p6383_p1)   ;;  %v7624_v50 = vld [vmem:[#allocation8 + $0x230] ss:$8 sps:$4 sm:$0xff] (!%p6383_p1)  }
 0x2f2   : > { %5425 = vmatpush1.bf16.msra.mxu0 (!%p6383_p1), %v7566_v14  ;;  %v7647_v14 = vld [vmem:[#allocation8 + $0x80] ss:$8 sps:$4 sm:$0xff] (!%p6383_p1)  }
 0x2f3   : > { %5426 = vmatprep.subr.bf16.mxu0 (!%p6383_p1), %v7567_v25  ;;  %v7651_v25 = vld [vmem:[#allocation8 + $0x94] ss:$8 sps:$4 sm:$0xff] (!%p6383_p1)  }
 0x2f6   : > { %5427 = vmatpush1.bf16.msra.mxu0 (!%p6383_p1), %v7569_v16  ;;  %v4714_v16 = vrot.slane (!%p6383_p1), %v8888_v28, %v4713_v62  ;;  %v7660_v62 = vld [vmem:[#allocation8 + $0x290] ss:$8 sps:$4 sm:$0xff] (!%p6383_p1)  }
 0x2f7   : > { %5428 = vmatprep.subr.bf16.mxu0 (!%p6383_p1), %v7570_v17  ;;  %v4718_v17 = vrot.slane (!%p6383_p1), %v8888_v28, %v4717_v11  ;;  %v7668_v11 = vld [vmem:[#allocation8 + $0x2a4] ss:$8 sps:$4 sm:$0xff] (!%p6383_p1)  }
 0x2fa   : > { %5429 = vmatpush1.bf16.msra.mxu0 (!%p6383_p1), %v7572_v26  ;;  %v4736_v26 = vcombine.low (!%p6383_p1), %v4714_v16, %v4718_v17  ;;  %v7680_v16 = vld [vmem:[#allocation8 + $0x2c4] ss:$8 sps:$4 sm:$0xff] (!%p6383_p1)   ;;  %v7678_v17 = vld [vmem:[#allocation8 + $0x2c0] ss:$8 sps:$4 sm:$0xff] (!%p6383_p1)  }
 0x2fb   : > { %5430 = vmatprep.subr.bf16.mxu0 (!%p6383_p1), %v7573_v15  ;;  %v7659_v15 = vld [vmem:[#allocation8 + $0xa0] ss:$8 sps:$4 sm:$0xff] (!%p6383_p1)  }
 0x2fc   : > { %v4743_v30 = vrot.slane (!%p6383_p1), %v4736_v26, %v8875_v55  ;;  %v7695_v26 = vld [vmem:[#allocation8 + $0x2f4] ss:$8 sps:$4 sm:$0xff] (!%p6383_p1)  }
 0x2fe   : > { %5431 = vmatpush1.bf16.msra.mxu0 (!%p6383_p1), %v7575_v29  ;;  %v7663_v29 = vld [vmem:[#allocation8 + $0xb4] ss:$8 sps:$4 sm:$0xff] (!%p6383_p1)  }
 0x2ff   : > { %5432 = vmatprep.subr.bf16.mxu0 (!%p6383_p1), %v7576_v39  ;;  %v7620_v39 = vld [vmem:[#allocation8 + $0x224] ss:$8 sps:$4 sm:$0xff] (!%p6383_p1)  }
 0x302   : > { %5433 = vmatpush1.bf16.msra.mxu0 (!%p6383_p1), %v7578_v52 }
 0x303   : > { %5434 = vmatprep.subr.bf16.mxu0 (!%p6383_p1), %v7579_v48  ;;  %v7677_v48 = vld [vmem:[#allocation8 + $0xd0] ss:$8 sps:$4 sm:$0xff] (!%p6383_p1)  }
 0x3b3   : > { %v4397_v54 = vpop.f32.mrb[4].mxu1 }
 0x3b4   : > { %v4643_v35 = vpop.f32.mrb[4].mxu0  ;;  %v4399_v56 = vpop.f32.mrb[5].mxu1 }
 0x3b5   : > { %v4645_v57 = vpop.f32.mrb[5].mxu0  ;;  %v4657_v58 = vcombine.low %v4397_v54, %v4399_v56  ;;  %v4401_v60 = vpop.f32.mrb[6].mxu1  ;;  %v7581_v54 = vld [vmem:[#allocation8 + $0x190] ss:$8 sps:$4 sm:$0xff] (!%p6383_p1)   ;;  %v7623_v56 = vld [vmem:[#allocation8 + $0x40] ss:$8 sps:$4 sm:$0xff] (!%p6383_p1)  }
 0x3b6   : > { %v4673_v59 = vcombine.low %v4643_v35, %v4645_v57  ;;  %v4647_v40 = vpop.f32.mrb[6].mxu0  ;;  %v4402_v0 = vpop.f32.mrb[7].mxu1  ;;  %5435 = vmatpush1.bf16.msra.mxu0 (!%p6383_p1), %v7581_v54  ;;  %5384 = vmatpush1.bf16.msra.mxu1 (!%p6383_p1), %v7623_v56  ;;  %v7683_v54 = vld [vmem:[#allocation8 + $0xe0] ss:$8 sps:$4 sm:$0xff] (!%p6383_p1)  }
 0x3b7   : > { %v4648_v1 = vpop.f32.mrb[7].mxu0  ;;  %v4671_v2 = vrot.slane %v4657_v58, %v8875_v55  ;;  %4690 = sbr.rel (%p6383_p1) target bundleno = 1792 (0x700), region = 76  ;;  %v7582_v58 = vld [vmem:[#allocation8 + $0x1a4] ss:$8 sps:$4 sm:$0xff] (!%p6383_p1)   ;;  %v7630_v56 = vld [vmem:[#allocation8 + $0x240] ss:$8 sps:$4 sm:$0xff] (!%p6383_p1)  }
 0x3b8   : > { %v4680_v63 = vrot.slane %v4673_v59, %v8875_v55  ;;  %v7627_v59 = vld [vmem:[#allocation8 + $0x54] ss:$8 sps:$4 sm:$0xff] (!%p6383_p1)   ;;  %5436 = vmatprep.subr.bf16.mxu0 (!%p6383_p1), %v7582_v58 }
 0x3b9   : > { %v4672_v5 = vcombine.low %v4664_v49, %v4671_v2  ;;  %v7585_v49 = vld [vmem:[#allocation8 + $0x1b4] ss:$8 sps:$4 sm:$0xff] (!%p6383_p1)   ;;  %5385 = vmatprep.subr.bf16.mxu1 (!%p6383_p1), %v7627_v59  ;;  %v7629_v2 = vld [vmem:[#allocation8 + $0x50] ss:$8 sps:$4 sm:$0xff] (!%p6383_p1)  }
 0x3ba   : > { %v4684_v7 = vadd.f32 %v4680_v63, %v366_v61  ;;  %v7584_v61 = vld [vmem:[#allocation8 + $0x1a0] ss:$8 sps:$4 sm:$0xff] (!%p6383_p1)   ;;  %5386 = vmatpush1.bf16.msra.mxu1 (!%p6383_p1), %v7629_v2  ;;  %v7638_v58 = vld [vmem:[#allocation8 + $0x254] ss:$8 sps:$4 sm:$0xff] (!%p6383_p1)   ;;  %v7689_v59 = vld [vmem:[#allocation8 + $0xf0] ss:$8 sps:$4 sm:$0xff] (!%p6383_p1)  }
 0x3bb   : > { %v4683_v8 = vadd.f32 %v4672_v5, %v365_v3  ;;  %v7633_v3 = vld [vmem:[#allocation8 + $0x64] ss:$8 sps:$4 sm:$0xff] (!%p6383_p1)   ;;  %5437 = vmatpush1.bf16.msra.mxu0 (!%p6383_p1), %v7584_v61  ;;  %v7587_v5 = vld [vmem:[#allocation8 + $0x1b0] ss:$8 sps:$4 sm:$0xff] (!%p6383_p1)   ;;  %v7642_v2 = vld [vmem:[#allocation8 + $0x260] ss:$8 sps:$4 sm:$0xff] (!%p6383_p1)  }
 0x3bc   : > { %4686 = vst [vmem:[#allocation2 + $0x8] sm:$0xf] %v4684_v7  ;;  %5438 = vmatprep.subr.bf16.mxu0 (!%p6383_p1), %v7585_v49  ;;  %v7588_v7 = vld [vmem:[#allocation8 + $0x1c4] ss:$8 sps:$4 sm:$0xff] (!%p6383_p1)   ;;  %5387 = vmatprep.subr.bf16.mxu1 (!%p6383_p1), %v7633_v3  ;;  %v7698_v49 = vld [vmem:[%s9019_s5 + $0x48] sm:$0xff] (!%p6383_p1)  }
 0x3bd   : > { %4685 = vst [vmem:[#allocation2] sm:$0xff] %v4683_v8  ;;  %v7635_v8 = vld [vmem:[#allocation8 + $0x60] ss:$8 sps:$4 sm:$0xff] (!%p6383_p1)  }
 0x3be   : > { %5388 = vmatpush1.bf16.msra.mxu1 %v7635_v8  ;;  %v7700_v3 = vld [vmem:[%s9019_s5 + $0x50] sm:$0xff]  }
 0x3bf   : > { %5439 = vmatpush1.bf16.msra.mxu0 %v7587_v5  ;;  %5389 = vmatprep.subr.bf16.mxu1 %v7639_v9  ;;  %v7648_v5 = vld [vmem:[#allocation8 + $0x270] ss:$8 sps:$4 sm:$0xff]   ;;  %v7701_v8 = vld [vmem:[%s9019_s5 + $0x10] sm:$0xff]   ;;  %v7702_v9 = vld [vmem:[%s9019_s5 + $0x58] sm:$0xff]  }
 0x3c0   : > { %5440 = vmatprep.subr.bf16.mxu0 %v7588_v7  ;;  %v7656_v7 = vld [vmem:[#allocation8 + $0x284] ss:$8 sps:$4 sm:$0xff]  }
 0x3c2   : > { %5390 = vmatpush1.bf16.msra.mxu1 %v7641_v46  ;;  %v7703_v46 = vld [vmem:[%s9019_s5 + $0x18] sm:$0xff]  }
 0x3c3   : > { %5441 = vmatpush1.bf16.msra.mxu0 %v7590_v20  ;;  %5391 = vmatprep.subr.bf16.mxu1 %v7645_v51  ;;  %v4692_v33 = vld [vmem:[#allocation2 + $0x8] sm:$0xf]  ;;  %v7654_v20 = vld [vmem:[#allocation8 + $0x280] ss:$8 sps:$4 sm:$0xff]   ;;  %v7704_v51 = vld [vmem:[%s9019_s5 + $0x60] sm:$0xff]  }
 0x3c4   : > { %v4691_v44 = vld [vmem:[#allocation2] sm:$0xff]  ;;  %5442 = vmatprep.subr.bf16.mxu0 %v7591_v10  ;;  %v4747_v37 = vadd.f32 %v4743_v30, %v4692_v33  ;;  %v7708_v30 = vld [vmem:[%s9019_s5 + $0x70] sm:$0xff]  }
 0x3c5   : > { %v4746_v53 = vadd.f32 %v4735_v21, %v4691_v44  ;;  %v7618_v44 = vld [vmem:[#allocation8 + $0x220] ss:$8 sps:$4 sm:$0xff]   ;;  %v7626_v21 = vld [vmem:[#allocation8 + $0x234] ss:$8 sps:$4 sm:$0xff]  }
 0x3c6   : > { %5392 = vmatpush1.bf16.msra.mxu1 %v7647_v14  ;;  %v8918_v52 = vrot.slane %v4747_v37, %v8875_v55  ;;  %v7662_v10 = vld [vmem:[#allocation8 + $0x294] ss:$8 sps:$4 sm:$0xff]  }
 0x3c7   : > { %v4750_v35 = vcombine.high %v4746_v53, %v4746_v53  ;;  %v8901_v57 = vrot.slane %v4746_v53, %v8875_v55  ;;  %5443 = vmatpush1.bf16.msra.mxu0 %v7593_v12  ;;  %5393 = vmatprep.subr.bf16.mxu1 %v7651_v25  ;;  %v7681_v53 = vld [vmem:[#allocation8 + $0xe4] ss:$8 sps:$4 sm:$0xff]   ;;  %v7674_v14 = vld [vmem:[#allocation8 + $0x2b4] ss:$8 sps:$4 sm:$0xff]   ;;  %v7672_v25 = vld [vmem:[#allocation8 + $0x2b0] ss:$8 sps:$4 sm:$0xff]  }
 0x3c8   : > { %5444 = vmatprep.subr.bf16.mxu0 %v7594_v13  ;;  %v4774_v43 = vcombine.high %v8918_v52, %v8918_v52  ;;  %v7705_v12 = vld [vmem:[%s9019_s5 + $0x20] sm:$0xff]   ;;  %v7666_v13 = vld [vmem:[#allocation8 + $0x2a0] ss:$8 sps:$4 sm:$0xff]  }
 0x3c9   : > { %v8904_v60 = vrot.slane %v4750_v35, %v8875_v55  ;;  %v4765_v40 = vcombine.high %v8901_v57, %v8901_v57  ;;  %v7632_v55 = vld [vmem:[#allocation8 + $0x244] ss:$8 sps:$4 sm:$0xff]   ;;  %v7687_v35 = vld [vmem:[#allocation8 + $0xf4] ss:$8 sps:$4 sm:$0xff]   ;;  %v4781_v61 = vpack.c.bf16 %v8901_v57, %v8901_v57 }
 0x3ca   : > { %5394 = vmatpush1.bf16.msra.mxu1 %v7653_v23  ;;  %v4786_v45 = vpack.c.bf16 %v4774_v43, %v4774_v43  ;;  %v7699_v57 = vld [vmem:[%s9019_s5 + $0x8] sm:$0xff]   ;;  %v7692_v23 = vld [vmem:[#allocation8 + $0x2e4] ss:$8 sps:$4 sm:$0xff]  }
 0x3cb   : > { %v4766_v0 = vcombine.high %v8904_v60, %v8904_v60  ;;  %v4782_v1 = vpack.c.bf16 %v4765_v40, %v4765_v40  ;;  %5445 = vmatpush1.bf16.msra.mxu0 %v7596_v18  ;;  %5395 = vmatprep.subr.bf16.mxu1 %v7657_v24  ;;  %v4783_v28 = vpack.c.bf16 %v8904_v60, %v8904_v60  ;;  %v7696_v60 = vld [vmem:[%s9019_s5 + $0x40] sm:$0xff]   ;;  %v7690_v24 = vld [vmem:[#allocation8 + $0x2e0] ss:$8 sps:$4 sm:$0xff]  }
 0x3cc   : > { %5446 = vmatprep.subr.bf16.mxu0 %v7600_v22  ;;  %v7636_v40 = vld [vmem:[#allocation8 + $0x250] ss:$8 sps:$4 sm:$0xff]   ;;  %v7686_v18 = vld [vmem:[#allocation8 + $0x2d4] ss:$8 sps:$4 sm:$0xff]  }
 0x3cd   : > { %v4784_v63 = vpack.c.bf16 %v4766_v0, %v4766_v0  ;;  %5407 = vmatprep.mubr.bf16.mxu1 %v4782_v1  ;;  %v7644_v0 = vld [vmem:[#allocation8 + $0x264] ss:$8 sps:$4 sm:$0xff]   ;;  %v7684_v22 = vld [vmem:[#allocation8 + $0x2d0] ss:$8 sps:$4 sm:$0xff]  }
 0x3ce   : > { %5396 = vmatpush1.bf16.msra.mxu1 %v7659_v15  ;;  %v7697_v1 = vld [vmem:[%s9019_s5] sm:$0xff]   ;;  %v7706_v15 = vld [vmem:[%s9019_s5 + $0x68] sm:$0xff]  }
 0x3cf   : > { %5448 = vmatprep.mubr.bf16.mxu0 %v4784_v63  ;;  %5447 = vmatpush1.bf16.msra.mxu0 %v7602_v4  ;;  %v7650_v63 = vld [vmem:[#allocation8 + $0x274] ss:$8 sps:$4 sm:$0xff]   ;;  %v7693_v4 = vld [vmem:[#allocation8 + $0x2f0] ss:$8 sps:$4 sm:$0xff]  }
 0x3d0   : > { %5457 = vmatprep.subr.bf16.mxu0 %v7608_v27  ;;  %5397 = vmatprep.subr.bf16.mxu1 %v7663_v29  ;;  %v4785_v27 = vpack.c.bf16 %v8918_v52, %v8918_v52  ;;  %v7707_v29 = vld [vmem:[%s9019_s5 + $0x28] sm:$0xff]  }
 0x3d2   : > { %5449 = vmatmul.mubr.bf16.vlgmr.msra.gmra.mrb[0].mxu0 %v4783_v28  ;;  %5398 = vmatpush1.bf16.msra.mxu1 %v7665_v6  ;;  %v7709_v28 = vld [vmem:[%s9019_s5 + $0x30] sm:$0xff]  }
 0x3d3   : > { %5458 = vmatpush1.bf16.msra.mxu0 %v7606_v31  ;;  %5399 = vmatprep.subr.bf16.mxu1 %v7669_v36  ;;  %v7710_v31 = vld [vmem:[%s9019_s5 + $0x78] sm:$0xff]   ;;  %v4883_v6 = vld [vmem:[#allocation9] sm:$0x3] }
 0x3d4   : > { %5459 = vmatprep.subr.bf16.mxu0 %v7614_v32  ;;  %5489 = vmatprep.mubr.bf16.mxu0 %v4786_v45  ;;  %v7711_v32 = vld [vmem:[%s9019_s5 + $0x38] sm:$0xff]   ;;  %v4888_v33 = vrot.slane %v4883_v6, %v4697_v34 }
 0x3d6   : > { %5400 = vmatpush1.bf16.msra.mxu1 %v7671_v41  ;;  %v4892_v41 = vrot.slane %v4883_v6, %v4701_v19 }
 0x3d7   : > { %5460 = vmatpush1.bf16.msra.mxu0 %v7612_v38  ;;  %5401 = vmatprep.subr.bf16.mxu1 %v7675_v42 }
 0x3d8   : > { %5461 = vmatprep.subr.bf16.mxu0 %v7620_v39 }
 0x3da   : > { %5402 = vmatpush1.bf16.msra.mxu1 %v7677_v48 }
 0x3db   : > { %5462 = vmatpush1.bf16.msra.mxu0 %v7618_v44  ;;  %5403 = vmatprep.subr.bf16.mxu1 %v7681_v53 }
 0x3dc   : > { %5463 = vmatprep.subr.bf16.mxu0 %v7626_v21 }
 0x3de   : > { %5404 = vmatpush1.bf16.msra.mxu1 %v7683_v54 }
 0x3df   : > { %5464 = vmatpush1.bf16.msra.mxu0 %v7624_v50  ;;  %5405 = vmatprep.subr.bf16.mxu1 %v7687_v35  ;;  %v6480_v35 = vld [vmem:[#allocation11] ss:$0 sm:$0xff] }
 0x3e0   : > { %5465 = vmatprep.subr.bf16.mxu0 %v7632_v55 }
 0x3e2   : > { %5406 = vmatpush1.bf16.msra.mxu1 %v7689_v59 }
 0x3e3   : > { %5466 = vmatpush1.bf16.msra.mxu0 %v7630_v56  ;;  %6501 = vmatprep.subr.bf16.mxu1 %v7696_v60 }
 0x3e4   : > { %5467 = vmatprep.subr.bf16.mxu0 %v7638_v58 }
 0x3e5   : > { %5408 = vmatmul.mubr.bf16.vlgmr.msra.gmra.mrb[0].mxu1 %v4781_v61 }
 0x3e6   : > { %6502 = vmatpush3.bf16.msra.mxu1 %v7697_v1 }
 0x3e7   : > { %5468 = vmatpush1.bf16.msra.mxu0 %v7636_v40  ;;  %6503 = vmatprep.subr.bf16.mxu1 %v7698_v49 }
 0x3e8   : > { %5469 = vmatprep.subr.bf16.mxu0 %v7644_v0 }
 0x3ea   : > { %6504 = vmatpush3.bf16.msra.mxu1 %v7699_v57 }
 0x3eb   : > { %5470 = vmatpush1.bf16.msra.mxu0 %v7642_v2  ;;  %6505 = vmatprep.subr.bf16.mxu1 %v7700_v3 }
 0x3ec   : > { %5471 = vmatprep.subr.bf16.mxu0 %v7650_v63 }
 0x3ee   : > { %6506 = vmatpush3.bf16.msra.mxu1 %v7701_v8 }
 0x3ef   : > { %5472 = vmatpush1.bf16.msra.mxu0 %v7648_v5  ;;  %6507 = vmatprep.subr.bf16.mxu1 %v7702_v9 }
 0x3f0   : > { %5473 = vmatprep.subr.bf16.mxu0 %v7656_v7 }
 0x3f2   : > { %6508 = vmatpush3.bf16.msra.mxu1 %v7703_v46 }
 0x3f3   : > { %5474 = vmatpush1.bf16.msra.mxu0 %v7654_v20  ;;  %6509 = vmatprep.subr.bf16.mxu1 %v7704_v51 }
 0x3f4   : > { %5475 = vmatprep.subr.bf16.mxu0 %v7662_v10 }
 0x3f6   : > { %6510 = vmatpush3.bf16.msra.mxu1 %v7705_v12 }
 0x3f7   : > { %5476 = vmatpush1.bf16.msra.mxu0 %v7660_v62  ;;  %6511 = vmatprep.subr.bf16.mxu1 %v7706_v15 }
 0x3f8   : > { %5477 = vmatprep.subr.bf16.mxu0 %v7668_v11 }
 0x3fa   : > { %6512 = vmatpush3.bf16.msra.mxu1 %v7707_v29 }
 0x3fb   : > { %5478 = vmatpush1.bf16.msra.mxu0 %v7666_v13  ;;  %6513 = vmatprep.subr.bf16.mxu1 %v7708_v30 }
 0x3fc   : > { %5479 = vmatprep.subr.bf16.mxu0 %v7674_v14 }
 0x3fe   : > { %6514 = vmatpush3.bf16.msra.mxu1 %v7709_v28 }
 0x3ff   : > { %5480 = vmatpush1.bf16.msra.mxu0 %v7672_v25  ;;  %6515 = vmatprep.subr.bf16.mxu1 %v7710_v31 }
 0x400   : > { %5481 = vmatprep.subr.bf16.mxu0 %v7680_v16 }
 0x402   : > { %6516 = vmatpush3.bf16.msra.mxu1 %v7711_v32 }
 0x403   : > { %5482 = vmatpush1.bf16.msra.mxu0 %v7678_v17 }
 0x404   : > { %5483 = vmatprep.subr.bf16.mxu0 %v7686_v18 }
 0x407   : > { %5484 = vmatpush1.bf16.msra.mxu0 %v7684_v22 }
 0x408   : > { %5485 = vmatprep.subr.bf16.mxu0 %v7692_v23 }
 0x40b   : > { %5486 = vmatpush1.bf16.msra.mxu0 %v7690_v24 }
 0x40c   : > { %5487 = vmatprep.subr.bf16.mxu0 %v7695_v26 }
 0x40f   : > { %5488 = vmatpush1.bf16.msra.mxu0 %v7693_v4 }
 0x412   : > { %5490 = vmatmul.mubr.bf16.vlgmr.msra.gmra.mrb[0].mxu0 %v4785_v27 }
 0x4b8   : > { %v5409_v36 = vpop.f32.mrb[0].mxu1 }
 0x4b9   : > { %v5410_v37 = vadd.f32 %v5409_v36, %v4888_v33  ;;  %v5411_v38 = vpop.f32.mrb[1].mxu1 }
 0x4ba   : > { %v5413_v39 = vpop.f32.mrb[2].mxu1  ;;  %v5412_v42 = vadd.f32 %v5411_v38, %v4892_v41 }
 0x4bb   : > { %v5414_v52 = vpop.f32.mrb[3].mxu1 }
 0x4e5   : > { %v5491_v43 = vpop.f32.mrb[0].mxu0 }
 0x4e6   : > { %v6582_v44 = vadd.f32 %v5491_v43, %v5410_v37  ;;  %v5493_v21 = vpop.f32.mrb[1].mxu0 }
 0x4e7   : > { %v6584_v45 = vadd.f32 %v5493_v21, %v5412_v42  ;;  %v5495_v48 = vpop.f32.mrb[2].mxu0 }
 0x4e8   : > { %v5496_v50 = vpop.f32.mrb[3].mxu0  ;;  %v5498_v55 = vpack.c.bf16 %v6582_v44, %v6582_v44 }
 0x4e9   : > { %v5499_v53 = vpack.c.bf16 %v6584_v45, %v6584_v45 }
 0x4eb   : > { %5667 = vmatprep.mubr.bf16.mxu1 %v5499_v53 }
 0x4ec   : > { %5668 = vmatmul.mubr.bf16.vlgmr.msra.gmra.mrb[4].mxu1 %v5498_v55 }
 0x5bf   : > { %v6517_v34 = vpop.f32.mrb[4].mxu1 }
 0x5c0   : > { %v6518_v54 = vpop.f32.mrb[5].mxu1 }
 0x5c1   : > { %v6519_v56 = vadd.f32 %v6518_v54, %v6517_v34  ;;  %v6520_v58 = vpop.f32.mrb[6].mxu1 }
 0x5c2   : > { %v6521_v59 = vpop.f32.mrb[7].mxu1 }
 0x5c3   : > { %v5670_v47 = vadd.f32 %v6519_v56, %v6480_v35 }
 0x5c5   : > { %v5676_v19 = vsel %vm5675_vm0, %v5670_v47, -inf }
 0x5c6   : > { %5677 = vmax.xlane.f32.xlu0 %v5676_v19 }
 0x653   : > { %v5678_v60 = vpop.xlane.xlu0 %5677 }
 0x654   : > { %v5679_v40 = vsub.f32 %v5670_v47, %v5678_v60 }
 0x656   : > { %v5680_v61 = vmul.f32 1.442695, %v5679_v40 }
 0x658   : > { %7712 = vpow2.f32 %v5680_v61 }
 0x662   : > { %v7713_v0 = vpop.eup %7712 }
 0x663   : > { %v5682_v1 = vsel %vm5675_vm0, %v7713_v0, 0.0 }
 0x664   : > { %5683 = vadd.xlane.f32.xlu0 %v5682_v1 }
 0x6f1   : > { %v5684_v49 = vpop.xlane.xlu0 %5683 }
 0x6f2   : > { %7714 = vrcp.f32 %v5684_v49 }
 0x6fc   : > { %v7715_v2 = vpop.eup %7714 }
 0x6fd   : > { %v5686_v63 = vmul.f32 %v7715_v2, %v7713_v0 }
 0x6ff   : > { %5687 = vst.msk [vmem:[#allocation12] sm:$0x3] %vm5675_vm0, %v5686_v63 }
 0x700 PF: > { %p6641_p4 = scmp.eq.s32.totalorder %s8004_s28, 1  ;;  %s7944_s30 = smov [#allocation12]  }
 0x701   : > { %s5695_s11 = sshll.u32 %s7944_s30, 4  ;;  %s5696_s11 = int_to_ptr.vmem [resolvable:$true] %s5695_s11 }
 0x702   : > { %s7858_s22 = scalar_lea.vmem %s5696_s11, 32  ;;  %p7865_p2 = scmp.lt.s32.totalorder %s5696_s11, %s5696_s11 }
 0x703   : > { %p7859_p8 = scmp.ne.s32.totalorder %s5696_s11, %s7858_s22  ;;  %p7866_p6 = scmp.lt.s32.totalorder %s7858_s22, %s7858_s22 }
 0x705   : > { %p7860_p12 = pnand %p7859_p8, %p6641_p4  ;;  %p7867_p13 = por %p7866_p6, %p7865_p2 }
 0x707   : > { %p7861_p0 = pneg %p7860_p12 }
 0x709   : > { %p7868_p3 = pnand %p7867_p13, %p7861_p0 }
 0x70b   : > { %7871 = shalt.err (!%p7868_p3)
}
 0x70c   : > { %s7872_s27 = scalar_lea.hbm %s9021_s7, 32 }
 0x70d   : > { %p7873_p5 = scmp.ne.s32.totalorder %s9021_s7, %s7872_s27  ;;  %p7878_p9 = scmp.lt.u32.totalorder %s7872_s27, %s9021_s7 }
 0x70f   : > { %p7874_p7 = pnand %p7873_p5, %p6641_p4 }
 0x711   : > { %p7875_p10 = pneg %p7874_p7 }
 0x713   : > { %p7880_p11 = pnand %p7878_p9, %p7875_p10 }
 0x715   : > { %7883 = shalt.err (!%p7880_p11)
}
 0x716   : > { %6611 = dma.vmem_to_hbm [thread:$0]  (%p6641_p4), %s5696_s11, 32, %s9021_s7, [#allocation5]  }
 0x717   : > { %7913 = dma.done.wait (%p6641_p4), [#allocation5], 32  }
 0x718   : > { %7915 = vsyncadd (%p6641_p4), [#allocation5], 4294967264 }
 0x719 PF: > { %p20_p1 = scmp.ge.s32.totalorder %s8104_s23, 4   ;;  %s9037_s24 = smov %s7922_s25 }
 0x71a   : > { %s9038_s25 = smov %s7926_s26  ;;  %s9039_s26 = smov %s8132_s10 }
 0x71b   : > { %s9040_s27 = smov %s8104_s23  ;;  %22 = sbr.rel (!%p20_p1) target bundleno = 6 (0x6), region = 112 }
 0x722   :  { %5708 = vsyncpa [#allocation4], 1 }
 0x723   :  { %5710 = vsyncpa [#allocation4 + $0x1], 1 }
 0x724   :  { %5711 = vsyncpa [#allocation7], 1 }
 0x725   :  { %5712 = vsyncpa [#allocation10], 1 }
 0x726   :  { %5713 = vsyncpa [#allocation5], 1 }
 0x727   :  { %5715 = vsyncpa [#allocation5 + $0x1], 1 }

</bundles_post_ra>
